<compile_context>
chip_gen: v7x
topology: tpu7x:2x2x1
jax: 0.10.0
libtpu: 0.0.40
codegen_flags: <defaults>
</compile_context>

<pallas_src>
import functools
import math

import jax
import jax.numpy as jnp
from jax.experimental import pallas as pl
from jax.experimental.pallas import tpu as pltpu

LN_EPS = 1e-5

_PARAM_ORDER = [
    "sa_wq", "sa_wk", "sa_wv", "sa_bq", "sa_bk", "sa_bv", "sa_wo", "sa_bo",
    "ca_wq", "ca_wk", "ca_wv", "ca_bq", "ca_bk", "ca_bv", "ca_wo", "ca_bo",
    "w1", "b1", "w2", "b2",
    "n1g", "n1b", "n2g", "n2b", "n3g", "n3b",
]

_MATMUL_WEIGHTS = ("wq", "wk", "wv", "wo")


# ---------------------------------------------------------------------------
# parameter preparation (shared by kernel wrapper and pure-JAX reference)
# ---------------------------------------------------------------------------
def prepare_params(params, sa_nhead, mha_nhead):
    """Fold 1/sqrt(dh) into the Q projections, cast matmul weights to bf16."""
    E = params["sa_wq"].shape[-1]
    sa_scale = 1.0 / float(E // sa_nhead) ** 0.5
    ca_scale = 1.0 / float(E // mha_nhead) ** 0.5
    out = {}
    for name in _PARAM_ORDER:
        w = params[name].astype(jnp.float32)
        if name in ("sa_wq", "sa_bq"):
            w = w * sa_scale
        elif name in ("ca_wq", "ca_bq"):
            w = w * ca_scale
        if name.endswith(_MATMUL_WEIGHTS) or name in ("w1", "w2"):
            w = w.astype(jnp.bfloat16)
        out[name] = w
    return out


# ---------------------------------------------------------------------------
# math helpers (shared by the kernel body and the pure-JAX reference)
# ---------------------------------------------------------------------------
def _layernorm(x, g, b):
    mu = jnp.mean(x, axis=-1, keepdims=True)
    xc = x - mu
    var = jnp.mean(xc * xc, axis=-1, keepdims=True)
    return xc * jax.lax.rsqrt(var + LN_EPS) * g + b


def _mha_flat(xq, xk, xv, B, Lq, Lk, nhead,
              wq, bq, wk, bk, wv, bv, wo, bo, *, approx_recip):
    """Multi-head attention on flattened (B*L, E) token tiles.

    1/sqrt(dh) is already folded into wq/bq.  Returns
      out  : (B*Lq, E)   f32
      attn : (B, Lq, Lk) f32 (averaged over heads — PyTorch semantics)
    """
    E = wq.shape[1]
    dh = E // nhead
    bf = jnp.bfloat16

    # projections: one big MXU matmul each, bf16 in / f32 accumulate
    q = jnp.dot(xq.astype(bf), wq, preferred_element_type=jnp.float32) + bq
    k = jnp.dot(xk.astype(bf), wk, preferred_element_type=jnp.float32) + bk
    v = jnp.dot(xv.astype(bf), wv, preferred_element_type=jnp.float32) + bv

    q3 = q.reshape(B, Lq, E).astype(bf)
    k3 = k.reshape(B, Lk, E).astype(bf)
    v3 = v.reshape(B, Lk, E).astype(bf)

    # Per-head static loop kept deliberately (see module header): a fully
    # head-batched formulation needs a minor-dim transpose / 2-batch-dim
    # dot_general, which is fragile under Mosaic lowering.
    ctx_heads = []
    attn_sum = jnp.zeros((B, Lq, Lk), jnp.float32)
    for h in range(nhead):
        sl = slice(h * dh, (h + 1) * dh)
        s = jnp.einsum("bqd,bkd->bqk", q3[:, :, sl], k3[:, :, sl],
                       preferred_element_type=jnp.float32)
        s = s - jnp.max(s, axis=-1, keepdims=True)
        e = jnp.exp(s)
        denom = jnp.sum(e, axis=-1, keepdims=True)
        if approx_recip:
            p = e * pl.reciprocal(denom, approx=True)   # EUP slot, frees VALU
        else:
            p = e / denom
        attn_sum = attn_sum + p
        ctx = jnp.einsum("bqk,bkd->bqd", p.astype(bf), v3[:, :, sl],
                         preferred_element_type=jnp.float32)
        ctx_heads.append(ctx.reshape(B * Lq, dh))

    concat = jnp.concatenate(ctx_heads, axis=-1).astype(bf)   # (B*Lq, E)
    out = jnp.dot(concat, wo, preferred_element_type=jnp.float32) + bo
    return out, attn_sum * (1.0 / float(nhead))


# ---------------------------------------------------------------------------
# Pallas kernel: one (batch block, layer) step of the decoder stack
# ---------------------------------------------------------------------------
def _make_kernel(sa_nhead, ca_nhead, B, Lq, Lk, S, return_attn, approx_softmax):
    n_params = len(_PARAM_ORDER)

    def kernel(*refs):
        tq_ref, tk_ref, tv_ref, sk_ref, sv_ref = refs[:5]
        p = dict(zip(_PARAM_ORDER, refs[5:5 + n_params]))
        rest = refs[5 + n_params:]
        if return_attn:
            out_ref, aself_ref, across_ref, carry_ref = rest
        else:
            out_ref, carry_ref = rest
            aself_ref = across_ref = None

        layer = pl.program_id(1)
        num_layers = pl.num_programs(1)
        bf = jnp.bfloat16

        # first layer of this batch block: seed the carried target stream
        @pl.when(layer == 0)
        def _():
            carry_ref[...] = tq_ref[...]

        x = carry_ref[...]                                    # (B*Lq, E) f32

        # --- self attention (q = running tgt, k/v = original tgt_k / tgt_v) ---
        sa_out, attn_self = _mha_flat(
            x, tk_ref[...], tv_ref[...], B, Lq, Lk, sa_nhead,
            p["sa_wq"][0], p["sa_bq"][0], p["sa_wk"][0], p["sa_bk"][0],
            p["sa_wv"][0], p["sa_bv"][0], p["sa_wo"][0], p["sa_bo"][0],
            approx_recip=approx_softmax)
        x = _layernorm(x + sa_out, p["n1g"][0], p["n1b"][0])   # dropout1 = id

        # --- cross attention (k = src_k, v = src_v; linear0 is None) ---
        ca_out, attn_cross = _mha_flat(
            x, sk_ref[...], sv_ref[...], B, Lq, S, ca_nhead,
            p["ca_wq"][0], p["ca_bq"][0], p["ca_wk"][0], p["ca_bk"][0],
            p["ca_wv"][0], p["ca_bv"][0], p["ca_wo"][0], p["ca_bo"][0],
            approx_recip=approx_softmax)
        x = _layernorm(x + ca_out, p["n2g"][0], p["n2b"][0])   # dropout2 = id

        # --- feed forward (relu) + residual + norm3 ---
        h = jnp.dot(x.astype(bf), p["w1"][0],
                    preferred_element_type=jnp.float32) + p["b1"][0]
        h = jnp.maximum(h, 0.0)
        y = jnp.dot(h.astype(bf), p["w2"][0],
                    preferred_element_type=jnp.float32) + p["b2"][0]
        x = _layernorm(x + y, p["n3g"][0], p["n3b"][0])        # dropout3 = id

        if return_attn:
            aself_ref[0] = attn_self.astype(aself_ref.dtype)
            across_ref[0] = attn_cross.astype(across_ref.dtype)

        # carry to the next layer (skip the dead store on the last layer)
        @pl.when(layer < num_layers - 1)
        def _():
            carry_ref[...] = x

        # final layer: write the decoder output block (flushed per batch block)
        @pl.when(layer == num_layers - 1)
        def _():
            out_ref[...] = x

    return kernel


# ---------------------------------------------------------------------------
# wrapper
# ---------------------------------------------------------------------------
def _lcm(a, b):
    return a * b // math.gcd(a, b)


def _sublane_multiple(seq_lens):
    """Smallest m such that m*L % 8 == 0 for every sequence length L."""
    m = 1
    for L in seq_lens:
        m = _lcm(m, 8 // math.gcd(int(L), 8))
    return m


def xat_transformer_decoder(params, tgt_q, tgt_k, tgt_v, src_k, src_v,
                            sa_nhead, mha_nhead, *, b_tile=None,
                            return_attn=True, approx_softmax=True,
                            final_norm=None, vmem_budget_bytes=40 << 20):
    """XATransformerDecoder forward (inference).

    Inputs use the PyTorch (L, N, E) layout. `params` holds per-layer-stacked
    weights (leading dim = num_layers). Returns output (Lq, N, E) and, when
    `return_attn`, the per-layer averaged attention maps
    (num_layers, N, Lq, Lk) and (num_layers, N, Lq, S).
    """
    Lq, N, E = tgt_q.shape
    Lk = tgt_k.shape[0]
    S = src_k.shape[0]
    num_layers = params["sa_wq"].shape[0]
    F = params["w1"].shape[-1]

    prepared = prepare_params(params, sa_nhead, mha_nhead)
    weights = [prepared[n] for n in _PARAM_ORDER]
    per_layer_w_bytes = sum(int(w[0].size) * w.dtype.itemsize for w in weights)

    # ---- b_tile selection from a VMEM budget --------------------------------
    # per-batch-element VMEM cost of one grid step (rough, bytes)
    per_b = 0
    per_b += 2 * 4 * E * (Lq + 2 * Lk + 2 * S)   # double-buffered f32 input blocks
    per_b += 2 * 4 * Lq * E                      # main output block (f32, x2)
    if return_attn:
        per_b += 2 * 2 * Lq * (Lk + S)           # bf16 attention blocks (x2)
    per_b += 4 * Lq * E                          # carry scratch
    per_b += 4 * Lq * (4 * E + F)                # live intermediates (q,k,v,x,FFN h)
    per_b += 4 * 4 * Lq * max(Lk, S)             # scores / probs / attn sums
    fixed = 2 * per_layer_w_bytes                # double-buffered layer weights

    req = _sublane_multiple((Lq, Lk, S))
    if b_tile is None:
        b_tile = (vmem_budget_bytes - fixed) // per_b
    b_tile = int(max(1, min(int(b_tile), N)))
    if N >= 2:                                   # keep nb >= 2 (v7x: 2nd TC busy)
        b_tile = min(b_tile, -(-N // 2))
    b_tile = -(-b_tile // req) * req             # flattened blocks need b_tile*L % 8 == 0
    nb = -(-N // b_tile)
    n_pad = nb * b_tile

    # ---- data layout: batch-major, flattened to (n_pad*L, E) in the wrapper --
    def prep(x, L):
        x = jnp.transpose(x, (1, 0, 2)).astype(jnp.float32)    # (N, L, E)
        if n_pad != N:
            x = jnp.pad(x, ((0, n_pad - N), (0, 0), (0, 0)))
        return x.reshape(n_pad * L, E)

    data = [prep(tgt_q, Lq), prep(tgt_k, Lk), prep(tgt_v, Lk),
            prep(src_k, S), prep(src_v, S)]

    # ---- specs ---------------------------------------------------------------
    def data_spec(L):
        # block index depends only on b -> fetched once per batch block.
        return pl.BlockSpec((b_tile * L, E), lambda b, l: (b, 0))

    def layer_spec(shape):
        nd = len(shape) - 1
        return pl.BlockSpec((1,) + tuple(shape[1:]),
                            lambda b, l, _nd=nd: (l,) + (0,) * _nd)

    in_specs = [data_spec(Lq), data_spec(Lk), data_spec(Lk),
                data_spec(S), data_spec(S)]
    in_specs += [layer_spec(w.shape) for w in weights]

    out_shape = [jax.ShapeDtypeStruct((n_pad * Lq, E), jnp.float32)]
    out_specs = [pl.BlockSpec((b_tile * Lq, E), lambda b, l: (b, 0))]
    if return_attn:
        out_shape += [
            jax.ShapeDtypeStruct((num_layers, n_pad, Lq, Lk), jnp.bfloat16),
            jax.ShapeDtypeStruct((num_layers, n_pad, Lq, S), jnp.bfloat16),
        ]
        out_specs += [
            pl.BlockSpec((1, b_tile, Lq, Lk), lambda b, l: (l, b, 0, 0)),
            pl.BlockSpec((1, b_tile, Lq, S), lambda b, l: (l, b, 0, 0)),
        ]

    vmem_needed = fixed + b_tile * per_b
    vmem_limit = int(min(max(2 * vmem_needed, 32 << 20), 64 << 20))

    kernel = _make_kernel(sa_nhead, mha_nhead, b_tile, Lq, Lk, S,
                          return_attn, approx_softmax)
    outs = pl.pallas_call(
        kernel,
        grid=(nb, num_layers),                 # batch blocks (parallel) x layers
        in_specs=in_specs,
        out_specs=tuple(out_specs),
        out_shape=tuple(out_shape),
        scratch_shapes=[pltpu.VMEM((b_tile * Lq, E), jnp.float32)],
        compiler_params=pltpu.CompilerParams(
            dimension_semantics=("parallel", "arbitrary"),
            vmem_limit_bytes=vmem_limit),
    )(*data, *weights)

    out = outs[0].reshape(n_pad, Lq, E)[:N]
    out = jnp.transpose(out, (1, 0, 2))                       # back to (Lq, N, E)
    if final_norm is not None:                                # decoder's optional norm
        out = _layernorm(out, final_norm[0], final_norm[1])
    if not return_attn:
        return out
    attn_self = outs[1][:, :N].astype(jnp.float32)
    attn_cross = outs[2][:, :N].astype(jnp.float32)
    return out, attn_self, attn_cross


# ---------------------------------------------------------------------------
# pure-JAX reference (same math incl. bf16 matmuls & folded scale, no Pallas)
# ---------------------------------------------------------------------------
def reference(params, tgt_q, tgt_k, tgt_v, src_k, src_v,
              sa_nhead, mha_nhead, final_norm=None):
    prepared = prepare_params(params, sa_nhead, mha_nhead)
    num_layers = params["sa_wq"].shape[0]
    to_b = lambda a: jnp.transpose(a, (1, 0, 2)).astype(jnp.float32)
    xq3 = to_b(tgt_q)
    tk3, tv3 = to_b(tgt_k), to_b(tgt_v)
    sk3, sv3 = to_b(src_k), to_b(src_v)
    N, Lq, E = xq3.shape
    Lk, S = tk3.shape[1], sk3.shape[1]
    bf = jnp.bfloat16

    def get(name, l):
        return prepared[name][l]

    x = xq3.reshape(N * Lq, E)
    tkf, tvf = tk3.reshape(N * Lk, E), tv3.reshape(N * Lk, E)
    skf, svf = sk3.reshape(N * S, E), sv3.reshape(N * S, E)

    a_selfs, a_crosses = [], []
    for l in range(num_layers):
        sa_out, a_s = _mha_flat(
            x, tkf, tvf, N, Lq, Lk, sa_nhead,
            get("sa_wq", l), get("sa_bq", l), get("sa_wk", l), get("sa_bk", l),
            get("sa_wv", l), get("sa_bv", l), get("sa_wo", l), get("sa_bo", l),
            approx_recip=False)
        x = _layernorm(x + sa_out, get("n1g", l), get("n1b", l))
        ca_out, a_c = _mha_flat(
            x, skf, svf, N, Lq, S, mha_nhead,
            get("ca_wq", l), get("ca_bq", l), get("ca_wk", l), get("ca_bk", l),
            get("ca_wv", l), get("ca_bv", l), get("ca_wo", l), get("ca_bo", l),
            approx_recip=False)
        x = _layernorm(x + ca_out, get("n2g", l), get("n2b", l))
        h = jnp.maximum(
            jnp.dot(x.astype(bf), get("w1", l),
                    preferred_element_type=jnp.float32) + get("b1", l), 0.0)
        y = jnp.dot(h.astype(bf), get("w2", l),
                    preferred_element_type=jnp.float32) + get("b2", l)
        x = _layernorm(x + y, get("n3g", l), get("n3b", l))
        a_selfs.append(a_s)
        a_crosses.append(a_c)

    out = jnp.transpose(x.reshape(N, Lq, E), (1, 0, 2))
    if final_norm is not None:
        out = _layernorm(out, final_norm[0], final_norm[1])
    return out, jnp.stack(a_selfs, 0), jnp.stack(a_crosses, 0)


# ---------------------------------------------------------------------------
# deterministic parameter init (shapes follow the nn.Module __init__)
# ---------------------------------------------------------------------------
def init_params(key, num_layers, d_model, dim_ff):
    E, F = d_model, dim_ff
    names_shapes = []
    for pre in ("sa", "ca"):
        names_shapes += [(f"{pre}_wq", (E, E)), (f"{pre}_wk", (E, E)),
                         (f"{pre}_wv", (E, E)), (f"{pre}_bq", (1, E)),
                         (f"{pre}_bk", (1, E)), (f"{pre}_bv", (1, E)),
                         (f"{pre}_wo", (E, E)), (f"{pre}_bo", (1, E))]
    names_shapes += [("w1", (E, F)), ("b1", (1, F)),
                     ("w2", (F, E)), ("b2", (1, E))]
    keys = jax.random.split(key, len(names_shapes))
    p = {}
    for (name, shape), k in zip(names_shapes, keys):
        p[name] = 0.1 * jax.random.normal(k, (num_layers,) + shape, jnp.float32)
    for n in ("n1", "n2", "n3"):   # PyTorch LayerNorm default init
        p[f"{n}g"] = jnp.ones((num_layers, 1, E), jnp.float32)
        p[f"{n}b"] = jnp.zeros((num_layers, 1, E), jnp.float32)
    return p


if __name__ == "__main__":
    # small shapes consistent with the module's (L, N, E) convention
    Lq = Lk = 8      # target sequence length
    S = 16           # memory sequence length
    N = 3            # batch (exercises multi-block grid + batch padding)
    E = 32           # d_model
    FF = 64          # dim_feedforward
    SA_NHEAD = 4
    MHA_NHEAD = 4
    NUM_LAYERS = 2   # decoder stack depth

    key = jax.random.PRNGKey(0)
    kp, k1, k2, k3, k4, k5 = jax.random.split(key, 6)
    params = init_params(kp, NUM_LAYERS, E, FF)

    tgt_q = jax.random.normal(k1, (Lq, N, E), jnp.float32)
    tgt_k = jax.random.normal(k2, (Lk, N, E), jnp.float32)
    tgt_v = jax.random.normal(k3, (Lk, N, E), jnp.float32)
    src_k = jax.random.normal(k4, (S, N, E), jnp.float32)
    src_v = jax.random.normal(k5, (S, N, E), jnp.float32)

    out, attn_self, attn_cross = xat_transformer_decoder(
        params, tgt_q, tgt_k, tgt_v, src_k, src_v, SA_NHEAD, MHA_NHEAD)
    jax.block_until_ready((out, attn_self, attn_cross))

    # sanity check vs. pure-JAX reference (same bf16 matmul policy)
    ref_out, ref_as, ref_ac = reference(
        params, tgt_q, tgt_k, tgt_v, src_k, src_v, SA_NHEAD, MHA_NHEAD)

    assert out.shape == (Lq, N, E)
    assert attn_self.shape == (NUM_LAYERS, N, Lq, Lk)
    assert attn_cross.shape == (NUM_LAYERS, N, Lq, S)
    assert bool(jnp.all(jnp.isfinite(out)))
    assert jnp.allclose(out, ref_out, atol=3e-2, rtol=3e-2)
    assert jnp.allclose(attn_self, ref_as, atol=2e-2, rtol=2e-2)
    assert jnp.allclose(attn_cross, ref_ac, atol=2e-2, rtol=2e-2)

    print("KERNEL_OK")
</pallas_src>

<mosaic_0001>
module attributes {stable_mosaic.version = 11 : i64} {
  func.func @kernel(%arg0: i32, %arg1: i32, %arg2: memref<16x32xf32, #tpu.memory_space<vmem>>, %arg3: memref<16x32xf32, #tpu.memory_space<vmem>>, %arg4: memref<16x32xf32, #tpu.memory_space<vmem>>, %arg5: memref<32x32xf32, #tpu.memory_space<vmem>>, %arg6: memref<32x32xf32, #tpu.memory_space<vmem>>, %arg7: memref<1x32x32xbf16, #tpu.memory_space<vmem>>, %arg8: memref<1x32x32xbf16, #tpu.memory_space<vmem>>, %arg9: memref<1x32x32xbf16, #tpu.memory_space<vmem>>, %arg10: memref<1x1x32xf32, #tpu.memory_space<vmem>>, %arg11: memref<1x1x32xf32, #tpu.memory_space<vmem>>, %arg12: memref<1x1x32xf32, #tpu.memory_space<vmem>>, %arg13: memref<1x32x32xbf16, #tpu.memory_space<vmem>>, %arg14: memref<1x1x32xf32, #tpu.memory_space<vmem>>, %arg15: memref<1x32x32xbf16, #tpu.memory_space<vmem>>, %arg16: memref<1x32x32xbf16, #tpu.memory_space<vmem>>, %arg17: memref<1x32x32xbf16, #tpu.memory_space<vmem>>, %arg18: memref<1x1x32xf32, #tpu.memory_space<vmem>>, %arg19: memref<1x1x32xf32, #tpu.memory_space<vmem>>, %arg20: memref<1x1x32xf32, #tpu.memory_space<vmem>>, %arg21: memref<1x32x32xbf16, #tpu.memory_space<vmem>>, %arg22: memref<1x1x32xf32, #tpu.memory_space<vmem>>, %arg23: memref<1x32x64xbf16, #tpu.memory_space<vmem>>, %arg24: memref<1x1x64xf32, #tpu.memory_space<vmem>>, %arg25: memref<1x64x32xbf16, #tpu.memory_space<vmem>>, %arg26: memref<1x1x32xf32, #tpu.memory_space<vmem>>, %arg27: memref<1x1x32xf32, #tpu.memory_space<vmem>>, %arg28: memref<1x1x32xf32, #tpu.memory_space<vmem>>, %arg29: memref<1x1x32xf32, #tpu.memory_space<vmem>>, %arg30: memref<1x1x32xf32, #tpu.memory_space<vmem>>, %arg31: memref<1x1x32xf32, #tpu.memory_space<vmem>>, %arg32: memref<1x1x32xf32, #tpu.memory_space<vmem>>, %arg33: memref<16x32xf32, #tpu.memory_space<vmem>>, %arg34: memref<1x2x8x8xbf16, #tpu.memory_space<vmem>>, %arg35: memref<1x2x8x16xbf16, #tpu.memory_space<vmem>>, %arg36: memref<16x32xf32, #tpu.memory_space<vmem>>) attributes {dimension_semantics = [#tpu.dimension_semantics<parallel>, #tpu.dimension_semantics<arbitrary>], iteration_bounds = array<i64: 2, 2>, scalar_prefetch = 0 : i64, scratch_operands = 1 : i64, tpu.core_type = #tpu.core_type<tc>, window_params = [{transform_indices = @transform_0, window_bounds = array<i64: 16, 32>}, {transform_indices = @transform_1, window_bounds = array<i64: 16, 32>}, {transform_indices = @transform_2, window_bounds = array<i64: 16, 32>}, {transform_indices = @transform_3, window_bounds = array<i64: 32, 32>}, {transform_indices = @transform_4, window_bounds = array<i64: 32, 32>}, {transform_indices = @transform_5, window_bounds = array<i64: 1, 32, 32>}, {transform_indices = @transform_6, window_bounds = array<i64: 1, 32, 32>}, {transform_indices = @transform_7, window_bounds = array<i64: 1, 32, 32>}, {transform_indices = @transform_8, window_bounds = array<i64: 1, 1, 32>}, {transform_indices = @transform_9, window_bounds = array<i64: 1, 1, 32>}, {transform_indices = @transform_10, window_bounds = array<i64: 1, 1, 32>}, {transform_indices = @transform_11, window_bounds = array<i64: 1, 32, 32>}, {transform_indices = @transform_12, window_bounds = array<i64: 1, 1, 32>}, {transform_indices = @transform_13, window_bounds = array<i64: 1, 32, 32>}, {transform_indices = @transform_14, window_bounds = array<i64: 1, 32, 32>}, {transform_indices = @transform_15, window_bounds = array<i64: 1, 32, 32>}, {transform_indices = @transform_16, window_bounds = array<i64: 1, 1, 32>}, {transform_indices = @transform_17, window_bounds = array<i64: 1, 1, 32>}, {transform_indices = @transform_18, window_bounds = array<i64: 1, 1, 32>}, {transform_indices = @transform_19, window_bounds = array<i64: 1, 32, 32>}, {transform_indices = @transform_20, window_bounds = array<i64: 1, 1, 32>}, {transform_indices = @transform_21, window_bounds = array<i64: 1, 32, 64>}, {transform_indices = @transform_22, window_bounds = array<i64: 1, 1, 64>}, {transform_indices = @transform_23, window_bounds = array<i64: 1, 64, 32>}, {transform_indices = @transform_24, window_bounds = array<i64: 1, 1, 32>}, {transform_indices = @transform_25, window_bounds = array<i64: 1, 1, 32>}, {transform_indices = @transform_26, window_bounds = array<i64: 1, 1, 32>}, {transform_indices = @transform_27, window_bounds = array<i64: 1, 1, 32>}, {transform_indices = @transform_28, window_bounds = array<i64: 1, 1, 32>}, {transform_indices = @transform_29, window_bounds = array<i64: 1, 1, 32>}, {transform_indices = @transform_30, window_bounds = array<i64: 1, 1, 32>}, {transform_indices = @transform_31, window_bounds = array<i64: 16, 32>}, {transform_indices = @transform_32, window_bounds = array<i64: 1, 2, 8, 8>}, {transform_indices = @transform_33, window_bounds = array<i64: 1, 2, 8, 16>}]} {
    %c0_i32 = arith.constant 0 : i32
    %0 = arith.cmpi eq, %arg1, %c0_i32 : i32
    %1 = arith.extui %0 : i1 to i32
    %c0_i32_0 = arith.constant 0 : i32
    %2 = arith.cmpi ne, %1, %c0_i32_0 : i32
    scf.if %2 {
      %c0_160 = arith.constant 0 : index
      %c0_161 = arith.constant 0 : index
      %343 = vector.load %arg2[%c0_160, %c0_161] : memref<16x32xf32, #tpu.memory_space<vmem>>, vector<16x32xf32>
      %c0_162 = arith.constant 0 : index
      %c0_163 = arith.constant 0 : index
      %344 = vector.load %arg36[%c0_162, %c0_163] : memref<16x32xf32, #tpu.memory_space<vmem>>, vector<16x32xf32>
      tpu.vector_store %arg36[%c0_162, %c0_163], %343 {strides = array<i32>} : memref<16x32xf32, #tpu.memory_space<vmem>>, vector<16x32xf32>,
    } else {
    }
    %c0 = arith.constant 0 : index
    %c0_1 = arith.constant 0 : index
    %3 = vector.load %arg36[%c0, %c0_1] : memref<16x32xf32, #tpu.memory_space<vmem>>, vector<16x32xf32>
    %c0_2 = arith.constant 0 : index
    %c0_3 = arith.constant 0 : index
    %4 = vector.load %arg3[%c0_2, %c0_3] : memref<16x32xf32, #tpu.memory_space<vmem>>, vector<16x32xf32>
    %c0_4 = arith.constant 0 : index
    %c0_5 = arith.constant 0 : index
    %5 = vector.load %arg4[%c0_4, %c0_5] : memref<16x32xf32, #tpu.memory_space<vmem>>, vector<16x32xf32>
    %c0_6 = arith.constant 0 : index
    %c0_7 = arith.constant 0 : index
    %c0_8 = arith.constant 0 : index
    %6 = vector.load %arg7[%c0_6, %c0_7, %c0_8] : memref<1x32x32xbf16, #tpu.memory_space<vmem>>, vector<1x32x32xbf16>
    %7 = vector.shape_cast %6 : vector<1x32x32xbf16> to vector<32x32xbf16>
    %c0_9 = arith.constant 0 : index
    %c0_10 = arith.constant 0 : index
    %c0_11 = arith.constant 0 : index
    %8 = vector.load %arg10[%c0_9, %c0_10, %c0_11] : memref<1x1x32xf32, #tpu.memory_space<vmem>>, vector<1x1x32xf32>
    %9 = vector.shape_cast %8 : vector<1x1x32xf32> to vector<1x32xf32>
    %c0_12 = arith.constant 0 : index
    %c0_13 = arith.constant 0 : index
    %c0_14 = arith.constant 0 : index
    %10 = vector.load %arg8[%c0_12, %c0_13, %c0_14] : memref<1x32x32xbf16, #tpu.memory_space<vmem>>, vector<1x32x32xbf16>
    %11 = vector.shape_cast %10 : vector<1x32x32xbf16> to vector<32x32xbf16>
    %c0_15 = arith.constant 0 : index
    %c0_16 = arith.constant 0 : index
    %c0_17 = arith.constant 0 : index
    %12 = vector.load %arg11[%c0_15, %c0_16, %c0_17] : memref<1x1x32xf32, #tpu.memory_space<vmem>>, vector<1x1x32xf32>
    %13 = vector.shape_cast %12 : vector<1x1x32xf32> to vector<1x32xf32>
    %c0_18 = arith.constant 0 : index
    %c0_19 = arith.constant 0 : index
    %c0_20 = arith.constant 0 : index
    %14 = vector.load %arg9[%c0_18, %c0_19, %c0_20] : memref<1x32x32xbf16, #tpu.memory_space<vmem>>, vector<1x32x32xbf16>
    %15 = vector.shape_cast %14 : vector<1x32x32xbf16> to vector<32x32xbf16>
    %c0_21 = arith.constant 0 : index
    %c0_22 = arith.constant 0 : index
    %c0_23 = arith.constant 0 : index
    %16 = vector.load %arg12[%c0_21, %c0_22, %c0_23] : memref<1x1x32xf32, #tpu.memory_space<vmem>>, vector<1x1x32xf32>
    %17 = vector.shape_cast %16 : vector<1x1x32xf32> to vector<1x32xf32>
    %c0_24 = arith.constant 0 : index
    %c0_25 = arith.constant 0 : index
    %c0_26 = arith.constant 0 : index
    %18 = vector.load %arg13[%c0_24, %c0_25, %c0_26] : memref<1x32x32xbf16, #tpu.memory_space<vmem>>, vector<1x32x32xbf16>
    %19 = vector.shape_cast %18 : vector<1x32x32xbf16> to vector<32x32xbf16>
    %c0_27 = arith.constant 0 : index
    %c0_28 = arith.constant 0 : index
    %c0_29 = arith.constant 0 : index
    %20 = vector.load %arg14[%c0_27, %c0_28, %c0_29] : memref<1x1x32xf32, #tpu.memory_space<vmem>>, vector<1x1x32xf32>
    %21 = vector.shape_cast %20 : vector<1x1x32xf32> to vector<1x32xf32>
    %22 = arith.truncf %3 : vector<16x32xf32> to vector<16x32xbf16>
    %cst = arith.constant dense<0.000000e+00> : vector<16x32xf32>
    %23 = tpu.matmul %22, %7, %cst {dimension_numbers = #tpu.dot_dimension_numbers<[1], [0], [0], [1], [0, 0, 1, 1], [], []>} : vector<16x32xbf16>, vector<32x32xbf16>, vector<16x32xf32> -> vector<16x32xf32>
    %24 = vector.broadcast %9 : vector<1x32xf32> to vector<16x32xf32>
    %25 = arith.addf %23, %24 : vector<16x32xf32>
    %26 = arith.truncf %4 : vector<16x32xf32> to vector<16x32xbf16>
    %cst_30 = arith.constant dense<0.000000e+00> : vector<16x32xf32>
    %27 = tpu.matmul %26, %11, %cst_30 {dimension_numbers = #tpu.dot_dimension_numbers<[1], [0], [0], [1], [0, 0, 1, 1], [], []>} : vector<16x32xbf16>, vector<32x32xbf16>, vector<16x32xf32> -> vector<16x32xf32>
    %28 = vector.broadcast %13 : vector<1x32xf32> to vector<16x32xf32>
    %29 = arith.addf %27, %28 : vector<16x32xf32>
    %30 = arith.truncf %5 : vector<16x32xf32> to vector<16x32xbf16>
    %cst_31 = arith.constant dense<0.000000e+00> : vector<16x32xf32>
    %31 = tpu.matmul %30, %15, %cst_31 {dimension_numbers = #tpu.dot_dimension_numbers<[1], [0], [0], [1], [0, 0, 1, 1], [], []>} : vector<16x32xbf16>, vector<32x32xbf16>, vector<16x32xf32> -> vector<16x32xf32>
    %32 = vector.broadcast %17 : vector<1x32xf32> to vector<16x32xf32>
    %33 = arith.addf %31, %32 : vector<16x32xf32>
    %34 = vector.shape_cast %25 : vector<16x32xf32> to vector<2x8x32xf32>
    %35 = arith.truncf %34 : vector<2x8x32xf32> to vector<2x8x32xbf16>
    %36 = vector.shape_cast %29 : vector<16x32xf32> to vector<2x8x32xf32>
    %37 = arith.truncf %36 : vector<2x8x32xf32> to vector<2x8x32xbf16>
    %38 = vector.shape_cast %33 : vector<16x32xf32> to vector<2x8x32xf32>
    %39 = arith.truncf %38 : vector<2x8x32xf32> to vector<2x8x32xbf16>
    %cst_32 = arith.constant 0.000000e+00 : f32
    %40 = vector.broadcast %cst_32 : f32 to vector<2x8x8xf32>
    %41 = vector.extract_strided_slice %35 {offsets = [0, 0, 0], sizes = [2, 8, 8], strides = [1, 1, 1]} : vector<2x8x32xbf16> to vector<2x8x8xbf16>
    %42 = vector.extract_strided_slice %37 {offsets = [0, 0, 0], sizes = [2, 8, 8], strides = [1, 1, 1]} : vector<2x8x32xbf16> to vector<2x8x8xbf16>
    "tpu.trace_start"() <{level = 10 : i32, message = "bqd,bkd->bqk"}> : () -> ()
    %cst_33 = arith.constant dense<0.000000e+00> : vector<2x8x8xf32>
    %43 = tpu.matmul %41, %42, %cst_33 {dimension_numbers = #tpu.dot_dimension_numbers<[2], [2], [1], [1], [0, 0, 0, 1, 1, 1], [0], [0]>} : vector<2x8x8xbf16>, vector<2x8x8xbf16>, vector<2x8x8xf32> -> vector<2x8x8xf32>
    "tpu.trace_stop"() : () -> ()
    %cst_34 = arith.constant dense<0xFF800000> : vector<2x8xf32>
    %44 = vector.multi_reduction <maximumf>, %43, %cst_34 [2] : vector<2x8x8xf32> to vector<2x8xf32>
    %45 = vector.shape_cast %44 : vector<2x8xf32> to vector<2x8x1xf32>
    %46 = vector.broadcast %45 : vector<2x8x1xf32> to vector<2x8x8xf32>
    %47 = arith.subf %43, %46 : vector<2x8x8xf32>
    %48 = math.exp %47 : vector<2x8x8xf32>
    %cst_35 = arith.constant dense<0.000000e+00> : vector<2x8xf32>
    %49 = vector.multi_reduction <add>, %48, %cst_35 [2] : vector<2x8x8xf32> to vector<2x8xf32>
    %50 = vector.shape_cast %49 : vector<2x8xf32> to vector<2x8x1xf32>
    %51 = tpu.reciprocal %50 {approx = true} : vector<2x8x1xf32> -> vector<2x8x1xf32>
    %52 = vector.broadcast %51 : vector<2x8x1xf32> to vector<2x8x8xf32>
    %53 = arith.mulf %48, %52 : vector<2x8x8xf32>
    %54 = arith.addf %40, %53 : vector<2x8x8xf32>
    %55 = arith.truncf %53 : vector<2x8x8xf32> to vector<2x8x8xbf16>
    %56 = vector.extract_strided_slice %39 {offsets = [0, 0, 0], sizes = [2, 8, 8], strides = [1, 1, 1]} : vector<2x8x32xbf16> to vector<2x8x8xbf16>
    "tpu.trace_start"() <{level = 10 : i32, message = "bqk,bkd->bqd"}> : () -> ()
    %cst_36 = arith.constant dense<0.000000e+00> : vector<2x8x8xf32>
    %57 = tpu.matmul %55, %56, %cst_36 {dimension_numbers = #tpu.dot_dimension_numbers<[2], [1], [1], [2], [0, 0, 0, 1, 1, 2], [0], [0]>} : vector<2x8x8xbf16>, vector<2x8x8xbf16>, vector<2x8x8xf32> -> vector<2x8x8xf32>
    "tpu.trace_stop"() : () -> ()
    %58 = vector.shape_cast %57 : vector<2x8x8xf32> to vector<16x8xf32>
    %59 = vector.extract_strided_slice %35 {offsets = [0, 0, 8], sizes = [2, 8, 8], strides = [1, 1, 1]} : vector<2x8x32xbf16> to vector<2x8x8xbf16>
    %60 = vector.extract_strided_slice %37 {offsets = [0, 0, 8], sizes = [2, 8, 8], strides = [1, 1, 1]} : vector<2x8x32xbf16> to vector<2x8x8xbf16>
    "tpu.trace_start"() <{level = 10 : i32, message = "bqd,bkd->bqk"}> : () -> ()
    %cst_37 = arith.constant dense<0.000000e+00> : vector<2x8x8xf32>
    %61 = tpu.matmul %59, %60, %cst_37 {dimension_numbers = #tpu.dot_dimension_numbers<[2], [2], [1], [1], [0, 0, 0, 1, 1, 1], [0], [0]>} : vector<2x8x8xbf16>, vector<2x8x8xbf16>, vector<2x8x8xf32> -> vector<2x8x8xf32>
    "tpu.trace_stop"() : () -> ()
    %cst_38 = arith.constant dense<0xFF800000> : vector<2x8xf32>
    %62 = vector.multi_reduction <maximumf>, %61, %cst_38 [2] : vector<2x8x8xf32> to vector<2x8xf32>
    %63 = vector.shape_cast %62 : vector<2x8xf32> to vector<2x8x1xf32>
    %64 = vector.broadcast %63 : vector<2x8x1xf32> to vector<2x8x8xf32>
    %65 = arith.subf %61, %64 : vector<2x8x8xf32>
    %66 = math.exp %65 : vector<2x8x8xf32>
    %cst_39 = arith.constant dense<0.000000e+00> : vector<2x8xf32>
    %67 = vector.multi_reduction <add>, %66, %cst_39 [2] : vector<2x8x8xf32> to vector<2x8xf32>
    %68 = vector.shape_cast %67 : vector<2x8xf32> to vector<2x8x1xf32>
    %69 = tpu.reciprocal %68 {approx = true} : vector<2x8x1xf32> -> vector<2x8x1xf32>
    %70 = vector.broadcast %69 : vector<2x8x1xf32> to vector<2x8x8xf32>
    %71 = arith.mulf %66, %70 : vector<2x8x8xf32>
    %72 = arith.addf %54, %71 : vector<2x8x8xf32>
    %73 = arith.truncf %71 : vector<2x8x8xf32> to vector<2x8x8xbf16>
    %74 = vector.extract_strided_slice %39 {offsets = [0, 0, 8], sizes = [2, 8, 8], strides = [1, 1, 1]} : vector<2x8x32xbf16> to vector<2x8x8xbf16>
    "tpu.trace_start"() <{level = 10 : i32, message = "bqk,bkd->bqd"}> : () -> ()
    %cst_40 = arith.constant dense<0.000000e+00> : vector<2x8x8xf32>
    %75 = tpu.matmul %73, %74, %cst_40 {dimension_numbers = #tpu.dot_dimension_numbers<[2], [1], [1], [2], [0, 0, 0, 1, 1, 2], [0], [0]>} : vector<2x8x8xbf16>, vector<2x8x8xbf16>, vector<2x8x8xf32> -> vector<2x8x8xf32>
    "tpu.trace_stop"() : () -> ()
    %76 = vector.shape_cast %75 : vector<2x8x8xf32> to vector<16x8xf32>
    %77 = vector.extract_strided_slice %35 {offsets = [0, 0, 16], sizes = [2, 8, 8], strides = [1, 1, 1]} : vector<2x8x32xbf16> to vector<2x8x8xbf16>
    %78 = vector.extract_strided_slice %37 {offsets = [0, 0, 16], sizes = [2, 8, 8], strides = [1, 1, 1]} : vector<2x8x32xbf16> to vector<2x8x8xbf16>
    "tpu.trace_start"() <{level = 10 : i32, message = "bqd,bkd->bqk"}> : () -> ()
    %cst_41 = arith.constant dense<0.000000e+00> : vector<2x8x8xf32>
    %79 = tpu.matmul %77, %78, %cst_41 {dimension_numbers = #tpu.dot_dimension_numbers<[2], [2], [1], [1], [0, 0, 0, 1, 1, 1], [0], [0]>} : vector<2x8x8xbf16>, vector<2x8x8xbf16>, vector<2x8x8xf32> -> vector<2x8x8xf32>
    "tpu.trace_stop"() : () -> ()
    %cst_42 = arith.constant dense<0xFF800000> : vector<2x8xf32>
    %80 = vector.multi_reduction <maximumf>, %79, %cst_42 [2] : vector<2x8x8xf32> to vector<2x8xf32>
    %81 = vector.shape_cast %80 : vector<2x8xf32> to vector<2x8x1xf32>
    %82 = vector.broadcast %81 : vector<2x8x1xf32> to vector<2x8x8xf32>
    %83 = arith.subf %79, %82 : vector<2x8x8xf32>
    %84 = math.exp %83 : vector<2x8x8xf32>
    %cst_43 = arith.constant dense<0.000000e+00> : vector<2x8xf32>
    %85 = vector.multi_reduction <add>, %84, %cst_43 [2] : vector<2x8x8xf32> to vector<2x8xf32>
    %86 = vector.shape_cast %85 : vector<2x8xf32> to vector<2x8x1xf32>
    %87 = tpu.reciprocal %86 {approx = true} : vector<2x8x1xf32> -> vector<2x8x1xf32>
    %88 = vector.broadcast %87 : vector<2x8x1xf32> to vector<2x8x8xf32>
    %89 = arith.mulf %84, %88 : vector<2x8x8xf32>
    %90 = arith.addf %72, %89 : vector<2x8x8xf32>
    %91 = arith.truncf %89 : vector<2x8x8xf32> to vector<2x8x8xbf16>
    %92 = vector.extract_strided_slice %39 {offsets = [0, 0, 16], sizes = [2, 8, 8], strides = [1, 1, 1]} : vector<2x8x32xbf16> to vector<2x8x8xbf16>
    "tpu.trace_start"() <{level = 10 : i32, message = "bqk,bkd->bqd"}> : () -> ()
    %cst_44 = arith.constant dense<0.000000e+00> : vector<2x8x8xf32>
    %93 = tpu.matmul %91, %92, %cst_44 {dimension_numbers = #tpu.dot_dimension_numbers<[2], [1], [1], [2], [0, 0, 0, 1, 1, 2], [0], [0]>} : vector<2x8x8xbf16>, vector<2x8x8xbf16>, vector<2x8x8xf32> -> vector<2x8x8xf32>
    "tpu.trace_stop"() : () -> ()
    %94 = vector.shape_cast %93 : vector<2x8x8xf32> to vector<16x8xf32>
    %95 = vector.extract_strided_slice %35 {offsets = [0, 0, 24], sizes = [2, 8, 8], strides = [1, 1, 1]} : vector<2x8x32xbf16> to vector<2x8x8xbf16>
    %96 = vector.extract_strided_slice %37 {offsets = [0, 0, 24], sizes = [2, 8, 8], strides = [1, 1, 1]} : vector<2x8x32xbf16> to vector<2x8x8xbf16>
    "tpu.trace_start"() <{level = 10 : i32, message = "bqd,bkd->bqk"}> : () -> ()
    %cst_45 = arith.constant dense<0.000000e+00> : vector<2x8x8xf32>
    %97 = tpu.matmul %95, %96, %cst_45 {dimension_numbers = #tpu.dot_dimension_numbers<[2], [2], [1], [1], [0, 0, 0, 1, 1, 1], [0], [0]>} : vector<2x8x8xbf16>, vector<2x8x8xbf16>, vector<2x8x8xf32> -> vector<2x8x8xf32>
    "tpu.trace_stop"() : () -> ()
    %cst_46 = arith.constant dense<0xFF800000> : vector<2x8xf32>
    %98 = vector.multi_reduction <maximumf>, %97, %cst_46 [2] : vector<2x8x8xf32> to vector<2x8xf32>
    %99 = vector.shape_cast %98 : vector<2x8xf32> to vector<2x8x1xf32>
    %100 = vector.broadcast %99 : vector<2x8x1xf32> to vector<2x8x8xf32>
    %101 = arith.subf %97, %100 : vector<2x8x8xf32>
    %102 = math.exp %101 : vector<2x8x8xf32>
    %cst_47 = arith.constant dense<0.000000e+00> : vector<2x8xf32>
    %103 = vector.multi_reduction <add>, %102, %cst_47 [2] : vector<2x8x8xf32> to vector<2x8xf32>
    %104 = vector.shape_cast %103 : vector<2x8xf32> to vector<2x8x1xf32>
    %105 = tpu.reciprocal %104 {approx = true} : vector<2x8x1xf32> -> vector<2x8x1xf32>
    %106 = vector.broadcast %105 : vector<2x8x1xf32> to vector<2x8x8xf32>
    %107 = arith.mulf %102, %106 : vector<2x8x8xf32>
    %108 = arith.addf %90, %107 : vector<2x8x8xf32>
    %109 = arith.truncf %107 : vector<2x8x8xf32> to vector<2x8x8xbf16>
    %110 = vector.extract_strided_slice %39 {offsets = [0, 0, 24], sizes = [2, 8, 8], strides = [1, 1, 1]} : vector<2x8x32xbf16> to vector<2x8x8xbf16>
    "tpu.trace_start"() <{level = 10 : i32, message = "bqk,bkd->bqd"}> : () -> ()
    %cst_48 = arith.constant dense<0.000000e+00> : vector<2x8x8xf32>
    %111 = tpu.matmul %109, %110, %cst_48 {dimension_numbers = #tpu.dot_dimension_numbers<[2], [1], [1], [2], [0, 0, 0, 1, 1, 2], [0], [0]>} : vector<2x8x8xbf16>, vector<2x8x8xbf16>, vector<2x8x8xf32> -> vector<2x8x8xf32>
    "tpu.trace_stop"() : () -> ()
    %112 = vector.shape_cast %111 : vector<2x8x8xf32> to vector<16x8xf32>
    %113 = tpu.concatenate %58, %76, %94, %112 in 1 : vector<16x8xf32>, vector<16x8xf32>, vector<16x8xf32>, vector<16x8xf32> -> vector<16x32xf32>
    %114 = arith.truncf %113 : vector<16x32xf32> to vector<16x32xbf16>
    %cst_49 = arith.constant dense<0.000000e+00> : vector<16x32xf32>
    %115 = tpu.matmul %114, %19, %cst_49 {dimension_numbers = #tpu.dot_dimension_numbers<[1], [0], [0], [1], [0, 0, 1, 1], [], []>} : vector<16x32xbf16>, vector<32x32xbf16>, vector<16x32xf32> -> vector<16x32xf32>
    %116 = vector.broadcast %21 : vector<1x32xf32> to vector<16x32xf32>
    %117 = arith.addf %115, %116 : vector<16x32xf32>
    %cst_50 = arith.constant 2.500000e-01 : f32
    %118 = vector.broadcast %cst_50 : f32 to vector<2x8x8xf32>
    %119 = arith.mulf %108, %118 : vector<2x8x8xf32>
    %120 = arith.addf %3, %117 : vector<16x32xf32>
    %c0_51 = arith.constant 0 : index
    %c0_52 = arith.constant 0 : index
    %c0_53 = arith.constant 0 : index
    %121 = vector.load %arg27[%c0_51, %c0_52, %c0_53] : memref<1x1x32xf32, #tpu.memory_space<vmem>>, vector<1x1x32xf32>
    %122 = vector.shape_cast %121 : vector<1x1x32xf32> to vector<1x32xf32>
    %c0_54 = arith.constant 0 : index
    %c0_55 = arith.constant 0 : index
    %c0_56 = arith.constant 0 : index
    %123 = vector.load %arg28[%c0_54, %c0_55, %c0_56] : memref<1x1x32xf32, #tpu.memory_space<vmem>>, vector<1x1x32xf32>
    %124 = vector.shape_cast %123 : vector<1x1x32xf32> to vector<1x32xf32>
    %cst_57 = arith.constant dense<0.000000e+00> : vector<16xf32>
    %125 = vector.multi_reduction <add>, %120, %cst_57 [1] : vector<16x32xf32> to vector<16xf32>
    %126 = vector.shape_cast %125 : vector<16xf32> to vector<16x1xf32>
    %cst_58 = arith.constant 3.200000e+01 : f32
    %127 = vector.broadcast %cst_58 : f32 to vector<16x1xf32>
    %128 = arith.divf %126, %127 : vector<16x1xf32>
    %129 = vector.broadcast %128 : vector<16x1xf32> to vector<16x32xf32>
    %130 = arith.subf %120, %129 : vector<16x32xf32>
    %131 = arith.mulf %130, %130 : vector<16x32xf32>
    %cst_59 = arith.constant dense<0.000000e+00> : vector<16xf32>
    %132 = vector.multi_reduction <add>, %131, %cst_59 [1] : vector<16x32xf32> to vector<16xf32>
    %133 = vector.shape_cast %132 : vector<16xf32> to vector<16x1xf32>
    %cst_60 = arith.constant 3.200000e+01 : f32
    %134 = vector.broadcast %cst_60 : f32 to vector<16x1xf32>
    %135 = arith.divf %133, %134 : vector<16x1xf32>
    %cst_61 = arith.constant 9.99999974E-6 : f32
    %136 = vector.broadcast %cst_61 : f32 to vector<16x1xf32>
    %137 = arith.addf %135, %136 : vector<16x1xf32>
    %138 = math.rsqrt %137 : vector<16x1xf32>
    %139 = vector.broadcast %138 : vector<16x1xf32> to vector<16x32xf32>
    %140 = arith.mulf %130, %139 : vector<16x32xf32>
    %141 = vector.broadcast %122 : vector<1x32xf32> to vector<16x32xf32>
    %142 = arith.mulf %140, %141 : vector<16x32xf32>
    %143 = vector.broadcast %124 : vector<1x32xf32> to vector<16x32xf32>
    %144 = arith.addf %142, %143 : vector<16x32xf32>
    %c0_62 = arith.constant 0 : index
    %c0_63 = arith.constant 0 : index
    %145 = vector.load %arg5[%c0_62, %c0_63] : memref<32x32xf32, #tpu.memory_space<vmem>>, vector<32x32xf32>
    %c0_64 = arith.constant 0 : index
    %c0_65 = arith.constant 0 : index
    %146 = vector.load %arg6[%c0_64, %c0_65] : memref<32x32xf32, #tpu.memory_space<vmem>>, vector<32x32xf32>
    %c0_66 = arith.constant 0 : index
    %c0_67 = arith.constant 0 : index
    %c0_68 = arith.constant 0 : index
    %147 = vector.load %arg15[%c0_66, %c0_67, %c0_68] : memref<1x32x32xbf16, #tpu.memory_space<vmem>>, vector<1x32x32xbf16>
    %148 = vector.shape_cast %147 : vector<1x32x32xbf16> to vector<32x32xbf16>
    %c0_69 = arith.constant 0 : index
    %c0_70 = arith.constant 0 : index
    %c0_71 = arith.constant 0 : index
    %149 = vector.load %arg18[%c0_69, %c0_70, %c0_71] : memref<1x1x32xf32, #tpu.memory_space<vmem>>, vector<1x1x32xf32>
    %150 = vector.shape_cast %149 : vector<1x1x32xf32> to vector<1x32xf32>
    %c0_72 = arith.constant 0 : index
    %c0_73 = arith.constant 0 : index
    %c0_74 = arith.constant 0 : index
    %151 = vector.load %arg16[%c0_72, %c0_73, %c0_74] : memref<1x32x32xbf16, #tpu.memory_space<vmem>>, vector<1x32x32xbf16>
    %152 = vector.shape_cast %151 : vector<1x32x32xbf16> to vector<32x32xbf16>
    %c0_75 = arith.constant 0 : index
    %c0_76 = arith.constant 0 : index
    %c0_77 = arith.constant 0 : index
    %153 = vector.load %arg19[%c0_75, %c0_76, %c0_77] : memref<1x1x32xf32, #tpu.memory_space<vmem>>, vector<1x1x32xf32>
    %154 = vector.shape_cast %153 : vector<1x1x32xf32> to vector<1x32xf32>
    %c0_78 = arith.constant 0 : index
    %c0_79 = arith.constant 0 : index
    %c0_80 = arith.constant 0 : index
    %155 = vector.load %arg17[%c0_78, %c0_79, %c0_80] : memref<1x32x32xbf16, #tpu.memory_space<vmem>>, vector<1x32x32xbf16>
    %156 = vector.shape_cast %155 : vector<1x32x32xbf16> to vector<32x32xbf16>
    %c0_81 = arith.constant 0 : index
    %c0_82 = arith.constant 0 : index
    %c0_83 = arith.constant 0 : index
    %157 = vector.load %arg20[%c0_81, %c0_82, %c0_83] : memref<1x1x32xf32, #tpu.memory_space<vmem>>, vector<1x1x32xf32>
    %158 = vector.shape_cast %157 : vector<1x1x32xf32> to vector<1x32xf32>
    %c0_84 = arith.constant 0 : index
    %c0_85 = arith.constant 0 : index
    %c0_86 = arith.constant 0 : index
    %159 = vector.load %arg21[%c0_84, %c0_85, %c0_86] : memref<1x32x32xbf16, #tpu.memory_space<vmem>>, vector<1x32x32xbf16>
    %160 = vector.shape_cast %159 : vector<1x32x32xbf16> to vector<32x32xbf16>
    %c0_87 = arith.constant 0 : index
    %c0_88 = arith.constant 0 : index
    %c0_89 = arith.constant 0 : index
    %161 = vector.load %arg22[%c0_87, %c0_88, %c0_89] : memref<1x1x32xf32, #tpu.memory_space<vmem>>, vector<1x1x32xf32>
    %162 = vector.shape_cast %161 : vector<1x1x32xf32> to vector<1x32xf32>
    %163 = arith.truncf %144 : vector<16x32xf32> to vector<16x32xbf16>
    %cst_90 = arith.constant dense<0.000000e+00> : vector<16x32xf32>
    %164 = tpu.matmul %163, %148, %cst_90 {dimension_numbers = #tpu.dot_dimension_numbers<[1], [0], [0], [1], [0, 0, 1, 1], [], []>} : vector<16x32xbf16>, vector<32x32xbf16>, vector<16x32xf32> -> vector<16x32xf32>
    %165 = vector.broadcast %150 : vector<1x32xf32> to vector<16x32xf32>
    %166 = arith.addf %164, %165 : vector<16x32xf32>
    %167 = arith.truncf %145 : vector<32x32xf32> to vector<32x32xbf16>
    %cst_91 = arith.constant dense<0.000000e+00> : vector<32x32xf32>
    %168 = tpu.matmul %167, %152, %cst_91 {dimension_numbers = #tpu.dot_dimension_numbers<[1], [0], [0], [1], [0, 0, 1, 1], [], []>} : vector<32x32xbf16>, vector<32x32xbf16>, vector<32x32xf32> -> vector<32x32xf32>
    %169 = vector.broadcast %154 : vector<1x32xf32> to vector<32x32xf32>
    %170 = arith.addf %168, %169 : vector<32x32xf32>
    %171 = arith.truncf %146 : vector<32x32xf32> to vector<32x32xbf16>
    %cst_92 = arith.constant dense<0.000000e+00> : vector<32x32xf32>
    %172 = tpu.matmul %171, %156, %cst_92 {dimension_numbers = #tpu.dot_dimension_numbers<[1], [0], [0], [1], [0, 0, 1, 1], [], []>} : vector<32x32xbf16>, vector<32x32xbf16>, vector<32x32xf32> -> vector<32x32xf32>
    %173 = vector.broadcast %158 : vector<1x32xf32> to vector<32x32xf32>
    %174 = arith.addf %172, %173 : vector<32x32xf32>
    %175 = vector.shape_cast %166 : vector<16x32xf32> to vector<2x8x32xf32>
    %176 = arith.truncf %175 : vector<2x8x32xf32> to vector<2x8x32xbf16>
    %177 = vector.shape_cast %170 : vector<32x32xf32> to vector<2x16x32xf32>
    %178 = arith.truncf %177 : vector<2x16x32xf32> to vector<2x16x32xbf16>
    %179 = vector.shape_cast %174 : vector<32x32xf32> to vector<2x16x32xf32>
    %180 = arith.truncf %179 : vector<2x16x32xf32> to vector<2x16x32xbf16>
    %cst_93 = arith.constant 0.000000e+00 : f32
    %181 = vector.broadcast %cst_93 : f32 to vector<2x8x16xf32>
    %182 = vector.extract_strided_slice %176 {offsets = [0, 0, 0], sizes = [2, 8, 8], strides = [1, 1, 1]} : vector<2x8x32xbf16> to vector<2x8x8xbf16>
    %183 = vector.extract_strided_slice %178 {offsets = [0, 0, 0], sizes = [2, 16, 8], strides = [1, 1, 1]} : vector<2x16x32xbf16> to vector<2x16x8xbf16>
    "tpu.trace_start"() <{level = 10 : i32, message = "bqd,bkd->bqk"}> : () -> ()
    %cst_94 = arith.constant dense<0.000000e+00> : vector<2x8x16xf32>
    %184 = tpu.matmul %182, %183, %cst_94 {dimension_numbers = #tpu.dot_dimension_numbers<[2], [2], [1], [1], [0, 0, 0, 1, 1, 1], [0], [0]>} : vector<2x8x8xbf16>, vector<2x16x8xbf16>, vector<2x8x16xf32> -> vector<2x8x16xf32>
    "tpu.trace_stop"() : () -> ()
    %cst_95 = arith.constant dense<0xFF800000> : vector<2x8xf32>
    %185 = vector.multi_reduction <maximumf>, %184, %cst_95 [2] : vector<2x8x16xf32> to vector<2x8xf32>
    %186 = vector.shape_cast %185 : vector<2x8xf32> to vector<2x8x1xf32>
    %187 = vector.broadcast %186 : vector<2x8x1xf32> to vector<2x8x16xf32>
    %188 = arith.subf %184, %187 : vector<2x8x16xf32>
    %189 = math.exp %188 : vector<2x8x16xf32>
    %cst_96 = arith.constant dense<0.000000e+00> : vector<2x8xf32>
    %190 = vector.multi_reduction <add>, %189, %cst_96 [2] : vector<2x8x16xf32> to vector<2x8xf32>
    %191 = vector.shape_cast %190 : vector<2x8xf32> to vector<2x8x1xf32>
    %192 = tpu.reciprocal %191 {approx = true} : vector<2x8x1xf32> -> vector<2x8x1xf32>
    %193 = vector.broadcast %192 : vector<2x8x1xf32> to vector<2x8x16xf32>
    %194 = arith.mulf %189, %193 : vector<2x8x16xf32>
    %195 = arith.addf %181, %194 : vector<2x8x16xf32>
    %196 = arith.truncf %194 : vector<2x8x16xf32> to vector<2x8x16xbf16>
    %197 = vector.extract_strided_slice %180 {offsets = [0, 0, 0], sizes = [2, 16, 8], strides = [1, 1, 1]} : vector<2x16x32xbf16> to vector<2x16x8xbf16>
    "tpu.trace_start"() <{level = 10 : i32, message = "bqk,bkd->bqd"}> : () -> ()
    %cst_97 = arith.constant dense<0.000000e+00> : vector<2x8x8xf32>
    %198 = tpu.matmul %196, %197, %cst_97 {dimension_numbers = #tpu.dot_dimension_numbers<[2], [1], [1], [2], [0, 0, 0, 1, 1, 2], [0], [0]>} : vector<2x8x16xbf16>, vector<2x16x8xbf16>, vector<2x8x8xf32> -> vector<2x8x8xf32>
    "tpu.trace_stop"() : () -> ()
    %199 = vector.shape_cast %198 : vector<2x8x8xf32> to vector<16x8xf32>
    %200 = vector.extract_strided_slice %176 {offsets = [0, 0, 8], sizes = [2, 8, 8], strides = [1, 1, 1]} : vector<2x8x32xbf16> to vector<2x8x8xbf16>
    %201 = vector.extract_strided_slice %178 {offsets = [0, 0, 8], sizes = [2, 16, 8], strides = [1, 1, 1]} : vector<2x16x32xbf16> to vector<2x16x8xbf16>
    "tpu.trace_start"() <{level = 10 : i32, message = "bqd,bkd->bqk"}> : () -> ()
    %cst_98 = arith.constant dense<0.000000e+00> : vector<2x8x16xf32>
    %202 = tpu.matmul %200, %201, %cst_98 {dimension_numbers = #tpu.dot_dimension_numbers<[2], [2], [1], [1], [0, 0, 0, 1, 1, 1], [0], [0]>} : vector<2x8x8xbf16>, vector<2x16x8xbf16>, vector<2x8x16xf32> -> vector<2x8x16xf32>
    "tpu.trace_stop"() : () -> ()
    %cst_99 = arith.constant dense<0xFF800000> : vector<2x8xf32>
    %203 = vector.multi_reduction <maximumf>, %202, %cst_99 [2] : vector<2x8x16xf32> to vector<2x8xf32>
    %204 = vector.shape_cast %203 : vector<2x8xf32> to vector<2x8x1xf32>
    %205 = vector.broadcast %204 : vector<2x8x1xf32> to vector<2x8x16xf32>
    %206 = arith.subf %202, %205 : vector<2x8x16xf32>
    %207 = math.exp %206 : vector<2x8x16xf32>
    %cst_100 = arith.constant dense<0.000000e+00> : vector<2x8xf32>
    %208 = vector.multi_reduction <add>, %207, %cst_100 [2] : vector<2x8x16xf32> to vector<2x8xf32>
    %209 = vector.shape_cast %208 : vector<2x8xf32> to vector<2x8x1xf32>
    %210 = tpu.reciprocal %209 {approx = true} : vector<2x8x1xf32> -> vector<2x8x1xf32>
    %211 = vector.broadcast %210 : vector<2x8x1xf32> to vector<2x8x16xf32>
    %212 = arith.mulf %207, %211 : vector<2x8x16xf32>
    %213 = arith.addf %195, %212 : vector<2x8x16xf32>
    %214 = arith.truncf %212 : vector<2x8x16xf32> to vector<2x8x16xbf16>
    %215 = vector.extract_strided_slice %180 {offsets = [0, 0, 8], sizes = [2, 16, 8], strides = [1, 1, 1]} : vector<2x16x32xbf16> to vector<2x16x8xbf16>
    "tpu.trace_start"() <{level = 10 : i32, message = "bqk,bkd->bqd"}> : () -> ()
    %cst_101 = arith.constant dense<0.000000e+00> : vector<2x8x8xf32>
    %216 = tpu.matmul %214, %215, %cst_101 {dimension_numbers = #tpu.dot_dimension_numbers<[2], [1], [1], [2], [0, 0, 0, 1, 1, 2], [0], [0]>} : vector<2x8x16xbf16>, vector<2x16x8xbf16>, vector<2x8x8xf32> -> vector<2x8x8xf32>
    "tpu.trace_stop"() : () -> ()
    %217 = vector.shape_cast %216 : vector<2x8x8xf32> to vector<16x8xf32>
    %218 = vector.extract_strided_slice %176 {offsets = [0, 0, 16], sizes = [2, 8, 8], strides = [1, 1, 1]} : vector<2x8x32xbf16> to vector<2x8x8xbf16>
    %219 = vector.extract_strided_slice %178 {offsets = [0, 0, 16], sizes = [2, 16, 8], strides = [1, 1, 1]} : vector<2x16x32xbf16> to vector<2x16x8xbf16>
    "tpu.trace_start"() <{level = 10 : i32, message = "bqd,bkd->bqk"}> : () -> ()
    %cst_102 = arith.constant dense<0.000000e+00> : vector<2x8x16xf32>
    %220 = tpu.matmul %218, %219, %cst_102 {dimension_numbers = #tpu.dot_dimension_numbers<[2], [2], [1], [1], [0, 0, 0, 1, 1, 1], [0], [0]>} : vector<2x8x8xbf16>, vector<2x16x8xbf16>, vector<2x8x16xf32> -> vector<2x8x16xf32>
    "tpu.trace_stop"() : () -> ()
    %cst_103 = arith.constant dense<0xFF800000> : vector<2x8xf32>
    %221 = vector.multi_reduction <maximumf>, %220, %cst_103 [2] : vector<2x8x16xf32> to vector<2x8xf32>
    %222 = vector.shape_cast %221 : vector<2x8xf32> to vector<2x8x1xf32>
    %223 = vector.broadcast %222 : vector<2x8x1xf32> to vector<2x8x16xf32>
    %224 = arith.subf %220, %223 : vector<2x8x16xf32>
    %225 = math.exp %224 : vector<2x8x16xf32>
    %cst_104 = arith.constant dense<0.000000e+00> : vector<2x8xf32>
    %226 = vector.multi_reduction <add>, %225, %cst_104 [2] : vector<2x8x16xf32> to vector<2x8xf32>
    %227 = vector.shape_cast %226 : vector<2x8xf32> to vector<2x8x1xf32>
    %228 = tpu.reciprocal %227 {approx = true} : vector<2x8x1xf32> -> vector<2x8x1xf32>
    %229 = vector.broadcast %228 : vector<2x8x1xf32> to vector<2x8x16xf32>
    %230 = arith.mulf %225, %229 : vector<2x8x16xf32>
    %231 = arith.addf %213, %230 : vector<2x8x16xf32>
    %232 = arith.truncf %230 : vector<2x8x16xf32> to vector<2x8x16xbf16>
    %233 = vector.extract_strided_slice %180 {offsets = [0, 0, 16], sizes = [2, 16, 8], strides = [1, 1, 1]} : vector<2x16x32xbf16> to vector<2x16x8xbf16>
    "tpu.trace_start"() <{level = 10 : i32, message = "bqk,bkd->bqd"}> : () -> ()
    %cst_105 = arith.constant dense<0.000000e+00> : vector<2x8x8xf32>
    %234 = tpu.matmul %232, %233, %cst_105 {dimension_numbers = #tpu.dot_dimension_numbers<[2], [1], [1], [2], [0, 0, 0, 1, 1, 2], [0], [0]>} : vector<2x8x16xbf16>, vector<2x16x8xbf16>, vector<2x8x8xf32> -> vector<2x8x8xf32>
    "tpu.trace_stop"() : () -> ()
    %235 = vector.shape_cast %234 : vector<2x8x8xf32> to vector<16x8xf32>
    %236 = vector.extract_strided_slice %176 {offsets = [0, 0, 24], sizes = [2, 8, 8], strides = [1, 1, 1]} : vector<2x8x32xbf16> to vector<2x8x8xbf16>
    %237 = vector.extract_strided_slice %178 {offsets = [0, 0, 24], sizes = [2, 16, 8], strides = [1, 1, 1]} : vector<2x16x32xbf16> to vector<2x16x8xbf16>
    "tpu.trace_start"() <{level = 10 : i32, message = "bqd,bkd->bqk"}> : () -> ()
    %cst_106 = arith.constant dense<0.000000e+00> : vector<2x8x16xf32>
    %238 = tpu.matmul %236, %237, %cst_106 {dimension_numbers = #tpu.dot_dimension_numbers<[2], [2], [1], [1], [0, 0, 0, 1, 1, 1], [0], [0]>} : vector<2x8x8xbf16>, vector<2x16x8xbf16>, vector<2x8x16xf32> -> vector<2x8x16xf32>
    "tpu.trace_stop"() : () -> ()
    %cst_107 = arith.constant dense<0xFF800000> : vector<2x8xf32>
    %239 = vector.multi_reduction <maximumf>, %238, %cst_107 [2] : vector<2x8x16xf32> to vector<2x8xf32>
    %240 = vector.shape_cast %239 : vector<2x8xf32> to vector<2x8x1xf32>
    %241 = vector.broadcast %240 : vector<2x8x1xf32> to vector<2x8x16xf32>
    %242 = arith.subf %238, %241 : vector<2x8x16xf32>
    %243 = math.exp %242 : vector<2x8x16xf32>
    %cst_108 = arith.constant dense<0.000000e+00> : vector<2x8xf32>
    %244 = vector.multi_reduction <add>, %243, %cst_108 [2] : vector<2x8x16xf32> to vector<2x8xf32>
    %245 = vector.shape_cast %244 : vector<2x8xf32> to vector<2x8x1xf32>
    %246 = tpu.reciprocal %245 {approx = true} : vector<2x8x1xf32> -> vector<2x8x1xf32>
    %247 = vector.broadcast %246 : vector<2x8x1xf32> to vector<2x8x16xf32>
    %248 = arith.mulf %243, %247 : vector<2x8x16xf32>
    %249 = arith.addf %231, %248 : vector<2x8x16xf32>
    %250 = arith.truncf %248 : vector<2x8x16xf32> to vector<2x8x16xbf16>
    %251 = vector.extract_strided_slice %180 {offsets = [0, 0, 24], sizes = [2, 16, 8], strides = [1, 1, 1]} : vector<2x16x32xbf16> to vector<2x16x8xbf16>
    "tpu.trace_start"() <{level = 10 : i32, message = "bqk,bkd->bqd"}> : () -> ()
    %cst_109 = arith.constant dense<0.000000e+00> : vector<2x8x8xf32>
    %252 = tpu.matmul %250, %251, %cst_109 {dimension_numbers = #tpu.dot_dimension_numbers<[2], [1], [1], [2], [0, 0, 0, 1, 1, 2], [0], [0]>} : vector<2x8x16xbf16>, vector<2x16x8xbf16>, vector<2x8x8xf32> -> vector<2x8x8xf32>
    "tpu.trace_stop"() : () -> ()
    %253 = vector.shape_cast %252 : vector<2x8x8xf32> to vector<16x8xf32>
    %254 = tpu.concatenate %199, %217, %235, %253 in 1 : vector<16x8xf32>, vector<16x8xf32>, vector<16x8xf32>, vector<16x8xf32> -> vector<16x32xf32>
    %255 = arith.truncf %254 : vector<16x32xf32> to vector<16x32xbf16>
    %cst_110 = arith.constant dense<0.000000e+00> : vector<16x32xf32>
    %256 = tpu.matmul %255, %160, %cst_110 {dimension_numbers = #tpu.dot_dimension_numbers<[1], [0], [0], [1], [0, 0, 1, 1], [], []>} : vector<16x32xbf16>, vector<32x32xbf16>, vector<16x32xf32> -> vector<16x32xf32>
    %257 = vector.broadcast %162 : vector<1x32xf32> to vector<16x32xf32>
    %258 = arith.addf %256, %257 : vector<16x32xf32>
    %cst_111 = arith.constant 2.500000e-01 : f32
    %259 = vector.broadcast %cst_111 : f32 to vector<2x8x16xf32>
    %260 = arith.mulf %249, %259 : vector<2x8x16xf32>
    %261 = arith.addf %144, %258 : vector<16x32xf32>
    %c0_112 = arith.constant 0 : index
    %c0_113 = arith.constant 0 : index
    %c0_114 = arith.constant 0 : index
    %262 = vector.load %arg29[%c0_112, %c0_113, %c0_114] : memref<1x1x32xf32, #tpu.memory_space<vmem>>, vector<1x1x32xf32>
    %263 = vector.shape_cast %262 : vector<1x1x32xf32> to vector<1x32xf32>
    %c0_115 = arith.constant 0 : index
    %c0_116 = arith.constant 0 : index
    %c0_117 = arith.constant 0 : index
    %264 = vector.load %arg30[%c0_115, %c0_116, %c0_117] : memref<1x1x32xf32, #tpu.memory_space<vmem>>, vector<1x1x32xf32>
    %265 = vector.shape_cast %264 : vector<1x1x32xf32> to vector<1x32xf32>
    %cst_118 = arith.constant dense<0.000000e+00> : vector<16xf32>
    %266 = vector.multi_reduction <add>, %261, %cst_118 [1] : vector<16x32xf32> to vector<16xf32>
    %267 = vector.shape_cast %266 : vector<16xf32> to vector<16x1xf32>
    %cst_119 = arith.constant 3.200000e+01 : f32
    %268 = vector.broadcast %cst_119 : f32 to vector<16x1xf32>
    %269 = arith.divf %267, %268 : vector<16x1xf32>
    %270 = vector.broadcast %269 : vector<16x1xf32> to vector<16x32xf32>
    %271 = arith.subf %261, %270 : vector<16x32xf32>
    %272 = arith.mulf %271, %271 : vector<16x32xf32>
    %cst_120 = arith.constant dense<0.000000e+00> : vector<16xf32>
    %273 = vector.multi_reduction <add>, %272, %cst_120 [1] : vector<16x32xf32> to vector<16xf32>
    %274 = vector.shape_cast %273 : vector<16xf32> to vector<16x1xf32>
    %cst_121 = arith.constant 3.200000e+01 : f32
    %275 = vector.broadcast %cst_121 : f32 to vector<16x1xf32>
    %276 = arith.divf %274, %275 : vector<16x1xf32>
    %cst_122 = arith.constant 9.99999974E-6 : f32
    %277 = vector.broadcast %cst_122 : f32 to vector<16x1xf32>
    %278 = arith.addf %276, %277 : vector<16x1xf32>
    %279 = math.rsqrt %278 : vector<16x1xf32>
    %280 = vector.broadcast %279 : vector<16x1xf32> to vector<16x32xf32>
    %281 = arith.mulf %271, %280 : vector<16x32xf32>
    %282 = vector.broadcast %263 : vector<1x32xf32> to vector<16x32xf32>
    %283 = arith.mulf %281, %282 : vector<16x32xf32>
    %284 = vector.broadcast %265 : vector<1x32xf32> to vector<16x32xf32>
    %285 = arith.addf %283, %284 : vector<16x32xf32>
    %286 = arith.truncf %285 : vector<16x32xf32> to vector<16x32xbf16>
    %c0_123 = arith.constant 0 : index
    %c0_124 = arith.constant 0 : index
    %c0_125 = arith.constant 0 : index
    %287 = vector.load %arg23[%c0_123, %c0_124, %c0_125] : memref<1x32x64xbf16, #tpu.memory_space<vmem>>, vector<1x32x64xbf16>
    %288 = vector.shape_cast %287 : vector<1x32x64xbf16> to vector<32x64xbf16>
    %cst_126 = arith.constant dense<0.000000e+00> : vector<16x64xf32>
    %289 = tpu.matmul %286, %288, %cst_126 {dimension_numbers = #tpu.dot_dimension_numbers<[1], [0], [0], [1], [0, 0, 1, 1], [], []>} : vector<16x32xbf16>, vector<32x64xbf16>, vector<16x64xf32> -> vector<16x64xf32>
    %c0_127 = arith.constant 0 : index
    %c0_128 = arith.constant 0 : index
    %c0_129 = arith.constant 0 : index
    %290 = vector.load %arg24[%c0_127, %c0_128, %c0_129] : memref<1x1x64xf32, #tpu.memory_space<vmem>>, vector<1x1x64xf32>
    %291 = vector.shape_cast %290 : vector<1x1x64xf32> to vector<1x64xf32>
    %292 = vector.broadcast %291 : vector<1x64xf32> to vector<16x64xf32>
    %293 = arith.addf %289, %292 : vector<16x64xf32>
    %cst_130 = arith.constant 0.000000e+00 : f32
    %294 = vector.broadcast %cst_130 : f32 to vector<16x64xf32>
    %295 = arith.maximumf %293, %294 : vector<16x64xf32>
    %296 = arith.truncf %295 : vector<16x64xf32> to vector<16x64xbf16>
    %c0_131 = arith.constant 0 : index
    %c0_132 = arith.constant 0 : index
    %c0_133 = arith.constant 0 : index
    %297 = vector.load %arg25[%c0_131, %c0_132, %c0_133] : memref<1x64x32xbf16, #tpu.memory_space<vmem>>, vector<1x64x32xbf16>
    %298 = vector.shape_cast %297 : vector<1x64x32xbf16> to vector<64x32xbf16>
    %cst_134 = arith.constant dense<0.000000e+00> : vector<16x32xf32>
    %299 = tpu.matmul %296, %298, %cst_134 {dimension_numbers = #tpu.dot_dimension_numbers<[1], [0], [0], [1], [0, 0, 1, 1], [], []>} : vector<16x64xbf16>, vector<64x32xbf16>, vector<16x32xf32> -> vector<16x32xf32>
    %c0_135 = arith.constant 0 : index
    %c0_136 = arith.constant 0 : index
    %c0_137 = arith.constant 0 : index
    %300 = vector.load %arg26[%c0_135, %c0_136, %c0_137] : memref<1x1x32xf32, #tpu.memory_space<vmem>>, vector<1x1x32xf32>
    %301 = vector.shape_cast %300 : vector<1x1x32xf32> to vector<1x32xf32>
    %302 = vector.broadcast %301 : vector<1x32xf32> to vector<16x32xf32>
    %303 = arith.addf %299, %302 : vector<16x32xf32>
    %304 = arith.addf %285, %303 : vector<16x32xf32>
    %c0_138 = arith.constant 0 : index
    %c0_139 = arith.constant 0 : index
    %c0_140 = arith.constant 0 : index
    %305 = vector.load %arg31[%c0_138, %c0_139, %c0_140] : memref<1x1x32xf32, #tpu.memory_space<vmem>>, vector<1x1x32xf32>
    %306 = vector.shape_cast %305 : vector<1x1x32xf32> to vector<1x32xf32>
    %c0_141 = arith.constant 0 : index
    %c0_142 = arith.constant 0 : index
    %c0_143 = arith.constant 0 : index
    %307 = vector.load %arg32[%c0_141, %c0_142, %c0_143] : memref<1x1x32xf32, #tpu.memory_space<vmem>>, vector<1x1x32xf32>
    %308 = vector.shape_cast %307 : vector<1x1x32xf32> to vector<1x32xf32>
    %cst_144 = arith.constant dense<0.000000e+00> : vector<16xf32>
    %309 = vector.multi_reduction <add>, %304, %cst_144 [1] : vector<16x32xf32> to vector<16xf32>
    %310 = vector.shape_cast %309 : vector<16xf32> to vector<16x1xf32>
    %cst_145 = arith.constant 3.200000e+01 : f32
    %311 = vector.broadcast %cst_145 : f32 to vector<16x1xf32>
    %312 = arith.divf %310, %311 : vector<16x1xf32>
    %313 = vector.broadcast %312 : vector<16x1xf32> to vector<16x32xf32>
    %314 = arith.subf %304, %313 : vector<16x32xf32>
    %315 = arith.mulf %314, %314 : vector<16x32xf32>
    %cst_146 = arith.constant dense<0.000000e+00> : vector<16xf32>
    %316 = vector.multi_reduction <add>, %315, %cst_146 [1] : vector<16x32xf32> to vector<16xf32>
    %317 = vector.shape_cast %316 : vector<16xf32> to vector<16x1xf32>
    %cst_147 = arith.constant 3.200000e+01 : f32
    %318 = vector.broadcast %cst_147 : f32 to vector<16x1xf32>
    %319 = arith.divf %317, %318 : vector<16x1xf32>
    %cst_148 = arith.constant 9.99999974E-6 : f32
    %320 = vector.broadcast %cst_148 : f32 to vector<16x1xf32>
    %321 = arith.addf %319, %320 : vector<16x1xf32>
    %322 = math.rsqrt %321 : vector<16x1xf32>
    %323 = vector.broadcast %322 : vector<16x1xf32> to vector<16x32xf32>
    %324 = arith.mulf %314, %323 : vector<16x32xf32>
    %325 = vector.broadcast %306 : vector<1x32xf32> to vector<16x32xf32>
    %326 = arith.mulf %324, %325 : vector<16x32xf32>
    %327 = vector.broadcast %308 : vector<1x32xf32> to vector<16x32xf32>
    %328 = arith.addf %326, %327 : vector<16x32xf32>
    %329 = arith.truncf %119 : vector<2x8x8xf32> to vector<2x8x8xbf16>
    %c0_149 = arith.constant 0 : index
    %c0_150 = arith.constant 0 : index
    %c0_151 = arith.constant 0 : index
    %c0_152 = arith.constant 0 : index
    %330 = vector.load %arg34[%c0_149, %c0_150, %c0_151, %c0_152] : memref<1x2x8x8xbf16, #tpu.memory_space<vmem>>, vector<1x2x8x8xbf16>
    %331 = vector.shape_cast %330 : vector<1x2x8x8xbf16> to vector<2x8x8xbf16>
    %332 = vector.shape_cast %329 : vector<2x8x8xbf16> to vector<1x2x8x8xbf16>
    tpu.vector_store %arg34[%c0_149, %c0_150, %c0_151, %c0_152], %332 {strides = array<i32>} : memref<1x2x8x8xbf16, #tpu.memory_space<vmem>>, vector<1x2x8x8xbf16>,
    %333 = arith.truncf %260 : vector<2x8x16xf32> to vector<2x8x16xbf16>
    %c0_153 = arith.constant 0 : index
    %c0_154 = arith.constant 0 : index
    %c0_155 = arith.constant 0 : index
    %c0_156 = arith.constant 0 : index
    %334 = vector.load %arg35[%c0_153, %c0_154, %c0_155, %c0_156] : memref<1x2x8x16xbf16, #tpu.memory_space<vmem>>, vector<1x2x8x16xbf16>
    %335 = vector.shape_cast %334 : vector<1x2x8x16xbf16> to vector<2x8x16xbf16>
    %336 = vector.shape_cast %333 : vector<2x8x16xbf16> to vector<1x2x8x16xbf16>
    tpu.vector_store %arg35[%c0_153, %c0_154, %c0_155, %c0_156], %336 {strides = array<i32>} : memref<1x2x8x16xbf16, #tpu.memory_space<vmem>>, vector<1x2x8x16xbf16>,
    %c1_i32 = arith.constant 1 : i32
    %337 = arith.cmpi slt, %arg1, %c1_i32 : i32
    %338 = arith.extui %337 : i1 to i32
    %c0_i32_157 = arith.constant 0 : i32
    %339 = arith.cmpi ne, %338, %c0_i32_157 : i32
    scf.if %339 {
      %c0_160 = arith.constant 0 : index
      %c0_161 = arith.constant 0 : index
      %343 = vector.load %arg36[%c0_160, %c0_161] : memref<16x32xf32, #tpu.memory_space<vmem>>, vector<16x32xf32>
      tpu.vector_store %arg36[%c0_160, %c0_161], %328 {strides = array<i32>} : memref<16x32xf32, #tpu.memory_space<vmem>>, vector<16x32xf32>,
    } else {
    }
    %c1_i32_158 = arith.constant 1 : i32
    %340 = arith.cmpi eq, %arg1, %c1_i32_158 : i32
    %341 = arith.extui %340 : i1 to i32
    %c0_i32_159 = arith.constant 0 : i32
    %342 = arith.cmpi ne, %341, %c0_i32_159 : i32
    scf.if %342 {
      %c0_160 = arith.constant 0 : index
      %c0_161 = arith.constant 0 : index
      %343 = vector.load %arg33[%c0_160, %c0_161] : memref<16x32xf32, #tpu.memory_space<vmem>>, vector<16x32xf32>
      tpu.vector_store %arg33[%c0_160, %c0_161], %328 {strides = array<i32>} : memref<16x32xf32, #tpu.memory_space<vmem>>, vector<16x32xf32>,
    } else {
    }
    return
  }
  func.func @transform_0(%arg0: i32, %arg1: i32) -> (i32, i32) {
    %c0_i32 = arith.constant 0 : i32
    %c0_i32_0 = arith.constant 0 : i32
    return %arg0, %c0_i32 : i32, i32
  }
  func.func @transform_1(%arg0: i32, %arg1: i32) -> (i32, i32) {
    %c0_i32 = arith.constant 0 : i32
    %c0_i32_0 = arith.constant 0 : i32
    return %arg0, %c0_i32 : i32, i32
  }
  func.func @transform_2(%arg0: i32, %arg1: i32) -> (i32, i32) {
    %c0_i32 = arith.constant 0 : i32
    %c0_i32_0 = arith.constant 0 : i32
    return %arg0, %c0_i32 : i32, i32
  }
  func.func @transform_3(%arg0: i32, %arg1: i32) -> (i32, i32) {
    %c0_i32 = arith.constant 0 : i32
    %c0_i32_0 = arith.constant 0 : i32
    return %arg0, %c0_i32 : i32, i32
  }
  func.func @transform_4(%arg0: i32, %arg1: i32) -> (i32, i32) {
    %c0_i32 = arith.constant 0 : i32
    %c0_i32_0 = arith.constant 0 : i32
    return %arg0, %c0_i32 : i32, i32
  }
  func.func @transform_5(%arg0: i32, %arg1: i32) -> (i32, i32, i32) {
    %c0_i32 = arith.constant 0 : i32
    %c0_i32_0 = arith.constant 0 : i32
    %c0_i32_1 = arith.constant 0 : i32
    return %arg1, %c0_i32, %c0_i32_0 : i32, i32, i32
  }
  func.func @transform_6(%arg0: i32, %arg1: i32) -> (i32, i32, i32) {
    %c0_i32 = arith.constant 0 : i32
    %c0_i32_0 = arith.constant 0 : i32
    %c0_i32_1 = arith.constant 0 : i32
    return %arg1, %c0_i32, %c0_i32_0 : i32, i32, i32
  }
  func.func @transform_7(%arg0: i32, %arg1: i32) -> (i32, i32, i32) {
    %c0_i32 = arith.constant 0 : i32
    %c0_i32_0 = arith.constant 0 : i32
    %c0_i32_1 = arith.constant 0 : i32
    return %arg1, %c0_i32, %c0_i32_0 : i32, i32, i32
  }
  func.func @transform_8(%arg0: i32, %arg1: i32) -> (i32, i32, i32) {
    %c0_i32 = arith.constant 0 : i32
    %c0_i32_0 = arith.constant 0 : i32
    %c0_i32_1 = arith.constant 0 : i32
    return %arg1, %c0_i32, %c0_i32_0 : i32, i32, i32
  }
  func.func @transform_9(%arg0: i32, %arg1: i32) -> (i32, i32, i32) {
    %c0_i32 = arith.constant 0 : i32
    %c0_i32_0 = arith.constant 0 : i32
    %c0_i32_1 = arith.constant 0 : i32
    return %arg1, %c0_i32, %c0_i32_0 : i32, i32, i32
  }
  func.func @transform_10(%arg0: i32, %arg1: i32) -> (i32, i32, i32) {
    %c0_i32 = arith.constant 0 : i32
    %c0_i32_0 = arith.constant 0 : i32
    %c0_i32_1 = arith.constant 0 : i32
    return %arg1, %c0_i32, %c0_i32_0 : i32, i32, i32
  }
  func.func @transform_11(%arg0: i32, %arg1: i32) -> (i32, i32, i32) {
    %c0_i32 = arith.constant 0 : i32
    %c0_i32_0 = arith.constant 0 : i32
    %c0_i32_1 = arith.constant 0 : i32
    return %arg1, %c0_i32, %c0_i32_0 : i32, i32, i32
  }
  func.func @transform_12(%arg0: i32, %arg1: i32) -> (i32, i32, i32) {
    %c0_i32 = arith.constant 0 : i32
    %c0_i32_0 = arith.constant 0 : i32
    %c0_i32_1 = arith.constant 0 : i32
    return %arg1, %c0_i32, %c0_i32_0 : i32, i32, i32
  }
  func.func @transform_13(%arg0: i32, %arg1: i32) -> (i32, i32, i32) {
    %c0_i32 = arith.constant 0 : i32
    %c0_i32_0 = arith.constant 0 : i32
    %c0_i32_1 = arith.constant 0 : i32
    return %arg1, %c0_i32, %c0_i32_0 : i32, i32, i32
  }
  func.func @transform_14(%arg0: i32, %arg1: i32) -> (i32, i32, i32) {
    %c0_i32 = arith.constant 0 : i32
    %c0_i32_0 = arith.constant 0 : i32
    %c0_i32_1 = arith.constant 0 : i32
    return %arg1, %c0_i32, %c0_i32_0 : i32, i32, i32
  }
  func.func @transform_15(%arg0: i32, %arg1: i32) -> (i32, i32, i32) {
    %c0_i32 = arith.constant 0 : i32
    %c0_i32_0 = arith.constant 0 : i32
    %c0_i32_1 = arith.constant 0 : i32
    return %arg1, %c0_i32, %c0_i32_0 : i32, i32, i32
  }
  func.func @transform_16(%arg0: i32, %arg1: i32) -> (i32, i32, i32) {
    %c0_i32 = arith.constant 0 : i32
    %c0_i32_0 = arith.constant 0 : i32
    %c0_i32_1 = arith.constant 0 : i32
    return %arg1, %c0_i32, %c0_i32_0 : i32, i32, i32
  }
  func.func @transform_17(%arg0: i32, %arg1: i32) -> (i32, i32, i32) {
    %c0_i32 = arith.constant 0 : i32
    %c0_i32_0 = arith.constant 0 : i32
    %c0_i32_1 = arith.constant 0 : i32
    return %arg1, %c0_i32, %c0_i32_0 : i32, i32, i32
  }
  func.func @transform_18(%arg0: i32, %arg1: i32) -> (i32, i32, i32) {
    %c0_i32 = arith.constant 0 : i32
    %c0_i32_0 = arith.constant 0 : i32
    %c0_i32_1 = arith.constant 0 : i32
    return %arg1, %c0_i32, %c0_i32_0 : i32, i32, i32
  }
  func.func @transform_19(%arg0: i32, %arg1: i32) -> (i32, i32, i32) {
    %c0_i32 = arith.constant 0 : i32
    %c0_i32_0 = arith.constant 0 : i32
    %c0_i32_1 = arith.constant 0 : i32
    return %arg1, %c0_i32, %c0_i32_0 : i32, i32, i32
  }
  func.func @transform_20(%arg0: i32, %arg1: i32) -> (i32, i32, i32) {
    %c0_i32 = arith.constant 0 : i32
    %c0_i32_0 = arith.constant 0 : i32
    %c0_i32_1 = arith.constant 0 : i32
    return %arg1, %c0_i32, %c0_i32_0 : i32, i32, i32
  }
  func.func @transform_21(%arg0: i32, %arg1: i32) -> (i32, i32, i32) {
    %c0_i32 = arith.constant 0 : i32
    %c0_i32_0 = arith.constant 0 : i32
    %c0_i32_1 = arith.constant 0 : i32
    return %arg1, %c0_i32, %c0_i32_0 : i32, i32, i32
  }
  func.func @transform_22(%arg0: i32, %arg1: i32) -> (i32, i32, i32) {
    %c0_i32 = arith.constant 0 : i32
    %c0_i32_0 = arith.constant 0 : i32
    %c0_i32_1 = arith.constant 0 : i32
    return %arg1, %c0_i32, %c0_i32_0 : i32, i32, i32
  }
  func.func @transform_23(%arg0: i32, %arg1: i32) -> (i32, i32, i32) {
    %c0_i32 = arith.constant 0 : i32
    %c0_i32_0 = arith.constant 0 : i32
    %c0_i32_1 = arith.constant 0 : i32
    return %arg1, %c0_i32, %c0_i32_0 : i32, i32, i32
  }
  func.func @transform_24(%arg0: i32, %arg1: i32) -> (i32, i32, i32) {
    %c0_i32 = arith.constant 0 : i32
    %c0_i32_0 = arith.constant 0 : i32
    %c0_i32_1 = arith.constant 0 : i32
    return %arg1, %c0_i32, %c0_i32_0 : i32, i32, i32
  }
  func.func @transform_25(%arg0: i32, %arg1: i32) -> (i32, i32, i32) {
    %c0_i32 = arith.constant 0 : i32
    %c0_i32_0 = arith.constant 0 : i32
    %c0_i32_1 = arith.constant 0 : i32
    return %arg1, %c0_i32, %c0_i32_0 : i32, i32, i32
  }
  func.func @transform_26(%arg0: i32, %arg1: i32) -> (i32, i32, i32) {
    %c0_i32 = arith.constant 0 : i32
    %c0_i32_0 = arith.constant 0 : i32
    %c0_i32_1 = arith.constant 0 : i32
    return %arg1, %c0_i32, %c0_i32_0 : i32, i32, i32
  }
  func.func @transform_27(%arg0: i32, %arg1: i32) -> (i32, i32, i32) {
    %c0_i32 = arith.constant 0 : i32
    %c0_i32_0 = arith.constant 0 : i32
    %c0_i32_1 = arith.constant 0 : i32
    return %arg1, %c0_i32, %c0_i32_0 : i32, i32, i32
  }
  func.func @transform_28(%arg0: i32, %arg1: i32) -> (i32, i32, i32) {
    %c0_i32 = arith.constant 0 : i32
    %c0_i32_0 = arith.constant 0 : i32
    %c0_i32_1 = arith.constant 0 : i32
    return %arg1, %c0_i32, %c0_i32_0 : i32, i32, i32
  }
  func.func @transform_29(%arg0: i32, %arg1: i32) -> (i32, i32, i32) {
    %c0_i32 = arith.constant 0 : i32
    %c0_i32_0 = arith.constant 0 : i32
    %c0_i32_1 = arith.constant 0 : i32
    return %arg1, %c0_i32, %c0_i32_0 : i32, i32, i32
  }
  func.func @transform_30(%arg0: i32, %arg1: i32) -> (i32, i32, i32) {
    %c0_i32 = arith.constant 0 : i32
    %c0_i32_0 = arith.constant 0 : i32
    %c0_i32_1 = arith.constant 0 : i32
    return %arg1, %c0_i32, %c0_i32_0 : i32, i32, i32
  }
  func.func @transform_31(%arg0: i32, %arg1: i32) -> (i32, i32) {
    %c0_i32 = arith.constant 0 : i32
    %c0_i32_0 = arith.constant 0 : i32
    return %arg0, %c0_i32 : i32, i32
  }
  func.func @transform_32(%arg0: i32, %arg1: i32) -> (i32, i32, i32, i32) {
    %c0_i32 = arith.constant 0 : i32
    %c0_i32_0 = arith.constant 0 : i32
    %c0_i32_1 = arith.constant 0 : i32
    return %arg1, %arg0, %c0_i32, %c0_i32_0 : i32, i32, i32, i32
  }
  func.func @transform_33(%arg0: i32, %arg1: i32) -> (i32, i32, i32, i32) {
    %c0_i32 = arith.constant 0 : i32
    %c0_i32_0 = arith.constant 0 : i32
    %c0_i32_1 = arith.constant 0 : i32
    return %arg1, %arg0, %c0_i32, %c0_i32_0 : i32, i32, i32, i32
  }
}

</mosaic_0001>

<bundles_post_ra>
// kernel: tpu_custom_call.1
= control target key start
LH: loop header
LB: loop body
LE: loop exit
PB: predicated region body
PF: predicated region fallthrough
CT: control target
= control target key end

     0   :  { %s6476_s6 = smov 1   ;;  %s6477_s10 = smov 2   ;;  %s7945_s0 = inlined_call_operand.smem [shape: u32[34], index: -1, kind: input, shape index: {}] }
   0x1   :  { %s6542_s5 = sld [smem:[%s7945_s0]]   ;;  %s6478_s14 = smov 3  }
   0x2   :  { %s6547_s9 = sld [smem:[%s7945_s0 + %s6476_s6]]   ;;  %s6479_s18 = smov 4  }
   0x3   :  { %s6552_s13 = sld [smem:[%s7945_s0 + %s6477_s10]]   ;;  %s6480_s22 = smov 5  }
   0x4   :  { %s6557_s17 = sld [smem:[%s7945_s0 + %s6478_s14]]   ;;  %s6481_s26 = smov 6  }
   0x5   :  { %s6562_s21 = sld [smem:[%s7945_s0 + %s6479_s18]]   ;;  %s6482_s30 = smov 7  }
   0x6   :  { %s6567_s25 = sld [smem:[%s7945_s0 + %s6480_s22]]   ;;  %s6483_s4 = smov 8  }
   0x7   :  { %8006 = sst [smem:[#allocation29_spill]] %s6542_s5  ;;  %s6484_s10 = smov 9  }
   0x8   :  { %8007 = sst [smem:[#allocation30_spill]] %s6547_s9  ;;  %s6485_s15 = smov 10  }
   0x9   :  { %8008 = sst [smem:[#allocation31_spill]] %s6552_s13  ;;  %s6486_s20 = smov 11  }
   0xa   :  { %8009 = sst [smem:[#allocation32_spill]] %s6557_s17  ;;  %s6488_s1 = smov 13  }
   0xb   :  { %8010 = sst [smem:[#allocation33_spill]] %s6562_s21  ;;  %s6489_s7 = smov 14  }
   0xc   :  { %8011 = sst [smem:[#allocation34_spill]] %s6567_s25  ;;  %s6491_s22 = smov 16  }
   0xd   :  { %s6572_s29 = sld [smem:[%s7945_s0 + %s6481_s26]]   ;;  %s6487_s26 = smov 12  }
   0xe   :  { %s6577_s3 = sld [smem:[%s7945_s0 + %s6482_s30]]   ;;  %s6492_s28 = smov 17  }
   0xf   :  { %s6582_s8 = sld [smem:[%s7945_s0 + %s6483_s4]]  }
  0x10   :  { %s6587_s14 = sld [smem:[%s7945_s0 + %s6484_s10]]  }
  0x11   :  { %s6592_s19 = sld [smem:[%s7945_s0 + %s6485_s15]]   ;;  %s6490_s15 = smov 15  }
  0x12   :  { %s6597_s24 = sld [smem:[%s7945_s0 + %s6486_s20]]  }
  0x13   :  { %8012 = sst [smem:[#allocation35_spill]] %s6572_s29 }
  0x14   :  { %8013 = sst [smem:[#allocation36_spill]] %s6577_s3 }
  0x15   :  { %8014 = sst [smem:[#allocation37_spill]] %s6582_s8 }
  0x16   :  { %8015 = sst [smem:[#allocation38_spill]] %s6587_s14 }
  0x17   :  { %8016 = sst [smem:[#allocation39_spill]] %s6592_s19 }
  0x18   :  { %8017 = sst [smem:[#allocation40_spill]] %s6597_s24 }
  0x19   :  { %s6602_s30 = sld [smem:[%s7945_s0 + %s6487_s26]]  }
  0x1a   :  { %s6607_s6 = sld [smem:[%s7945_s0 + %s6488_s1]]  }
  0x1b   :  { %s6612_s12 = sld [smem:[%s7945_s0 + %s6489_s7]]   ;;  %s6493_s7 = smov 18  }
  0x1c   :  { %s6617_s20 = sld [smem:[%s7945_s0 + %s6490_s15]]   ;;  %s6494_s15 = smov 19  }
  0x1d   :  { %s6622_s27 = sld [smem:[%s7945_s0 + %s6491_s22]]   ;;  %s6495_s22 = smov 20  }
  0x1e   :  { %s6627_s4 = sld [smem:[%s7945_s0 + %s6492_s28]]   ;;  %s6496_s28 = smov 21  }
  0x1f   :  { %8018 = sst [smem:[#allocation41_spill]] %s6602_s30 }
  0x20   :  { %8019 = sst [smem:[#allocation42_spill]] %s6607_s6 }
  0x21   :  { %8020 = sst [smem:[#allocation43_spill]] %s6612_s12 }
  0x22   :  { %8021 = sst [smem:[#allocation44_spill]] %s6617_s20 }
  0x23   :  { %8022 = sst [smem:[#allocation45_spill]] %s6622_s27 }
  0x24   :  { %8023 = sst [smem:[#allocation46_spill]] %s6627_s4 }
  0x25   :  { %s6632_s6 = sld [smem:[%s7945_s0 + %s6493_s7]]   ;;  %s6497_s7 = smov 22  }
  0x26   :  { %s6637_s24 = sld [smem:[%s7945_s0 + %s6494_s15]]   ;;  %s6498_s15 = smov 23  }
  0x27   :  { %s6642_s3 = sld [smem:[%s7945_s0 + %s6495_s22]]   ;;  %s6499_s22 = smov 24  }
  0x28   :  { %s6647_s29 = sld [smem:[%s7945_s0 + %s6496_s28]]   ;;  %s6500_s28 = smov 25  }
  0x29   :  { %s6652_s25 = sld [smem:[%s7945_s0 + %s6497_s7]]   ;;  %s6501_s7 = smov 26  }
  0x2b   :  { %8024 = sst [smem:[#allocation47_spill]] %s6632_s6 }
  0x2c   :  { %8025 = sst [smem:[#allocation48_spill]] %s6637_s24 }
  0x2d   :  { %8026 = sst [smem:[#allocation49_spill]] %s6642_s3 }
  0x2e   :  { %8027 = sst [smem:[#allocation50_spill]] %s6647_s29 }
  0x2f   :  { %8028 = sst [smem:[#allocation51_spill]] %s6652_s25 }
  0x30   :  { %s6657_s24 = sld [smem:[%s7945_s0 + %s6498_s15]]   ;;  %s6502_s15 = smov 27  }
  0x31   :  { %s6662_s3 = sld [smem:[%s7945_s0 + %s6499_s22]]   ;;  %s6503_s22 = smov 28  }
  0x32   :  { %s6667_s6 = sld [smem:[%s7945_s0 + %s6500_s28]]   ;;  %s6504_s28 = smov 29  }
  0x33   :  { %s6672_s25 = sld [smem:[%s7945_s0 + %s6501_s7]]   ;;  %s6505_s7 = smov 30  }
  0x36   :  { %8029 = sst [smem:[#allocation52_spill]] %s6657_s24 }
  0x37   :  { %8030 = sst [smem:[#allocation53_spill]] %s6662_s3 }
  0x38   :  { %8031 = sst [smem:[#allocation54_spill]] %s6667_s6 }
  0x39   :  { %8032 = sst [smem:[#allocation55_spill]] %s6672_s25 }
  0x3a   :  { %s6677_s24 = sld [smem:[%s7945_s0 + %s6502_s15]]   ;;  %s6506_s15 = smov 31  }
  0x3b   :  { %s6682_s3 = sld [smem:[%s7945_s0 + %s6503_s22]]   ;;  %s6507_s22 = smov 32  }
  0x3c   :  { %s6687_s6 = sld [smem:[%s7945_s0 + %s6504_s28]]   ;;  %s6508_s28 = smov 33  }
  0x3d   :  { %s6692_s25 = sld [smem:[%s7945_s0 + %s6505_s7]]  }
  0x40   :  { %8033 = sst [smem:[#allocation56_spill]] %s6677_s24 }
  0x41   :  { %8034 = sst [smem:[#allocation57_spill]] %s6682_s3 }
  0x42   :  { %8035 = sst [smem:[#allocation58_spill]] %s6687_s6 }
  0x43   :  { %8036 = sst [smem:[#allocation59_spill]] %s6692_s25 }
  0x44   :  { %s6697_s24 = sld [smem:[%s7945_s0 + %s6506_s15]]  }
  0x45   :  { %s6702_s3 = sld [smem:[%s7945_s0 + %s6507_s22]]  }
  0x46   :  { %s6707_s6 = sld [smem:[%s7945_s0 + %s6508_s28]]  }
  0x4a   :  { %8037 = sst [smem:[#allocation60_spill]] %s6697_s24 }
  0x4b   :  { %8038 = sst [smem:[#allocation61_spill]] %s6702_s3 }
  0x4c   :  { %8039 = sst [smem:[#allocation62_spill]] %s6707_s6 }
  0x4d   :  { %73 = vsyncpa [#allocation4], 0 }
  0x4e   :  { %75 = vsyncpa [#allocation4 + $0x1], 0 }
  0x4f   :  { %76 = vsyncpa [#allocation7], 0 }
  0x50   :  { %78 = vsyncpa [#allocation7 + $0x1], 0 }
  0x51   :  { %79 = vsyncpa [#allocation10], 0 }
  0x52   :  { %81 = vsyncpa [#allocation10 + $0x1], 0 }
  0x53   :  { %82 = vsyncpa [#allocation13], 0 }
  0x54   :  { %84 = vsyncpa [#allocation13 + $0x1], 0 }
  0x55   :  { %85 = vsyncpa [#allocation16], 0 }
  0x56   :  { %87 = vsyncpa [#allocation16 + $0x1], 0 }
  0x57   :  { %88 = vsyncpa [#allocation5], 0 }
  0x58   :  { %90 = vsyncpa [#allocation5 + $0x1], 0 }
  0x59   :  { %91 = vsyncpa [#allocation20], 0 }
  0x5a   :  { %93 = vsyncpa [#allocation20 + $0x1], 0  ;;  %s6709_s7 = smov 0   ;;  %s6711_s10 = smov 0  }
  0x5b   :  { %s6713_s0 = smov 0   ;;  %s6715_s11 = smov 0  }
  0x5c   :  { %s6717_s15 = smov 0   ;;  %s6719_s16 = smov 0  }
  0x5d   :  { %s6721_s18 = smov 0   ;;  %s6723_s22 = smov 0  }
  0x5e   :  { %s6725_s23 = smov 0   ;;  %s6727_s26 = smov 0  }
  0x5f   :  { %s6729_s28 = smov 0   ;;  %s6731_s1 = smov 0  }
  0x60   :  { %s6733_s2 = smov 0   ;;  %s6735_s24 = smov 0  }
  0x61 LB: > { %s8040_s29 = sld [smem:[#allocation50_spill]]  ;;  %s8041_s27 = sld [smem:[#allocation45_spill]]  ;;  %s6454_s23 = sphi %s6725_s23, %s8197_s23   ;;  %s6450_s22 = sphi %s6723_s22, %s8196_s22   ;;  %s6446_s18 = sphi %s6721_s18, %s8195_s18   ;;  %s6442_s16 = sphi %s6719_s16, %s8194_s16   ;;  %s6438_s15 = sphi %s6717_s15, %s8193_s15   ;;  %s6434_s11 = sphi %s6715_s11, %s8203_s11   ;;  %s6430_s0 = sphi %s6713_s0, %s8191_s0   ;;  %s6426_s10 = sphi %s6711_s10, %s8190_s10   ;;  %s6422_s7 = sphi %s6709_s7, %s8189_s7   ;;  %s6474_s24 = sphi %s6735_s24, %s99_s24   ;;  %s6470_s2 = sphi %s6733_s2, %s8201_s2   ;;  %s6466_s1 = sphi %s6731_s1, %s8200_s1   ;;  %s6462_s28 = sphi %s6729_s28, %s8199_s28   ;;  %s6458_s26 = sphi %s6727_s26, %s8198_s26  }
  0x62   : > { %s8042_s19 = sld [smem:[#allocation39_spill]]  ;;  %s8043_s12 = sld [smem:[#allocation43_spill]] }
  0x63   : > { %s8044_s8 = sld [smem:[#allocation37_spill]]  ;;  %s8045_s4 = sld [smem:[#allocation46_spill]] }
  0x64   : > { %s8046_s20 = sld [smem:[#allocation44_spill]]  ;;  %s8047_s30 = sld [smem:[#allocation41_spill]] }
  0x65   : > { %s8048_s14 = sld [smem:[#allocation38_spill]]  ;;  %8049 = sst [smem:[#allocation63_spill]] %s6426_s10 }
  0x66   : > { %8050 = sst [smem:[#allocation64_spill]] %s6430_s0  ;;  %s6778_s6 = sadd.s32 4294967295, %s6474_s24  }
  0x67   : > { %8051 = sst [smem:[#allocation65_spill]] %s6434_s11  ;;  %s108_s25 = sadd.s32 1, %s6466_s1 }
  0x68   : > { %8052 = sst [smem:[#allocation66_spill]] %s6438_s15  ;;  %s111_s21 = sadd.s32 1, %s6470_s2 }
  0x69   : > { %8053 = sst [smem:[#allocation67_spill]] %s6442_s16  ;;  %p109_p0 = scmp.ge.s32.totalorder %s108_s25, 2 }
  0x6a   : > { %8054 = sst [smem:[#allocation68_spill]] %s6450_s22  ;;  %s326_s17 = sadd.s32 1, %s6454_s23 }
  0x6b   : > { %8055 = sst [smem:[#allocation69_spill]] %s6454_s23  ;;  %p333_p1 = scmp.ne.s32.totalorder %s6454_s23, %s6450_s22 }
  0x6c   : > { %8056 = sst [smem:[#allocation70_spill]] %s6458_s26  ;;  %p334_p2 = scmp.eq.s32.totalorder %s6474_s24, 0 }
  0x6d   : > { %8057 = sst [smem:[#allocation71_spill]] %s6462_s28  ;;  %s8205_s25 = smov (%p109_p0, %s108_s25), 0 }
  0x6e   : > { %8058 = sst [smem:[#allocation72_spill]] %s6466_s1  ;;  %s8207_s21 = smov (!%p109_p0, %s111_s21), %s6470_s2 }
  0x6f   : > { %8059 = sst [smem:[#allocation73_spill]] %s6470_s2  ;;  %s323_s13 = ssub.s32 %s6466_s1, %s8205_s25 }
  0x70   : > { %8060 = sst [smem:[#allocation74_spill]] %s6474_s24  ;;  %p6792_p3 = por %p334_p2, %p333_p1 }
  0x71   : > { %8061 = sst [smem:[#allocation75_spill]] %s8205_s25  ;;  %p113_p4 = scmp.ge.s32.totalorder %s8207_s21, 2 }
  0x72   : > { %p324_p5 = scmp.eq.s32.totalorder %s323_s13, 0  ;;  %p339_p6 = scmp.ne.s32.totalorder %s6450_s22, %s6446_s18 }
  0x73   : > { %p340_p7 = scmp.eq.s32.totalorder %s6778_s6, 0  ;;  %s8209_s21 = smov (%p113_p4, %s8207_s21), 0 }
  0x74   : > { %8063 = sst [smem:[#allocation76_spill]] %s8209_s21  ;;  %s921_s5 = ssub.s32 %s6470_s2, %s8209_s21 }
  0x75   : > { %s6801_s9 = scalar_select %p324_p5, %s6454_s23, %s326_s17  }
  0x76   : > { %p6803_p8 = por %p340_p7, %p339_p6  ;;  %p922_p9 = scmp.eq.s32.totalorder %s921_s5, 0 }
  0x77   : > { %8064 = sst [smem:[#allocation77_spill]] %s6801_s9  ;;  %s924_s18 = sadd.s32 1, %s6442_s16 }
  0x78   : > { %s8065_s25 = scalar_select %p6803_p8, 1, 0 }
  0x79   : > { %p934_p10 = scmp.ne.s32.totalorder %s6442_s16, %s6438_s15  ;;  %p935_p11 = scmp.eq.s32.totalorder %s6778_s6, 3 }
  0x7a   : > { %s6814_s26 = scalar_select %p922_p9, %s6442_s16, %s924_s18  }
  0x7b   : > { %p6816_p12 = por %p935_p11, %p934_p10  ;;  %p940_p13 = scmp.ne.s32.totalorder %s6438_s15, %s6434_s11 }
  0x7c   : > { %8066 = sst [smem:[#allocation78_spill]] %s6814_s26  ;;  %s8069_s9 = sadd.s32 4294967294, %s6474_s24  }
  0x7d   : > { %s8067_s17 = scalar_select %p6816_p12, 1, 0 }
  0x7e   : > { %p941_p0 = scmp.eq.s32.totalorder %s8069_s9, 3  ;;  %s949_s21 = sor.u32 %s921_s5, %s323_s13 }
  0x7f   : > { %8068 = sst [smem:[#allocation79_spill]] %s8067_s17  ;;  %p950_p1 = scmp.eq.s32.totalorder %s949_s21, 0 }
  0x80   : > { %s952_s2 = sadd.s32 1, %s6430_s0  ;;  %p6825_p2 = por %p941_p0, %p940_p13 }
  0x81   : > { %p962_p4 = scmp.ne.s32.totalorder %s6430_s0, %s6426_s10  ;;  %p968_p6 = scmp.ne.s32.totalorder %s6426_s10, %s6422_s7 }
  0x82   : > { %s8070_s28 = scalar_select %p6825_p2, 1, 0 }
  0x83   : > { %s6832_s18 = scalar_select %p950_p1, %s6430_s0, %s952_s2  }
  0x84   : > { %8071 = sst [smem:[#allocation80_spill]] %s8070_s28  ;;  %p6834_p5 = por %p962_p4, %p935_p11 }
  0x85   : > { %8072 = sst [smem:[#allocation81_spill]] %s6832_s18  ;;  %p5694_p7 = scmp.lt.s32.totalorder %s6474_s24, 4 }
  0x86   : > { %s8073_s26 = scalar_select %p6834_p5, 1, 0 }
  0x87   : > { %p6841_p9 = por %p968_p6, %p941_p0  ;;  %s6846_s5 = sand.u32 1, %s6454_s23  }
  0x88   : > { %8074 = sst [smem:[#allocation82_spill]] %s8073_s26  ;;  %s6849_s9 = sshll.u32 %s6466_s1, 4 }
  0x89   : > { %s8075_s16 = scalar_select %p6841_p9, 1, 0 }
  0x8a   : > { %p6853_p10 = pnand %p5694_p7, %p6792_p3  ;;  %s6858_s21 = sand.u32 1, %s6474_s24  }
  0x8b   : > { %8076 = sst [smem:[#allocation83_spill]] %s8075_s16  ;;  %s6862_s7 = scalar_lea.hbm %s8048_s14, %s6849_s9 }
  0x8c   : > { %s8077_s13 = scalar_select %p6853_p10, 1, 0 }
  0x8d   : > { %s1106_s2 = scalar_lea.vmem [#allocation6], %s6846_s5  ;;  %s5982_s18 = scalar_lea.hbm %s6862_s7, 16 }
  0x8e   : > { %s1113_s23 = sshll.u32 %s1106_s2, 4  ;;  %p5983_p3 = scmp.ne.s32.totalorder %s6862_s7, %s5982_s18  ;;  %s6865_s23 = int_to_ptr.vmem [resolvable:$true] %s1113_s23 }
  0x8f   : > { %p6873_p13 = pneg %p6853_p10  ;;  %s5987_s16 = scalar_lea.hbm %s8048_s14, 32 }
  0x90   : > { %p5988_p4 = scmp.lt.u32.totalorder %s6862_s7, %s8048_s14  ;;  %p5989_p6 = scmp.lt.u32.totalorder %s5987_s16, %s5982_s18 }
  0x91   : > { %p5985_p0 = pnand %p6873_p13, %p5983_p3  ;;  %p5991_p9 = scmp.lt.u32.totalorder %s5982_s18, %s6862_s7 }
  0x92   : > { %p5990_p7 = por %p5989_p6, %p5988_p4 }
  0x93   : > { %p5986_p1 = pneg %p5985_p0 }
  0x94   : > { %p5992_p2 = por %p5991_p9, %p5990_p7 }
  0x96   : > { %p5993_p12 = pnand %p5992_p2, %p5986_p1 }
  0x98   : > { %5996 = shalt.err (!%p5993_p12)
}
  0x99   : > { %s5997_s2 = scalar_lea.vmem %s6865_s23, 16  ;;  %s6509_s3 = smov [#allocation6]  }
  0x9a   : > { %p5998_p11 = scmp.ne.s32.totalorder %s6865_s23, %s5997_s2  ;;  %s6002_s28 = sshll.u32 %s6509_s3, 4  ;;  %s6003_s28 = int_to_ptr.vmem [resolvable:$false] %s6002_s28 }
  0x9b   : > { %s6004_s11 = scalar_lea.vmem %s6003_s28, 32  ;;  %p6005_p3 = scmp.lt.s32.totalorder %s6865_s23, %s6003_s28 }
  0x9c   : > { %p6000_p5 = pnand %p5998_p11, %p6873_p13  ;;  %p6006_p0 = scmp.lt.s32.totalorder %s6004_s11, %s5997_s2 }
  0x9e   : > { %p6001_p8 = pneg %p6000_p5  ;;  %p6007_p4 = por %p6006_p0, %p6005_p3 }
  0xa0   : > { %p6008_p6 = pnand %p6007_p4, %p6001_p8 }
  0xa2   : > { %6011 = shalt.err (!%p6008_p6)
}
  0xa3   : > { %s8079_s16 = scalar_lea.sflag [#allocation7], %s6858_s21  ;;  %p1341_p12 = scmp.lt.s32.totalorder %s6474_s24, 5 }
  0xa4   : > { %5662 = dma.hbm_to_vmem [thread:$0]  (!%p6853_p10), %s6862_s7, 16, %s6865_s23, %s8079_s16  }
  0xa5   : > { %s6897_s11 = scalar_lea.hbm %s8047_s30, %s6849_s9  ;;  %p8080_p8 = scmp.ge.s32.totalorder %s6474_s24, 1 }
  0xa6   : > { %s1148_s18 = scalar_lea.vmem [#allocation9], %s6846_s5  ;;  %s6909_s2 = sshll.u32 %s6846_s5, 4 }
  0xa7   : > { %p6901_p2 = pnand %p8080_p8, %p1341_p12  ;;  %s1155_s3 = sshll.u32 %s1148_s18, 4  ;;  %s6906_s3 = int_to_ptr.vmem [resolvable:$true] %s1155_s3 }
  0xa8   : > { %s6012_s23 = scalar_lea.hbm %s6897_s11, 16  ;;  %s6017_s7 = scalar_lea.hbm %s8047_s30, 32 }
  0xa9   : > { %s8081_s28 = scalar_select %p6901_p2, 1, 0 }
  0xaa   : > { %p6013_p5 = scmp.ne.s32.totalorder %s6897_s11, %s6012_s23  ;;  %p6018_p1 = scmp.lt.u32.totalorder %s6897_s11, %s8047_s30 }
  0xab   : > { %p6019_p7 = scmp.lt.u32.totalorder %s6017_s7, %s6012_s23  ;;  %p6021_p0 = scmp.lt.u32.totalorder %s6012_s23, %s6897_s11 }
  0xac   : > { %p6015_p9 = pnand %p6013_p5, %p6873_p13 }
  0xad   : > { %p6020_p3 = por %p6019_p7, %p6018_p1 }
  0xae   : > { %p6016_p11 = pneg %p6015_p9 }
  0xaf   : > { %p6022_p4 = por %p6021_p0, %p6020_p3 }
  0xb1   : > { %p6023_p6 = pnand %p6022_p4, %p6016_p11 }
  0xb3   : > { %6026 = shalt.err (!%p6023_p6)
}
  0xb4   : > { %s6027_s16 = scalar_lea.vmem %s6906_s3, 16  ;;  %s6510_s18 = smov [#allocation9]  }
  0xb5   : > { %p6028_p12 = scmp.ne.s32.totalorder %s6906_s3, %s6027_s16  ;;  %s6032_s14 = sshll.u32 %s6510_s18, 4  ;;  %s6033_s14 = int_to_ptr.vmem [resolvable:$false] %s6032_s14 }
  0xb6   : > { %s6034_s24 = scalar_lea.vmem %s6033_s14, 32  ;;  %p6035_p5 = scmp.lt.s32.totalorder %s6906_s3, %s6033_s14 }
  0xb7   : > { %p6030_p8 = pnand %p6028_p12, %p6873_p13  ;;  %p6036_p9 = scmp.lt.s32.totalorder %s6034_s24, %s6027_s16 }
  0xb9   : > { %p6031_p2 = pneg %p6030_p8  ;;  %p6037_p1 = por %p6036_p9, %p6035_p5 }
  0xbb   : > { %p6038_p7 = pnand %p6037_p1, %p6031_p2 }
  0xbd   : > { %6041 = shalt.err (!%p6038_p7)
}
  0xbe   : > { %s8082_s23 = scalar_lea.sflag [#allocation10], %s6858_s21  ;;  %s6932_s7 = sshll.u32 %s6466_s1, 8 }
  0xbf   : > { %5668 = dma.hbm_to_vmem [thread:$0]  (!%p6853_p10), %s6897_s11, 16, %s6906_s3, %s8082_s23  }
  0xc0   : > { %s6936_s14 = scalar_lea.hbm %s8046_s20, %s6932_s7  ;;  %s1195_s24 = scalar_lea.vmem [#allocation12], %s6909_s2 }
  0xc1   : > { %s1202_s16 = sshll.u32 %s1195_s24, 4  ;;  %s6042_s30 = scalar_lea.hbm %s6936_s14, 256  ;;  %s6939_s16 = int_to_ptr.vmem [resolvable:$true] %s1202_s16 }
  0xc2   : > { %p6043_p2 = scmp.ne.s32.totalorder %s6936_s14, %s6042_s30  ;;  %s6047_s11 = scalar_lea.hbm %s8046_s20, 512 }
  0xc3   : > { %p6048_p0 = scmp.lt.u32.totalorder %s6936_s14, %s8046_s20  ;;  %p6049_p4 = scmp.lt.u32.totalorder %s6047_s11, %s6042_s30 }
  0xc4   : > { %p6045_p11 = pnand %p6043_p2, %p6873_p13  ;;  %p6051_p12 = scmp.lt.u32.totalorder %s6042_s30, %s6936_s14 }
  0xc5   : > { %p6050_p6 = por %p6049_p4, %p6048_p0 }
  0xc6   : > { %p6046_p3 = pneg %p6045_p11 }
  0xc7   : > { %p6052_p8 = por %p6051_p12, %p6050_p6 }
  0xc9   : > { %p6053_p5 = pnand %p6052_p8, %p6046_p3 }
  0xcb   : > { %6056 = shalt.err (!%p6053_p5)
}
  0xcc   : > { %s6057_s3 = scalar_lea.vmem %s6939_s16, 256  ;;  %s6511_s23 = smov [#allocation12]  }
  0xcd   : > { %p6058_p9 = scmp.ne.s32.totalorder %s6939_s16, %s6057_s3  ;;  %s6062_s24 = sshll.u32 %s6511_s23, 4  ;;  %s6063_s24 = int_to_ptr.vmem [resolvable:$false] %s6062_s24 }
  0xce   : > { %s6064_s18 = scalar_lea.vmem %s6063_s24, 512  ;;  %p6065_p2 = scmp.lt.s32.totalorder %s6939_s16, %s6063_s24 }
  0xcf   : > { %p6060_p1 = pnand %p6058_p9, %p6873_p13  ;;  %p6066_p11 = scmp.lt.s32.totalorder %s6064_s18, %s6057_s3 }
  0xd1   : > { %p6061_p7 = pneg %p6060_p1  ;;  %p6067_p0 = por %p6066_p11, %p6065_p2 }
  0xd3   : > { %p6068_p4 = pnand %p6067_p0, %p6061_p7 }
  0xd5   : > { %6071 = shalt.err (!%p6068_p4)
}
  0xd6   : > { %s7973_s30 = smov 64   ;;  %s6513_s11 = smov 4  }
  0xd7   : > { %s8083_s18 = scalar_lea.sflag [#allocation13], %s6858_s21  ;;  %s6966_s3 = scalar_lea.hbm %s8045_s4, %s6849_s9 }
  0xd8   : > { %5674 = dma.hbm_to_vmem [thread:$0]  (!%p6853_p10), %s6936_s14, 256, %s6939_s16, %s8083_s18, %s7973_s30, %s7973_s30, %s6513_s11  }
  0xd9   : > { %s1232_s23 = scalar_lea.vmem [#allocation15], %s6846_s5  ;;  %s7975_s20 = scalar_lea.sflag [#allocation16], %s6858_s21 }
  0xda   : > { %s1239_s24 = sshll.u32 %s1232_s23, 4  ;;  %s6072_s1 = scalar_lea.hbm %s6966_s3, 16  ;;  %s1240_s24 = int_to_ptr.vmem [resolvable:$true] %s1239_s24 }
  0xdb   : > { %p6073_p3 = scmp.ne.s32.totalorder %s6966_s3, %s6072_s1  ;;  %s6077_s17 = scalar_lea.hbm %s8045_s4, 32 }
  0xdc   : > { %p6078_p8 = scmp.lt.u32.totalorder %s6966_s3, %s8045_s4  ;;  %p6079_p5 = scmp.lt.u32.totalorder %s6077_s17, %s6072_s1 }
  0xdd   : > { %p6075_p6 = pnand %p6073_p3, %p6873_p13  ;;  %p6081_p1 = scmp.lt.u32.totalorder %s6072_s1, %s6966_s3 }
  0xde   : > { %p6080_p9 = por %p6079_p5, %p6078_p8 }
  0xdf   : > { %p6076_p12 = pneg %p6075_p6 }
  0xe0   : > { %p6082_p7 = por %p6081_p1, %p6080_p9 }
  0xe2   : > { %p6083_p2 = pnand %p6082_p7, %p6076_p12 }
  0xe4   : > { %6086 = shalt.err (!%p6083_p2)
}
  0xe5   : > { %s6087_s14 = scalar_lea.vmem %s1240_s24, 16  ;;  %s6514_s16 = smov [#allocation15]  }
  0xe6   : > { %p6088_p11 = scmp.ne.s32.totalorder %s1240_s24, %s6087_s14  ;;  %s6092_s18 = sshll.u32 %s6514_s16, 4  ;;  %s6093_s18 = int_to_ptr.vmem [resolvable:$false] %s6092_s18 }
  0xe7   : > { %s6094_s23 = scalar_lea.vmem %s6093_s18, 32  ;;  %p6095_p3 = scmp.lt.s32.totalorder %s1240_s24, %s6093_s18 }
  0xe8   : > { %p6090_p0 = pnand %p6088_p11, %p6873_p13  ;;  %p6096_p6 = scmp.lt.s32.totalorder %s6094_s23, %s6087_s14 }
  0xea   : > { %p6091_p4 = pneg %p6090_p0  ;;  %p6097_p10 = por %p6096_p6, %p6095_p3 }
  0xec   : > { %p6098_p5 = pnand %p6097_p10, %p6091_p4 }
  0xee   : > { %6101 = shalt.err (!%p6098_p5)
}
  0xef   : > { %p8084_p8 = scmp.ne.s32.totalorder %s8077_s13, 0  ;;  %s6987_s1 = scalar_lea.hbm %s8044_s8, %s6849_s9 }
  0xf0   : > { %s1089_s17 = scalar_lea.vmem [#allocation3], %s6846_s5  ;;  %s6994_s16 = scalar_lea.hbm %s8042_s19, %s6849_s9 }
  0xf1   : > { %5680 = dma.hbm_to_vmem [thread:$0]  (!%p8084_p8), %s6966_s3, 16, %s1240_s24, %s7975_s20  }
  0xf2   : > { %s1096_s14 = sshll.u32 %s1089_s17, 4  ;;  %s1087_s18 = scalar_lea.sflag [#allocation4], %s6846_s5  ;;  %s6990_s14 = int_to_ptr.vmem [resolvable:$true] %s1096_s14 }
  0xf3   : > { %s6102_s23 = scalar_lea.hbm %s6987_s1, 16  ;;  %s6107_s30 = scalar_lea.hbm %s8044_s8, 32 }
  0xf4   : > { %p6103_p10 = scmp.ne.s32.totalorder %s6987_s1, %s6102_s23  ;;  %p6108_p1 = scmp.lt.u32.totalorder %s6987_s1, %s8044_s8 }
  0xf5   : > { %p6109_p7 = scmp.lt.u32.totalorder %s6107_s30, %s6102_s23  ;;  %p6111_p11 = scmp.lt.u32.totalorder %s6102_s23, %s6987_s1 }
  0xf6   : > { %p6105_p12 = pnand %p6103_p10, %p6873_p13 }
  0xf7   : > { %p6110_p2 = por %p6109_p7, %p6108_p1 }
  0xf8   : > { %p6106_p9 = pneg %p6105_p12 }
  0xf9   : > { %p6112_p0 = por %p6111_p11, %p6110_p2 }
  0xfb   : > { %p6113_p4 = pnand %p6112_p0, %p6106_p9 }
  0xfd   : > { %6116 = shalt.err (!%p6113_p4)
}
  0xfe   : > { %s6117_s3 = scalar_lea.vmem %s6990_s14, 16  ;;  %s6515_s24 = smov [#allocation3]  }
  0xff   : > { %p6118_p3 = scmp.ne.s32.totalorder %s6990_s14, %s6117_s3  ;;  %s6122_s17 = sshll.u32 %s6515_s24, 4  ;;  %s6123_s17 = int_to_ptr.vmem [resolvable:$false] %s6122_s17 }
 0x100   : > { %s6124_s20 = scalar_lea.vmem %s6123_s17, 32  ;;  %p6125_p10 = scmp.lt.s32.totalorder %s6990_s14, %s6123_s17 }
 0x101   : > { %p6120_p6 = pnand %p6118_p3, %p6873_p13  ;;  %p6126_p12 = scmp.lt.s32.totalorder %s6124_s20, %s6117_s3 }
 0x103   : > { %p6121_p5 = pneg %p6120_p6  ;;  %p6127_p1 = por %p6126_p12, %p6125_p10 }
 0x105   : > { %p6128_p7 = pnand %p6127_p1, %p6121_p5 }
 0x107   : > { %6131 = shalt.err (!%p6128_p7)
}
 0x108   : > { %5659 = dma.hbm_to_vmem [thread:$0]  (!%p8084_p8), %s6987_s1, 16, %s6990_s14, %s1087_s18  }
 0x109   : > { %s1123_s30 = scalar_lea.vmem [#allocation8], %s6846_s5  ;;  %s7017_s23 = scalar_lea.hbm %s8043_s12, %s6932_s7 }
 0x10a   : > { %s1130_s20 = sshll.u32 %s1123_s30, 4  ;;  %s6132_s3 = scalar_lea.hbm %s6994_s16, 16  ;;  %s1131_s20 = int_to_ptr.vmem [resolvable:$true] %s1130_s20 }
 0x10b   : > { %p6133_p9 = scmp.ne.s32.totalorder %s6994_s16, %s6132_s3  ;;  %s6137_s24 = scalar_lea.hbm %s8042_s19, 32 }
 0x10c   : > { %p6138_p0 = scmp.lt.u32.totalorder %s6994_s16, %s8042_s19  ;;  %p6139_p4 = scmp.lt.u32.totalorder %s6137_s24, %s6132_s3 }
 0x10d   : > { %p6135_p2 = pnand %p6133_p9, %p6873_p13  ;;  %p6141_p6 = scmp.lt.u32.totalorder %s6132_s3, %s6994_s16 }
 0x10e   : > { %p6140_p3 = por %p6139_p4, %p6138_p0 }
 0x10f   : > { %p6136_p11 = pneg %p6135_p2 }
 0x110   : > { %p6142_p5 = por %p6141_p6, %p6140_p3 }
 0x112   : > { %p6143_p10 = pnand %p6142_p5, %p6136_p11 }
 0x114   : > { %6146 = shalt.err (!%p6143_p10)
}
 0x115   : > { %s6147_s17 = scalar_lea.vmem %s1131_s20, 16  ;;  %s6516_s1 = smov [#allocation8]  }
 0x116   : > { %p6148_p12 = scmp.ne.s32.totalorder %s1131_s20, %s6147_s17  ;;  %s6152_s14 = sshll.u32 %s6516_s1, 4  ;;  %s6153_s14 = int_to_ptr.vmem [resolvable:$false] %s6152_s14 }
 0x117   : > { %s6154_s18 = scalar_lea.vmem %s6153_s14, 32  ;;  %p6155_p9 = scmp.lt.s32.totalorder %s1131_s20, %s6153_s14 }
 0x118   : > { %p6150_p1 = pnand %p6148_p12, %p6873_p13  ;;  %p6156_p2 = scmp.lt.s32.totalorder %s6154_s18, %s6147_s17 }
 0x11a   : > { %p6151_p7 = pneg %p6150_p1  ;;  %p6157_p8 = por %p6156_p2, %p6155_p9 }
 0x11c   : > { %p6158_p0 = pnand %p6157_p8, %p6151_p7 }
 0x11e   : > { %6161 = shalt.err (!%p6158_p0)
}
 0x11f   : > { %p8085_p4 = scmp.ne.s32.totalorder %s8077_s13, 0  ;;  %s8086_s30 = scalar_lea.sflag [#allocation7], %s6858_s21 }
 0x120   : > { %s1174_s3 = scalar_lea.vmem [#allocation11], %s6909_s2  ;;  %s7039_s17 = scalar_lea.hbm %s8041_s27, %s6849_s9 }
 0x121   : > { %5665 = dma.hbm_to_vmem [thread:$0]  (!%p8085_p4), %s6994_s16, 16, %s1131_s20, %s8086_s30  }
 0x122   : > { %s1181_s24 = sshll.u32 %s1174_s3, 4  ;;  %s6162_s1 = scalar_lea.hbm %s7017_s23, 256  ;;  %s7035_s24 = int_to_ptr.vmem [resolvable:$true] %s1181_s24 }
 0x123   : > { %p6163_p8 = scmp.ne.s32.totalorder %s7017_s23, %s6162_s1  ;;  %s6167_s14 = scalar_lea.hbm %s8043_s12, 512 }
 0x124   : > { %p6168_p6 = scmp.lt.u32.totalorder %s7017_s23, %s8043_s12  ;;  %p6169_p5 = scmp.lt.u32.totalorder %s6167_s14, %s6162_s1 }
 0x125   : > { %p6165_p11 = pnand %p6163_p8, %p6873_p13  ;;  %p6171_p12 = scmp.lt.u32.totalorder %s6162_s1, %s7017_s23 }
 0x126   : > { %p6170_p10 = por %p6169_p5, %p6168_p6 }
 0x127   : > { %p6166_p3 = pneg %p6165_p11 }
 0x128   : > { %p6172_p1 = por %p6171_p12, %p6170_p10 }
 0x12a   : > { %p6173_p7 = pnand %p6172_p1, %p6166_p3 }
 0x12c   : > { %6176 = shalt.err (!%p6173_p7)
}
 0x12d   : > { %s6177_s16 = scalar_lea.vmem %s7035_s24, 256  ;;  %s6517_s9 = smov [#allocation11]  }
 0x12e   : > { %p6178_p9 = scmp.ne.s32.totalorder %s7035_s24, %s6177_s16  ;;  %s6182_s20 = sshll.u32 %s6517_s9, 4  ;;  %s6183_s20 = int_to_ptr.vmem [resolvable:$false] %s6182_s20 }
 0x12f   : > { %s6184_s18 = scalar_lea.vmem %s6183_s20, 512  ;;  %p6185_p8 = scmp.lt.s32.totalorder %s7035_s24, %s6183_s20 }
 0x130   : > { %p6180_p2 = pnand %p6178_p9, %p6873_p13  ;;  %p6186_p11 = scmp.lt.s32.totalorder %s6184_s18, %s6177_s16 }
 0x132   : > { %p6181_p0 = pneg %p6180_p2  ;;  %p6187_p6 = por %p6186_p11, %p6185_p8 }
 0x134   : > { %p6188_p5 = pnand %p6187_p6, %p6181_p0 }
 0x136   : > { %6191 = shalt.err (!%p6188_p5)
}
 0x137   : > { %s8087_s30 = smov 64   ;;  %s8088_s3 = scalar_lea.sflag [#allocation10], %s6858_s21 }
 0x138   : > { %5671 = dma.hbm_to_vmem [thread:$0]  (!%p8085_p4), %s7017_s23, 256, %s7035_s24, %s8088_s3, %s8087_s30, %s8087_s30, %s6513_s11  }
 0x139   : > { %s1215_s1 = scalar_lea.vmem [#allocation14], %s6846_s5  ;;  %s7066_s16 = scalar_lea.hbm %s8040_s29, %s6932_s7 }
 0x13a   : > { %s1222_s14 = sshll.u32 %s1215_s1, 4  ;;  %s6192_s9 = scalar_lea.hbm %s7039_s17, 16  ;;  %s1223_s14 = int_to_ptr.vmem [resolvable:$true] %s1222_s14 }
 0x13b   : > { %p6193_p3 = scmp.ne.s32.totalorder %s7039_s17, %s6192_s9  ;;  %s6197_s20 = scalar_lea.hbm %s8041_s27, 32 }
 0x13c   : > { %p6198_p1 = scmp.lt.u32.totalorder %s7039_s17, %s8041_s27  ;;  %p6199_p7 = scmp.lt.u32.totalorder %s6197_s20, %s6192_s9 }
 0x13d   : > { %p6195_p10 = pnand %p6193_p3, %p6873_p13  ;;  %p6201_p2 = scmp.lt.u32.totalorder %s6192_s9, %s7039_s17 }
 0x13e   : > { %p6200_p9 = por %p6199_p7, %p6198_p1 }
 0x13f   : > { %p6196_p12 = pneg %p6195_p10 }
 0x140   : > { %p6202_p0 = por %p6201_p2, %p6200_p9 }
 0x142   : > { %p6203_p8 = pnand %p6202_p0, %p6196_p12 }
 0x144   : > { %6206 = shalt.err (!%p6203_p8)
}
 0x145   : > { %s6207_s18 = scalar_lea.vmem %s1223_s14, 16  ;;  %s6518_s5 = smov [#allocation14]  }
 0x146   : > { %p6208_p11 = scmp.ne.s32.totalorder %s1223_s14, %s6207_s18  ;;  %s6212_s7 = sshll.u32 %s6518_s5, 4  ;;  %s6213_s7 = int_to_ptr.vmem [resolvable:$false] %s6212_s7 }
 0x147   : > { %s6214_s23 = scalar_lea.vmem %s6213_s7, 32  ;;  %p6215_p3 = scmp.lt.s32.totalorder %s1223_s14, %s6213_s7 }
 0x148   : > { %p6210_p6 = pnand %p6208_p11, %p6873_p13  ;;  %p6216_p10 = scmp.lt.s32.totalorder %s6214_s23, %s6207_s18 }
 0x14a   : > { %p6211_p5 = pneg %p6210_p6  ;;  %p6217_p4 = por %p6216_p10, %p6215_p3 }
 0x14c   : > { %p6218_p1 = pnand %p6217_p4, %p6211_p5 }
 0x14e   : > { %6221 = shalt.err (!%p6218_p1)
}
 0x14f   : > { %p8089_p7 = scmp.ne.s32.totalorder %s8077_s13, 0  ;;  %s8090_s24 = scalar_lea.sflag [#allocation13], %s6858_s21 }
 0x150   : > { %s1270_s3 = scalar_lea.vmem [#allocation17], %s6909_s2  ;;  %s6222_s9 = scalar_lea.hbm %s7066_s16, 256 }
 0x151   : > { %5677 = dma.hbm_to_vmem [thread:$0]  (!%p8089_p7), %s7039_s17, 16, %s1223_s14, %s8090_s24  }
 0x152   : > { %s1277_s1 = sshll.u32 %s1270_s3, 4  ;;  %p6223_p4 = scmp.ne.s32.totalorder %s7066_s16, %s6222_s9  ;;  %s7084_s1 = int_to_ptr.vmem [resolvable:$true] %s1277_s1 }
 0x153   : > { %s6227_s20 = scalar_lea.hbm %s8040_s29, 512  ;;  %p6228_p2 = scmp.lt.u32.totalorder %s7066_s16, %s8040_s29 }
 0x154   : > { %p6225_p12 = pnand %p6223_p4, %p6873_p13  ;;  %p6229_p0 = scmp.lt.u32.totalorder %s6227_s20, %s6222_s9 }
 0x155   : > { %p6231_p11 = scmp.lt.u32.totalorder %s6222_s9, %s7066_s16 }
 0x156   : > { %p6226_p9 = pneg %p6225_p12  ;;  %p6230_p8 = por %p6229_p0, %p6228_p2 }
 0x158   : > { %p6232_p6 = por %p6231_p11, %p6230_p8 }
 0x15a   : > { %p6233_p5 = pnand %p6232_p6, %p6226_p9 }
 0x15c   : > { %6236 = shalt.err (!%p6233_p5)
}
 0x15d   : > { %s6237_s2 = scalar_lea.vmem %s7084_s1, 256  ;;  %s6519_s17 = smov [#allocation17]  }
 0x15e   : > { %p6238_p3 = scmp.ne.s32.totalorder %s7084_s1, %s6237_s2  ;;  %s6242_s14 = sshll.u32 %s6519_s17, 4  ;;  %s6243_s14 = int_to_ptr.vmem [resolvable:$false] %s6242_s14 }
 0x15f   : > { %s6244_s18 = scalar_lea.vmem %s6243_s14, 512  ;;  %p6245_p4 = scmp.lt.s32.totalorder %s7084_s1, %s6243_s14 }
 0x160   : > { %p6240_p10 = pnand %p6238_p3, %p6873_p13  ;;  %p6246_p12 = scmp.lt.s32.totalorder %s6244_s18, %s6237_s2 }
 0x162   : > { %p6241_p1 = pneg %p6240_p10  ;;  %p6247_p2 = por %p6246_p12, %p6245_p4 }
 0x164   : > { %p6248_p0 = pnand %p6247_p2, %p6241_p1 }
 0x166   : > { %6251 = shalt.err (!%p6248_p0)
}
 0x167   : > { %s8091_s5 = scalar_lea.sflag [#allocation16], %s6858_s21  ;;  %p8092_p13 = scmp.ne.s32.totalorder %s8081_s28, 0 }
 0x168   : > { %5683 = dma.hbm_to_vmem [thread:$0]  (!%p8089_p7), %s7066_s16, 256, %s7084_s1, %s8091_s5, %s8087_s30, %s8087_s30, %s6513_s11  }
 0x169   : > { %1345 = sbr.rel (%p8092_p13) target bundleno = 7757 (0x1e4d), region = 144 }
 0x170   : > { %s7111_s0 = sand.u32 1, %s6450_s22   ;;  %p8094_p9 = scmp.ne.s32.totalorder %s8065_s25, 0 }
 0x171   : > { %8093 = sst [smem:[#allocation84_spill]] %s7111_s0  ;;  %s1348_s7 = scalar_lea.sflag [#allocation4], %s7111_s0 }
 0x172   : > { %6393 = dma.done.wait (%p8094_p9), %s1348_s7, 16  }
 0x173   : > { %6395 = vsyncadd (%p8094_p9), %s1348_s7, 4294967280  ;;  %s7120_s13 = sand.u32 1, %s6778_s6  }
 0x174   : > { %8095 = sst [smem:[#allocation85_spill]] %s7120_s13  ;;  %s1356_s21 = scalar_lea.sflag [#allocation7], %s7120_s13 }
 0x175   : > { %6397 = dma.done.wait (%p8094_p9), %s1356_s21, 32  }
 0x176   : > { %6399 = vsyncadd (%p8094_p9), %s1356_s21, 4294967264  ;;  %s1372_s30 = scalar_lea.sflag [#allocation10], %s7120_s13 }
 0x177   : > { %6401 = dma.done.wait (%p8094_p9), %s1372_s30, 272  }
 0x178   : > { %6403 = vsyncadd (%p8094_p9), %s1372_s30, 4294967024  ;;  %s7136_s6 = sshll.u32 %s7111_s0, 4  ;;  %s1389_s3 = scalar_lea.sflag [#allocation13], %s7120_s13 }
 0x179   : > { %6405 = dma.done.wait (%p8094_p9), %s1389_s3, 272  }
 0x17a   : > { %6407 = vsyncadd (%p8094_p9), %s1389_s3, 4294967024  ;;  %s1406_s20 = scalar_lea.sflag [#allocation16], %s7120_s13 }
 0x17b   : > { %6409 = dma.done.wait (%p8094_p9), %s1406_s20, 272  }
 0x17c   : > { %6411 = vsyncadd (%p8094_p9), %s1406_s20, 4294967024  ;;  %s8096_s17 = sld [smem:[#allocation71_spill]]  ;;  %s8097_s14 = sld [smem:[#allocation70_spill]] }
 0x17d   : > { %s8098_s18 = sld [smem:[#allocation29_spill]]  ;;  %s8099_s5 = sld [smem:[#allocation30_spill]] }
 0x17e   : > { %s8100_s7 = sld [smem:[#allocation31_spill]]  ;;  %s7979_s21 = sand.u32 1, %s6438_s15  }
 0x17f   : > { %s8101_s30 = sld [smem:[#allocation32_spill]]  ;;  %s7155_s3 = sshll.u32 %s7979_s21, 4 }
 0x180   : > { %s8102_s9 = sld [smem:[#allocation33_spill]]  ;;  %s1624_s2 = sand.u32 1, %s6426_s10  }
 0x181   : > { %s7158_s1 = sshll.u32 %s1624_s2, 3  ;;  %s8105_s16 = sld [smem:[#allocation34_spill]] }
 0x182   : > { %s7161_s25 = sshll.u32 %s8096_s17, 1  ;;  %s5131_s24 = sshll.u32 %s8096_s17, 2 }
 0x183   : > { %8103 = sst [smem:[#allocation86_spill]] %s7161_s25  ;;  %p1635_p7 = scmp.lt.s32.totalorder %s7161_s25, 3 }
 0x184   : > { %s8106_s11 = sld [smem:[#allocation35_spill]]  ;;  %p1653_p8 = scmp.lt.s32.totalorder %s5131_s24, 7 }
 0x185   : > { %s8107_s23 = sld [smem:[#allocation36_spill]]  ;;  %s8108_s4 = sld [smem:[#allocation40_spill]] }
 0x186   : > { %s1636_s28 = scalar_select %p1635_p7, %s7161_s25, 3 }
 0x187   : > { %s8211_s24 = smov (!%p1653_p8, %s5131_s24), 7  ;;  %s8109_s21 = sld [smem:[#allocation42_spill]] }
 0x188   : > { %s5126_s8 = sshll.u32 %s1636_s28, 3  ;;  %s8110_s12 = sld [smem:[#allocation48_spill]] }
 0x189   : > { %p1664_p11 = scmp.lt.s32.totalorder %s8097_s14, 1  ;;  %s8111_s2 = sld [smem:[#allocation49_spill]] }
 0x18a   : > { %s7168_s19 = scalar_lea.vmem %s8098_s18, %s5126_s8  ;;  %s8113_s27 = sld [smem:[#allocation51_spill]] }
 0x18b   : > { %8112 = sst [smem:[#allocation87_spill]] %s7168_s19  ;;  %s7171_s29 = scalar_lea.vmem %s8099_s5, %s5126_s8 }
 0x18c   : > { %8114 = sst [smem:[#allocation88_spill]] %s7171_s29  ;;  %s7174_s22 = scalar_lea.vmem %s8100_s7, %s5126_s8 }
 0x18d   : > { %8115 = sst [smem:[#allocation89_spill]] %s7174_s22  ;;  %s8116_s17 = sld [smem:[#allocation53_spill]] }
 0x18e   : > { %s5132_s10 = sshll.u32 %s8211_s24, 3  ;;  %s8117_s15 = sld [smem:[#allocation52_spill]] }
 0x18f   : > { %s7177_s26 = scalar_lea.vmem %s8101_s30, %s5132_s10  ;;  %s8119_s13 = sld [smem:[#allocation54_spill]] }
 0x190   : > { %8118 = sst [smem:[#allocation90_spill]] %s7177_s26  ;;  %s7180_s25 = scalar_lea.vmem %s8102_s9, %s5132_s10 }
 0x191   : > { %8120 = sst [smem:[#allocation91_spill]] %s7180_s25  ;;  %s8121_s0 = sld [smem:[#allocation55_spill]] }
 0x192   : > { %s7183_s28 = scalar_select %p1664_p11, %s8097_s14, 1 }
 0x193   : > { %s8122_s8 = sld [smem:[#allocation56_spill]]  ;;  %s8123_s18 = sld [smem:[#allocation57_spill]] }
 0x194   : > { %s5250_s24 = sshll.u32 %s7183_s28, 4  ;;  %s8124_s10 = sld [smem:[#allocation58_spill]] }
 0x195   : > { %s7189_s9 = scalar_lea.vmem %s8105_s16, %s5250_s24  ;;  %s8126_s7 = sld [smem:[#allocation59_spill]] }
 0x196   : > { %8125 = sst [smem:[#allocation92_spill]] %s7189_s9  ;;  %s7192_s30 = scalar_lea.vmem %s8106_s11, %s5250_s24 }
 0x197   : > { %8127 = sst [smem:[#allocation93_spill]] %s7192_s30  ;;  %s7195_s25 = scalar_lea.vmem %s8107_s23, %s5250_s24 }
 0x198   : > { %8128 = sst [smem:[#allocation94_spill]] %s7195_s25  ;;  %s7198_s26 = scalar_lea.vmem %s8108_s4, %s5250_s24 }
 0x199   : > { %8129 = sst [smem:[#allocation95_spill]] %s7198_s26  ;;  %s7201_s22 = scalar_lea.vmem %s8109_s21, %s5250_s24 }
 0x19a   : > { %8130 = sst [smem:[#allocation96_spill]] %s7201_s22  ;;  %s7204_s29 = scalar_lea.vmem %s8110_s12, %s5250_s24 }
 0x19b   : > { %s1699_s20 = scalar_lea.vmem %s8111_s2, %s7183_s28  ;;  %s1702_s5 = scalar_lea.vmem %s8113_s27, %s7183_s28 }
 0x19c   : > { %s5256_s16 = sshll.u32 %s7183_s28, 5  ;;  %s1710_s9 = scalar_lea.vmem %s8116_s17, %s7183_s28 }
 0x19d   : > { %s7214_s19 = scalar_lea.vmem %s8117_s15, %s5256_s16  ;;  %s1713_s11 = scalar_lea.vmem %s8119_s13, %s7183_s28 }
 0x19e   : > { %s1716_s30 = scalar_lea.vmem %s8121_s0, %s7183_s28  ;;  %s1719_s14 = scalar_lea.vmem %s8122_s8, %s7183_s28 }
 0x19f   : > { %s1722_s23 = scalar_lea.vmem %s8123_s18, %s7183_s28  ;;  %s1725_s25 = scalar_lea.vmem %s8124_s10, %s7183_s28 }
 0x1a0   : > { %s1728_s4 = scalar_lea.vmem %s8126_s7, %s7183_s28  ;;  %s1417_s26 = scalar_lea.vmem [#allocation17], %s7136_s6 }
 0x1a1   : > { %s7230_s21 = scalar_lea.vmem [#allocation18], %s7155_s3  ;;  %s7233_s22 = scalar_lea.vmem [#allocation19], %s7158_s1 }
 0x1a2   : > { %s7236_s12 = scalar_lea.vmem [#allocation21], %s7158_s1  ;;  %s8131_s24 = sld [smem:[#allocation70_spill]] }
 0x1a8   : > { %p5149_p6 = scmp.ne.s32.totalorder %s8131_s24, 0 }
 0x1a9   : > { %s8132_s27 = sld [smem:[#allocation87_spill]] (!%p5149_p6)  ;;  %vm1739_vm0 = vcmask (!%p5149_p6), 261120  }
 0x1aa   : > { %1736 = sbr.rel (%p5149_p6) target bundleno = 433 (0x1b1), region = 184 }
 0x1af   : > { %v1737_v0 = vld [vmem:[%s8132_s27] sm:$0xff] (!%p5149_p6)  ;;  %v1738_v1 = vld [vmem:[%s8132_s27 + $0x8] sm:$0xff] (!%p5149_p6) }
 0x1b0   : > { %1740 = vst.msk [vmem:[#allocation2] sm:$0xff] (!%p5149_p6), %vm1739_vm0, %v1737_v0  ;;  %1741 = vst.msk [vmem:[#allocation2 + $0x8] sm:$0xff] (!%p5149_p6), %vm1739_vm0, %v1738_v1 }
 0x1b1 PF: > { %s8133_s15 = sld [smem:[#allocation93_spill]]  ;;  %s8134_s0 = sld [smem:[#allocation92_spill]]  ;;  %v6520_v3 = vmov 0.0   ;;  %vm6521_vm1 = vmmov 0   ;;  %vm1787_vm2 = vcmask 261120   ;;  %vm1964_vm3 = vcmask 64512  }
 0x1b2   : > { %s8135_s13 = sld [smem:[#allocation88_spill]]  ;;  %5364 = vmatprep.subr.bf16.mxu1 %v6520_v3  ;;  %5356 = vmatprep.subr.bf16.mxu0 %v6520_v3  ;;  %s8136_s1 = sld [smem:[#allocation94_spill]]  ;;  %vm2086_vm4 = vcmask 1043456   ;;  %vm4447_vm5 = vcmask 60416   ;;  %vm2874_vm6 = vcmask 130048   ;;  %vm2877_vm7 = vcmask 195584  }
 0x1b3   : > { %5368 = vmatprep.mubr.msk.bf16.mxu1 %vm6521_vm1, %v6520_v3  ;;  %5360 = vmatprep.mubr.msk.bf16.mxu0 %vm6521_vm1, %v6520_v3  ;;  %s8137_s3 = sld [smem:[#allocation89_spill]]  ;;  %s8138_s2 = sld [smem:[#allocation84_spill]]  ;;  %vm4452_vm8 = vcmask 125952   ;;  %vm4354_vm9 = vcmask 523264  }
 0x1b4   : > { %s6522_s18 = smov 120   ;;  %s6523_s7 = smov 112  }
 0x1b5   : > { %s6524_s16 = smov 104   ;;  %s6525_s24 = smov 8  }
 0x1b6   : > { %s6526_s27 = smov 16  }
 0x1b7   : > { %v5884_v2 = vld [vmem:[%s8133_s15] sm:$0xff]   ;;  %v5885_v4 = vld [vmem:[%s8133_s15 + $0x8] sm:$0xff]   ;;  %s8142_s15 = sld [smem:[#allocation95_spill]] }
 0x1b8   : > { %5365 = vmatpush3.bf16.msra.mxu1 %v5884_v2  ;;  %v5886_v5 = vld [vmem:[%s8134_s0] sm:$0xff]   ;;  %v1745_v7 = vld [vmem:[%s8135_s13 + $0x8] sm:$0xff] }
 0x1b9   : > { %5366 = vmatprep.subr.bf16.mxu1 %v6520_v3  ;;  %v1744_v6 = vld [vmem:[%s8135_s13] sm:$0xff]  ;;  %5357 = vmatpush3.bf16.msra.mxu0 %v5886_v5  ;;  %v5887_v8 = vld [vmem:[%s8134_s0 + $0x8] sm:$0xff]   ;;  %s8139_s17 = scalar_lea.vmem [#allocation6], %s8138_s2  ;;  %s8140_s8 = scalar_lea.vmem [#allocation3], %s8138_s2 }
 0x1ba   : > { %v7254_v9 = vld [vmem:[#allocation2] sm:$0xff]  ;;  %v1832_v10 = vpack.c.bf16 %v1745_v7, %v1744_v6  ;;  %5358 = vmatprep.subr.bf16.mxu0 %v6520_v3  ;;  %v7257_v11 = vld [vmem:[#allocation2 + $0x8] sm:$0xff]  ;;  %s8141_s10 = scalar_lea.vmem [#allocation8], %s8138_s2  ;;  %s6527_s0 = smov 24  }
 0x1bb   : > { %v1768_v12 = vpack.c.bf16 %v7257_v11, %v7254_v9  ;;  %v5888_v13 = vld [vmem:[%s8136_s1] sm:$0xff]   ;;  %v5889_v14 = vld [vmem:[%s8136_s1 + $0x8] sm:$0xff]   ;;  %s8143_s13 = scalar_lea.vmem [#allocation9], %s8138_s2  ;;  %s8144_s1 = sld [smem:[#allocation90_spill]] }
 0x1bc   : > { %5367 = vmatpush3.bf16.msra.mxu1 %v5885_v4  ;;  %v1746_v15 = vld [vmem:[%s8137_s3] sm:$0xff]  ;;  %v1747_v16 = vld [vmem:[%s8137_s3 + $0x8] sm:$0xff]  ;;  %s8145_s3 = scalar_lea.vmem [#allocation11], %s7136_s6 }
 0x1bd   : > { %5380 = vmatprep.subr.bf16.mxu1 %v6520_v3  ;;  %5359 = vmatpush3.bf16.msra.mxu0 %v5887_v8  ;;  %v1895_v17 = vpack.c.bf16 %v1747_v16, %v1746_v15  ;;  %v5154_v18 = vld [vmem:[%s8139_s17] ss:$0 sm:$0xff]  ;;  %s8146_s17 = sld [smem:[#allocation96_spill]] }
 0x1be   : > { %5372 = vmatprep.subr.bf16.mxu0 %v6520_v3  ;;  %v5150_v23 = vld [vmem:[%s8140_s8] ss:$0 sm:$0xff]  ;;  %s8147_s8 = smov %s8145_s3 }
 0x1bf   : > { %5369 = vmatmul.mubr.msk.bf16.vlgmr.msra.gmra.mrb[0].mxu1 %vm1787_vm2, %v1832_v10  ;;  %v5158_v38 = vld [vmem:[%s8141_s10] ss:$0 sm:$0xff] }
 0x1c0   : > { %5382 = vmatprep.mubr.msk.bf16.mxu1 %vm6521_vm1, %v6520_v3  ;;  %5361 = vmatmul.mubr.msk.bf16.vlgmr.msra.gmra.mrb[0].mxu0 %vm1787_vm2, %v1768_v12 }
 0x1c1   : > { %5373 = vmatpush3.bf16.msra.mxu0 %v5888_v13  ;;  %5376 = vmatprep.mubr.msk.bf16.mxu0 %vm6521_vm1, %v6520_v3 }
 0x1c2   : > { %5374 = vmatprep.subr.bf16.mxu0 %v6520_v3 }
 0x1c5   : > { %5375 = vmatpush3.bf16.msra.mxu0 %v5889_v14 }
 0x1c6   : > { %5386 = vmatprep.subr.bf16.mxu0 %v6520_v3 }
 0x1c8   : > { %5377 = vmatmul.mubr.msk.bf16.vlgmr.msra.gmra.mrb[4].mxu0 %vm1787_vm2, %v1895_v17 }
 0x1c9   : > { %5388 = vmatprep.mubr.msk.bf16.mxu0 %vm6521_vm1, %v6520_v3 }
 0x292   : > { %v1888_v19 = vpop.f32.mrb[0].mxu1 }
 0x293   : > { %v1889_v20 = vadd.f32 %v5154_v18, %v1888_v19  ;;  %v5370_v21 = vpop.f32.mrb[1].mxu1  ;;  %v1825_v24 = vpop.f32.mrb[0].mxu0 }
 0x294   : > { %v1891_v22 = vpop.f32.mrb[2].mxu1  ;;  %v5362_v28 = vpop.f32.mrb[1].mxu0  ;;  %v1826_v31 = vadd.f32 %v5150_v23, %v1825_v24 }
 0x295   : > { %v7282_v25 = vpack.c.bf16 %v1889_v20, %v1889_v20  ;;  %v1892_v26 = vadd.f32 %v5154_v18, %v1891_v22  ;;  %v5371_v27 = vpop.f32.mrb[3].mxu1  ;;  %v1828_v29 = vpop.f32.mrb[2].mxu0 }
 0x296   : > { %v5363_v33 = vpop.f32.mrb[3].mxu0  ;;  %v7293_v35 = vpack.c.bf16 %v1826_v31, %v1826_v31  ;;  %v1829_v36 = vadd.f32 %v5150_v23, %v1828_v29 }
 0x297   : > { %v7284_v30 = vpack.c.bf16 %v1892_v26, %v1892_v26  ;;  %v1969_v32 = vsel %vm1964_vm3, %v7282_v25, 0 }
 0x298   : > { %5381 = vmatpush3.bf16.xpose.msra.mxu1 %v1969_v32  ;;  %v7296_v37 = vpack.c.bf16 %v1829_v36, %v1829_v36 }
 0x299   : > { %2232 = vrot.lane.b32.xlu1 %v7284_v30, %s6522_s18  ;;  %v2015_v34 = vsel %vm1964_vm3, %v7284_v30, 0  ;;  %5392 = vmatprep.subr.bf16.mxu1 %v6520_v3 }
 0x29a   : > { %5387 = vmatpush3.bf16.xpose.msra.mxu0 %v2015_v34 }
 0x29b   : > { %5398 = vmatprep.subr.bf16.mxu0 %v6520_v3  ;;  %v1951_v39 = vpop.f32.mrb[4].mxu0 }
 0x29c   : > { %v1952_v40 = vadd.f32 %v5158_v38, %v1951_v39  ;;  %v5378_v41 = vpop.f32.mrb[5].mxu0 }
 0x29d   : > { %v1954_v42 = vpop.f32.mrb[6].mxu0 }
 0x29e   : > { %v1955_v43 = vadd.f32 %v5158_v38, %v1954_v42  ;;  %v5379_v44 = vpop.f32.mrb[7].mxu0  ;;  %v7308_v45 = vpack.c.bf16 %v1952_v40, %v1952_v40 }
 0x29f   : > { %5383 = vmatmul.mubr.msk.bf16.vlgmr.msra.gmra.mrb[4].mxu1 %vm1964_vm3, %v7293_v35 }
 0x2a0   : > { %5394 = vmatprep.mubr.msk.bf16.mxu1 %vm6521_vm1, %v6520_v3  ;;  %v7310_v46 = vpack.c.bf16 %v1955_v43, %v1955_v43  ;;  %v2088_v47 = vsel %vm2086_vm4, %v7308_v45, 0 }
 0x2a1   : > { %5389 = vmatmul.mubr.msk.bf16.vlgmr.msra.gmra.mrb[8].mxu0 %vm1964_vm3, %v7296_v37  ;;  %5393 = vmatpush3.bf16.msra.mxu1 %v2088_v47 }
 0x2a2   : > { %5400 = vmatprep.mubr.msk.bf16.mxu0 %vm6521_vm1, %v6520_v3  ;;  %v2134_v48 = vsel %vm2086_vm4, %v7310_v46, 0  ;;  %5404 = vmatprep.subr.bf16.mxu1 %v6520_v3 }
 0x2a3   : > { %5399 = vmatpush3.bf16.msra.mxu0 %v2134_v48 }
 0x2a4   : > { %5410 = vmatprep.subr.bf16.mxu0 %v6520_v3 }
 0x30b   : > { %v2233_v6 = vpop.permute.xlu1 %2232 }
 0x30c   : > { %v2238_v19 = vsel %vm1964_vm3, %v2233_v6, 0 }
 0x372   : > { %v2005_v49 = vpop.f32.mrb[4].mxu1 }
 0x373   : > { %v5384_v50 = vpop.f32.mrb[5].mxu1  ;;  %v2057_v51 = vsel %vm1964_vm3, %v2005_v49, -inf }
 0x374   : > { %2058 = vmax.xlane.f32.xlu0 %v2057_v51  ;;  %v2008_v52 = vpop.f32.mrb[6].mxu1  ;;  %v2051_v53 = vpop.f32.mrb[8].mxu0 }
 0x375   : > { %v5385_v54 = vpop.f32.mrb[7].mxu1  ;;  %v5390_v55 = vpop.f32.mrb[9].mxu0  ;;  %v2060_v58 = vsel %vm1964_vm3, %v2051_v53, -inf }
 0x376   : > { %v2054_v56 = vpop.f32.mrb[10].mxu0 }
 0x377   : > { %v5391_v57 = vpop.f32.mrb[11].mxu0 }
 0x378   : > { %2061 = vmax.xlane.f32.xlu0 %v2060_v58 }
 0x38e   : > { %2180 = vrot.lane.b32.xlu0 %v7282_v25, %s6522_s18 }
 0x401   : > { %v2059_v59 = vpop.xlane.xlu0 %2058 }
 0x402   : > { %v2063_v60 = vsub.f32 %v2005_v49, %v2059_v59 }
 0x404   : > { %v2065_v61 = vmul.f32 1.442695, %v2063_v60 }
 0x405   : > { %v2062_v62 = vpop.xlane.xlu0 %2061 }
 0x406   : > { %5906 = vpow2.f32 %v2065_v61  ;;  %v2064_v63 = vsub.f32 %v2051_v53, %v2062_v62 }
 0x408   : > { %v2067_v0 = vmul.f32 1.442695, %v2064_v63 }
 0x409   : > { %v2181_v13 = vpop.permute.xlu0 %2180 }
 0x40a   : > { %5908 = vpow2.f32 %v2067_v0  ;;  %v2186_v16 = vsel %vm1964_vm3, %v2181_v13, 0 }
 0x410   : > { %v5907_v1 = vpop.eup %5906 }
 0x411   : > { %v2069_v2 = vsel %vm1964_vm3, %v5907_v1, 0.0 }
 0x412   : > { %2070 = vadd.xlane.f32.xlu1 %v2069_v2 }
 0x414   : > { %v5909_v4 = vpop.eup %5908 }
 0x415   : > { %v2072_v5 = vsel %vm1964_vm3, %v5909_v4, 0.0 }
 0x416   : > { %2073 = vadd.xlane.f32.xlu1 %v2072_v5 }
 0x427   : > { %2177 = vrot.lane.b32.xlu1 %v7293_v35, %s6522_s18 }
 0x42b   : > { %2229 = vrot.lane.b32.xlu1 %v7296_v37, %s6522_s18 }
 0x49f   : > { %v2071_v7 = vpop.xlane.xlu1 %2070 }
 0x4a0   : > { %5910 = vrcp.f32 %v2071_v7 }
 0x4a3   : > { %v2074_v8 = vpop.xlane.xlu1 %2073 }
 0x4a4   : > { %5912 = vrcp.f32 %v2074_v8 }
 0x4a7   : > { %v2178_v20 = vpop.permute.xlu1 %2177 }
 0x4aa   : > { %v5911_v10 = vpop.eup %5910 }
 0x4ab   : > { %v7328_v12 = vmul.f32 %v5911_v10, %v5907_v1  ;;  %v2230_v21 = vpop.permute.xlu1 %2229 }
 0x4ad   : > { %v2081_v14 = vpack.c.bf16 %v7328_v12, %v7328_v12 }
 0x4ae   : > { %v5913_v15 = vpop.eup %5912 }
 0x4af   : > { %v7333_v17 = vmul.f32 %v5913_v15, %v5909_v4  ;;  %5395 = vmatmul.mubr.msk.bf16.vlgmr.msra.gmra.mrb[8].mxu1 %vm1964_vm3, %v2081_v14 }
 0x4b0   : > { %5405 = vmatpush3.bf16.xpose.msra.mxu1 %v2186_v16  ;;  %5406 = vmatprep.mubr.msk.bf16.mxu1 %vm6521_vm1, %v6520_v3 }
 0x4b1   : > { %v2082_v18 = vpack.c.bf16 %v7333_v17, %v7333_v17  ;;  %5416 = vmatprep.subr.bf16.mxu1 %v6520_v3 }
 0x4b3   : > { %5401 = vmatmul.mubr.msk.bf16.vlgmr.msra.gmra.mrb[12].mxu0 %vm1964_vm3, %v2082_v18 }
 0x4b4   : > { %5411 = vmatpush3.bf16.xpose.msra.mxu0 %v2238_v19  ;;  %5412 = vmatprep.mubr.msk.bf16.mxu0 %vm6521_vm1, %v6520_v3 }
 0x4b5   : > { %5422 = vmatprep.subr.bf16.mxu0 %v6520_v3 }
 0x4b7   : > { %5407 = vmatmul.mubr.msk.bf16.vlgmr.msra.gmra.mrb[12].mxu1 %vm1964_vm3, %v2178_v20 }
 0x4b8   : > { %5418 = vmatprep.mubr.msk.bf16.mxu1 %vm6521_vm1, %v6520_v3 }
 0x4bb   : > { %5413 = vmatmul.mubr.msk.bf16.vlgmr.msra.gmra.mrb[16].mxu0 %vm1964_vm3, %v2230_v21 }
 0x4bc   : > { %5424 = vmatprep.mubr.msk.bf16.mxu0 %vm6521_vm1, %v6520_v3 }
 0x582   : > { %v7352_v22 = vpop.f32.mrb[8].mxu1 }
 0x583   : > { %v5396_v23 = vpop.f32.mrb[9].mxu1 }
 0x584   : > { %v2127_v24 = vpop.f32.mrb[10].mxu1 }
 0x585   : > { %v5397_v26 = vpop.f32.mrb[11].mxu1 }
 0x586   : > { %v7354_v27 = vpop.f32.mrb[12].mxu0 }
 0x587   : > { %v5402_v28 = vpop.f32.mrb[13].mxu0 }
 0x588   : > { %v2173_v29 = vpop.f32.mrb[14].mxu0 }
 0x589   : > { %v5403_v31 = vpop.f32.mrb[15].mxu0 }
 0x58a   : > { %v2222_v32 = vpop.f32.mrb[12].mxu1 }
 0x58b   : > { %v5408_v33 = vpop.f32.mrb[13].mxu1  ;;  %v2280_v34 = vsel %vm1964_vm3, %v2222_v32, -inf }
 0x58c   : > { %2281 = vmax.xlane.f32.xlu0 %v2280_v34  ;;  %v2225_v36 = vpop.f32.mrb[14].mxu1 }
 0x58d   : > { %v5409_v38 = vpop.f32.mrb[15].mxu1 }
 0x58e   : > { %v2274_v39 = vpop.f32.mrb[16].mxu0 }
 0x58f   : > { %v5414_v40 = vpop.f32.mrb[17].mxu0  ;;  %v2283_v41 = vsel %vm1964_vm3, %v2274_v39, -inf }
 0x590   : > { %2284 = vmax.xlane.f32.xlu1 %v2283_v41  ;;  %v2277_v42 = vpop.f32.mrb[18].mxu0 }
 0x591   : > { %v5415_v43 = vpop.f32.mrb[19].mxu0 }
 0x5a1   : > { %2356 = vrot.lane.b32.xlu1 %v7310_v46, %s6522_s18 }
 0x5a5   : > { %2406 = vrot.lane.b32.xlu1 %v7282_v25, %s6523_s7 }
 0x5a9   : > { %2456 = vrot.lane.b32.xlu1 %v7284_v30, %s6523_s7 }
 0x5ad   : > { %2454 = vrot.lane.b32.xlu1 %v7296_v37, %s6523_s7 }
 0x619   : > { %v2282_v44 = vpop.xlane.xlu0 %2281 }
 0x61a   : > { %v2286_v47 = vsub.f32 %v2222_v32, %v2282_v44 }
 0x61c   : > { %v2288_v48 = vmul.f32 1.442695, %v2286_v47 }
 0x61d   : > { %v2285_v49 = vpop.xlane.xlu1 %2284 }
 0x61e   : > { %5914 = vpow2.f32 %v2288_v48  ;;  %v2287_v50 = vsub.f32 %v2274_v39, %v2285_v49 }
 0x620   : > { %v2290_v51 = vmul.f32 1.442695, %v2287_v50 }
 0x621   : > { %v2357_v52 = vpop.permute.xlu1 %2356 }
 0x622   : > { %5916 = vpow2.f32 %v2290_v51  ;;  %v2362_v53 = vsel %vm2086_vm4, %v2357_v52, 0 }
 0x623   : > { %5423 = vmatpush3.bf16.msra.mxu0 %v2362_v53 }
 0x624   : > { %5434 = vmatprep.subr.bf16.mxu0 %v6520_v3 }
 0x625   : > { %v2407_v63 = vpop.permute.xlu1 %2406 }
 0x626   : > { %v2412_v6 = vsel %vm1964_vm3, %v2407_v63, 0 }
 0x628   : > { %v5915_v54 = vpop.eup %5914 }
 0x629   : > { %v2292_v55 = vsel %vm1964_vm3, %v5915_v54, 0.0  ;;  %v2457_v5 = vpop.permute.xlu1 %2456 }
 0x62a   : > { %2293 = vadd.xlane.f32.xlu0 %v2292_v55  ;;  %v2462_v8 = vsel %vm1964_vm3, %v2457_v5, 0 }
 0x62c   : > { %v5917_v56 = vpop.eup %5916 }
 0x62d   : > { %v2295_v57 = vsel %vm1964_vm3, %v5917_v56, 0.0  ;;  %v2455_v13 = vpop.permute.xlu1 %2454 }
 0x62e   : > { %2296 = vadd.xlane.f32.xlu0 %v2295_v57 }
 0x644   : > { %2307 = vrot.lane.b32.xlu0 %v7308_v45, %s6522_s18 }
 0x648   : > { %2404 = vrot.lane.b32.xlu0 %v7293_v35, %s6523_s7 }
 0x6b7   : > { %v2294_v58 = vpop.xlane.xlu0 %2293 }
 0x6b8   : > { %5918 = vrcp.f32 %v2294_v58 }
 0x6bb   : > { %v2297_v59 = vpop.xlane.xlu0 %2296 }
 0x6bc   : > { %5920 = vrcp.f32 %v2297_v59 }
 0x6bf   : > { %v2308_v60 = vpop.permute.xlu0 %2307 }
 0x6c0   : > { %v2313_v61 = vsel %vm2086_vm4, %v2308_v60, 0 }
 0x6c1   : > { %5417 = vmatpush3.bf16.msra.mxu1 %v2313_v61 }
 0x6c2   : > { %v5919_v62 = vpop.eup %5918  ;;  %5428 = vmatprep.subr.bf16.mxu1 %v6520_v3 }
 0x6c3   : > { %v7376_v0 = vmul.f32 %v5919_v62, %v5915_v54  ;;  %v2405_v10 = vpop.permute.xlu0 %2404 }
 0x6c5   : > { %v2304_v1 = vpack.c.bf16 %v7376_v0, %v7376_v0  ;;  %v2302_v57 = vadd.f32 %v7376_v0, %v7328_v12 }
 0x6c6   : > { %v5921_v2 = vpop.eup %5920 }
 0x6c7   : > { %v7380_v4 = vmul.f32 %v5921_v2, %v5917_v56  ;;  %5419 = vmatmul.mubr.msk.bf16.vlgmr.msra.gmra.mrb[16].mxu1 %vm1964_vm3, %v2304_v1 }
 0x6c8   : > { %5430 = vmatprep.mubr.msk.bf16.mxu1 %vm6521_vm1, %v6520_v3 }
 0x6c9   : > { %v2305_v7 = vpack.c.bf16 %v7380_v4, %v7380_v4  ;;  %v2303_v61 = vadd.f32 %v7380_v4, %v7333_v17 }
 0x6ca   : > { %5429 = vmatpush3.bf16.xpose.msra.mxu1 %v2412_v6 }
 0x6cb   : > { %5425 = vmatmul.mubr.msk.bf16.vlgmr.msra.gmra.mrb[20].mxu0 %vm1964_vm3, %v2305_v7  ;;  %5440 = vmatprep.subr.bf16.mxu1 %v6520_v3 }
 0x6cc   : > { %5435 = vmatpush3.bf16.xpose.msra.mxu0 %v2462_v8  ;;  %5436 = vmatprep.mubr.msk.bf16.mxu0 %vm6521_vm1, %v6520_v3 }
 0x6cd   : > { %5446 = vmatprep.subr.bf16.mxu0 %v6520_v3 }
 0x6d1   : > { %5431 = vmatmul.mubr.msk.bf16.vlgmr.msra.gmra.mrb[20].mxu1 %vm1964_vm3, %v2405_v10 }
 0x6d2   : > { %5442 = vmatprep.mubr.msk.bf16.mxu1 %vm6521_vm1, %v6520_v3 }
 0x6d3   : > { %5437 = vmatmul.mubr.msk.bf16.vlgmr.msra.gmra.mrb[24].mxu0 %vm1964_vm3, %v2455_v13 }
 0x6d4   : > { %5448 = vmatprep.mubr.msk.bf16.mxu0 %vm6521_vm1, %v6520_v3 }
 0x79a   : > { %v7400_v14 = vpop.f32.mrb[16].mxu1 }
 0x79b   : > { %v5420_v15 = vpop.f32.mrb[17].mxu1 }
 0x79c   : > { %v2352_v16 = vpop.f32.mrb[18].mxu1 }
 0x79d   : > { %v5421_v18 = vpop.f32.mrb[19].mxu1 }
 0x79e   : > { %v7402_v19 = vpop.f32.mrb[20].mxu0 }
 0x79f   : > { %v5854_v20 = vpack.i.bf16 %v7402_v19, %v7400_v14  ;;  %v5426_v21 = vpop.f32.mrb[21].mxu0 }
 0x7a0   : > { %v2401_v23 = vpop.f32.mrb[22].mxu0 }
 0x7a1   : > { %v5427_v24 = vpop.f32.mrb[23].mxu0 }
 0x7a4   : > { %v2448_v26 = vpop.f32.mrb[20].mxu1 }
 0x7a5   : > { %v5432_v28 = vpop.f32.mrb[21].mxu1  ;;  %v2504_v29 = vsel %vm1964_vm3, %v2448_v26, -inf }
 0x7a6   : > { %2505 = vmax.xlane.f32.xlu0 %v2504_v29  ;;  %v2451_v31 = vpop.f32.mrb[22].mxu1  ;;  %v2498_v32 = vpop.f32.mrb[24].mxu0 }
 0x7a7   : > { %v5433_v33 = vpop.f32.mrb[23].mxu1  ;;  %v5438_v34 = vpop.f32.mrb[25].mxu0  ;;  %v2507_v36 = vsel %vm1964_vm3, %v2498_v32, -inf }
 0x7a8   : > { %2508 = vmax.xlane.f32.xlu1 %v2507_v36  ;;  %v2501_v38 = vpop.f32.mrb[26].mxu0 }
 0x7a9   : > { %v5439_v39 = vpop.f32.mrb[27].mxu0 }
 0x7b9   : > { %2578 = vrot.lane.b32.xlu1 %v7310_v46, %s6523_s7 }
 0x7bd   : > { %2628 = vrot.lane.b32.xlu1 %v7282_v25, %s6524_s16 }
 0x7c1   : > { %2678 = vrot.lane.b32.xlu1 %v7284_v30, %s6524_s16 }
 0x7c5   : > { %2676 = vrot.lane.b32.xlu1 %v7296_v37, %s6524_s16 }
 0x833   : > { %v2506_v40 = vpop.xlane.xlu0 %2505 }
 0x834   : > { %v2510_v41 = vsub.f32 %v2448_v26, %v2506_v40 }
 0x835   : > { %v2509_v42 = vpop.xlane.xlu1 %2508 }
 0x836   : > { %v2512_v43 = vmul.f32 1.442695, %v2510_v41  ;;  %v2511_v44 = vsub.f32 %v2498_v32, %v2509_v42 }
 0x838   : > { %5922 = vpow2.f32 %v2512_v43  ;;  %v2514_v47 = vmul.f32 1.442695, %v2511_v44 }
 0x839   : > { %v2579_v48 = vpop.permute.xlu1 %2578 }
 0x83a   : > { %5924 = vpow2.f32 %v2514_v47  ;;  %v2584_v49 = vsel %vm2086_vm4, %v2579_v48, 0 }
 0x83b   : > { %5447 = vmatpush3.bf16.msra.mxu0 %v2584_v49 }
 0x83c   : > { %5458 = vmatprep.subr.bf16.mxu0 %v6520_v3 }
 0x83d   : > { %v2629_v56 = vpop.permute.xlu1 %2628 }
 0x83e   : > { %v2634_v1 = vsel %vm1964_vm3, %v2629_v56, 0 }
 0x841   : > { %v2679_v63 = vpop.permute.xlu1 %2678 }
 0x842   : > { %v5923_v25 = vpop.eup %5922  ;;  %v2684_v0 = vsel %vm1964_vm3, %v2679_v63, 0 }
 0x843   : > { %v2516_v30 = vsel %vm1964_vm3, %v5923_v25, 0.0 }
 0x844   : > { %v5925_v50 = vpop.eup %5924  ;;  %2517 = vadd.xlane.f32.xlu0 %v2516_v30 }
 0x845   : > { %v2519_v37 = vsel %vm1964_vm3, %v5925_v50, 0.0  ;;  %v2677_v4 = vpop.permute.xlu1 %2676 }
 0x848   : > { %2520 = vadd.xlane.f32.xlu0 %v2519_v37 }
 0x85e   : > { %2530 = vrot.lane.b32.xlu0 %v7308_v45, %s6523_s7 }
 0x862   : > { %2626 = vrot.lane.b32.xlu0 %v7293_v35, %s6524_s16 }
 0x8d1   : > { %v2518_v51 = vpop.xlane.xlu0 %2517 }
 0x8d2   : > { %5926 = vrcp.f32 %v2518_v51 }
 0x8d5   : > { %v2521_v52 = vpop.xlane.xlu0 %2520 }
 0x8d6   : > { %5928 = vrcp.f32 %v2521_v52 }
 0x8d9   : > { %v2531_v53 = vpop.permute.xlu0 %2530 }
 0x8da   : > { %v2536_v54 = vsel %vm2086_vm4, %v2531_v53, 0 }
 0x8db   : > { %5441 = vmatpush3.bf16.msra.mxu1 %v2536_v54 }
 0x8dc   : > { %v5927_v55 = vpop.eup %5926  ;;  %5452 = vmatprep.subr.bf16.mxu1 %v6520_v3 }
 0x8dd   : > { %v2524_v58 = vmul.f32 %v5927_v55, %v5923_v25  ;;  %v2627_v17 = vpop.permute.xlu0 %2626 }
 0x8df   : > { %v7428_v59 = vadd.f32 %v2524_v58, %v2302_v57  ;;  %v2528_v60 = vpack.c.bf16 %v2524_v58, %v2524_v58 }
 0x8e0   : > { %v5929_v35 = vpop.eup %5928 }
 0x8e1   : > { %v2525_v62 = vmul.f32 %v5929_v35, %v5925_v50  ;;  %5443 = vmatmul.mubr.msk.bf16.vlgmr.msra.gmra.mrb[24].mxu1 %vm1964_vm3, %v2528_v60  ;;  %v5891_v60 = vld [vmem:[%s8142_s15 + $0x8] sm:$0xff]  }
 0x8e2   : > { %5454 = vmatprep.mubr.msk.bf16.mxu1 %vm6521_vm1, %v6520_v3 }
 0x8e3   : > { %v7436_v2 = vadd.f32 %v2525_v62, %v2303_v61  ;;  %v2529_v12 = vpack.c.bf16 %v2525_v62, %v2525_v62 }
 0x8e4   : > { %5453 = vmatpush3.bf16.xpose.msra.mxu1 %v2634_v1 }
 0x8e5   : > { %5449 = vmatmul.mubr.msk.bf16.vlgmr.msra.gmra.mrb[28].mxu0 %vm1964_vm3, %v2529_v12  ;;  %5464 = vmatprep.subr.bf16.mxu1 %v6520_v3 }
 0x8e6   : > { %5459 = vmatpush3.bf16.xpose.msra.mxu0 %v2684_v0  ;;  %5460 = vmatprep.mubr.msk.bf16.mxu0 %vm6521_vm1, %v6520_v3 }
 0x8e7   : > { %5470 = vmatprep.subr.bf16.mxu0 %v6520_v3 }
 0x8eb   : > { %5455 = vmatmul.mubr.msk.bf16.vlgmr.msra.gmra.mrb[28].mxu1 %vm1964_vm3, %v2627_v17 }
 0x8ec   : > { %5466 = vmatprep.mubr.msk.bf16.mxu1 %vm6521_vm1, %v6520_v3 }
 0x8ed   : > { %5461 = vmatmul.mubr.msk.bf16.vlgmr.msra.gmra.mrb[32].mxu0 %vm1964_vm3, %v2677_v4 }
 0x8ee   : > { %5472 = vmatprep.mubr.msk.bf16.mxu0 %vm6521_vm1, %v6520_v3 }
 0x9b4   : > { %v2572_v5 = vpop.f32.mrb[24].mxu1 }
 0x9b5   : > { %v5444_v6 = vpop.f32.mrb[25].mxu1 }
 0x9b6   : > { %v2575_v7 = vpop.f32.mrb[26].mxu1 }
 0x9b7   : > { %v5445_v8 = vpop.f32.mrb[27].mxu1 }
 0x9b8   : > { %v2620_v10 = vpop.f32.mrb[28].mxu0 }
 0x9b9   : > { %v5859_v13 = vpack.i.bf16 %v2620_v10, %v2572_v5  ;;  %v5450_v15 = vpop.f32.mrb[29].mxu0 }
 0x9ba   : > { %v2623_v16 = vpop.f32.mrb[30].mxu0 }
 0x9bb   : > { %v5451_v18 = vpop.f32.mrb[31].mxu0 }
 0x9be   : > { %v2670_v21 = vpop.f32.mrb[28].mxu1 }
 0x9bf   : > { %v5456_v23 = vpop.f32.mrb[29].mxu1  ;;  %v2726_v24 = vsel %vm1964_vm3, %v2670_v21, -inf }
 0x9c0   : > { %2727 = vmax.xlane.f32.xlu0 %v2726_v24  ;;  %v2673_v26 = vpop.f32.mrb[30].mxu1  ;;  %v2720_v28 = vpop.f32.mrb[32].mxu0 }
 0x9c1   : > { %v5457_v29 = vpop.f32.mrb[31].mxu1  ;;  %v5462_v31 = vpop.f32.mrb[33].mxu0  ;;  %v2729_v32 = vsel %vm1964_vm3, %v2720_v28, -inf }
 0x9c2   : > { %2730 = vmax.xlane.f32.xlu1 %v2729_v32  ;;  %v2723_v33 = vpop.f32.mrb[34].mxu0  ;;  %v5178_v31 = vld [vmem:[%s8143_s13] ss:$0 sm:$0xff] }
 0x9c3   : > { %v5463_v34 = vpop.f32.mrb[35].mxu0 }
 0x9d3   : > { %2800 = vrot.lane.b32.xlu1 %v7310_v46, %s6524_s16 }
 0x9d7   : > { %5855 = vrot.lane.b32.xlu1 %v5854_v20, %s6525_s24 }
 0x9db   : > { %5860 = vrot.lane.b32.xlu1 %v5859_v13, %s6526_s27 }
 0xa4d   : > { %v2728_v36 = vpop.xlane.xlu0 %2727 }
 0xa4e   : > { %v2732_v38 = vsub.f32 %v2670_v21, %v2728_v36 }
 0xa4f   : > { %v2731_v39 = vpop.xlane.xlu1 %2730 }
 0xa50   : > { %v2734_v40 = vmul.f32 1.442695, %v2732_v38  ;;  %v2733_v41 = vsub.f32 %v2720_v28, %v2731_v39 }
 0xa52   : > { %5930 = vpow2.f32 %v2734_v40  ;;  %v2736_v42 = vmul.f32 1.442695, %v2733_v41 }
 0xa53   : > { %v2801_v43 = vpop.permute.xlu1 %2800 }
 0xa54   : > { %5932 = vpow2.f32 %v2736_v42  ;;  %v2806_v46 = vsel %vm2086_vm4, %v2801_v43, 0 }
 0xa55   : > { %5471 = vmatpush3.bf16.msra.mxu0 %v2806_v46 }
 0xa56   : > { %5484 = vmatprep.subr.bf16.mxu0 %v6520_v3 }
 0xa57   : > { %v5856_v4 = vpop.permute.xlu1 %5855 }
 0xa58   : > { %v5858_v6 = vunpack.i.h.bf16 %v5856_v4  ;;  %v5857_v7 = vunpack.i.l.bf16 %v5856_v4 }
 0xa5a   : > { %v2873_v15 = vsel %vm1964_vm3, %v7354_v27, %v5858_v6  ;;  %v2872_v16 = vsel %vm1964_vm3, %v7352_v22, %v5857_v7 }
 0xa5b   : > { %v5861_v5 = vpop.permute.xlu1 %5860 }
 0xa5c   : > { %v5931_v44 = vpop.eup %5930  ;;  %v5863_v8 = vunpack.i.h.bf16 %v5861_v5  ;;  %v5862_v10 = vunpack.i.l.bf16 %v5861_v5 }
 0xa5d   : > { %v2738_v14 = vsel %vm1964_vm3, %v5931_v44, 0.0 }
 0xa5e   : > { %v5933_v19 = vpop.eup %5932  ;;  %2739 = vadd.xlane.f32.xlu0 %v2738_v14  ;;  %v2875_v23 = vsel %vm2874_vm6, %v2872_v16, %v5862_v10  ;;  %v2876_v24 = vsel %vm2874_vm6, %v2873_v15, %v5863_v8 }
 0xa5f   : > { %v2741_v20 = vsel %vm1964_vm3, %v5933_v19, 0.0 }
 0xa62   : > { %2742 = vadd.xlane.f32.xlu0 %v2741_v20 }
 0xa78   : > { %2752 = vrot.lane.b32.xlu0 %v7308_v45, %s6524_s16 }
 0xaeb   : > { %v2740_v47 = vpop.xlane.xlu0 %2739 }
 0xaec   : > { %5934 = vrcp.f32 %v2740_v47 }
 0xaef   : > { %v2743_v48 = vpop.xlane.xlu0 %2742 }
 0xaf0   : > { %5936 = vrcp.f32 %v2743_v48  ;;  %v5892_v48 = vld [vmem:[%s8145_s3] sm:$0xff]   ;;  %s8154_s3 = sld [smem:[#allocation47_spill]] }
 0xaf3   : > { %v2753_v49 = vpop.permute.xlu0 %2752 }
 0xaf4   : > { %v2758_v25 = vsel %vm2086_vm4, %v2753_v49, 0  ;;  %v5893_v49 = vld [vmem:[%s8147_s8 + $0x8] sm:$0xff]  }
 0xaf5   : > { %5465 = vmatpush3.bf16.msra.mxu1 %v2758_v25  ;;  %v2992_v25 = vld [vmem:[%s8144_s1] sm:$0xff] }
 0xaf6   : > { %v5935_v30 = vpop.eup %5934  ;;  %5476 = vmatprep.subr.bf16.mxu1 %v6520_v3  ;;  %s8156_s8 = scalar_lea.vmem %s8154_s3, %s7183_s28 }
 0xaf7   : > { %v2746_v50 = vmul.f32 %v5935_v30, %v5931_v44  ;;  %v2993_v30 = vld [vmem:[%s8144_s1 + $0x8] sm:$0xff] }
 0xaf9   : > { %v2748_v37 = vadd.f32 %v2746_v50, %v7428_v59  ;;  %v2750_v51 = vpack.c.bf16 %v2746_v50, %v2746_v50  ;;  %v5890_v59 = vld [vmem:[%s8142_s15] sm:$0xff]   ;;  %v3083_v50 = vpack.c.bf16 %v2993_v30, %v2992_v25  ;;  %s8149_s15 = scalar_lea.vmem [#allocation12], %s7136_s6 }
 0xafa   : > { %v5937_v52 = vpop.eup %5936 }
 0xafb   : > { %v2943_v45 = vmul.f32 0.25, %v2748_v37  ;;  %v2747_v53 = vmul.f32 %v5937_v52, %v5933_v19  ;;  %5467 = vmatmul.mubr.msk.bf16.vlgmr.msra.gmra.mrb[32].mxu1 %vm1964_vm3, %v2750_v51  ;;  %v2994_v37 = vld [vmem:[%s8144_s1 + $0x10] sm:$0xff]  ;;  %v2995_v51 = vld [vmem:[%s8144_s1 + $0x18] sm:$0xff]  ;;  %s8151_s1 = sld [smem:[#allocation91_spill]] }
 0xafc   : > { %5480 = vmatprep.mubr.msk.bf16.mxu1 %vm6521_vm1, %v6520_v3  ;;  %5477 = vmatpush3.bf16.msra.mxu1 %v5890_v59  ;;  %v3084_v52 = vpack.c.bf16 %v2995_v51, %v2994_v37 }
 0xafd   : > { %v4445_v54 = vpack.c.bf16 %v2943_v45, %v2943_v45  ;;  %v2749_v55 = vadd.f32 %v2747_v53, %v7436_v2  ;;  %v2751_v56 = vpack.c.bf16 %v2747_v53, %v2747_v53  ;;  %5478 = vmatprep.subr.bf16.mxu1 %v6520_v3  ;;  %v5894_v45 = vld [vmem:[%s8146_s17] sm:$0xff]   ;;  %v5895_v53 = vld [vmem:[%s8146_s17 + $0x8] sm:$0xff]   ;;  %s8155_s17 = scalar_lea.vmem [#allocation14], %s8138_s2 }
 0xaff   : > { %4448 = vst.msk [vmem:[%s7233_s22] sm:$0xf] %vm4447_vm5, %v4445_v54  ;;  %v2944_v57 = vmul.f32 0.25, %v2749_v55  ;;  %5473 = vmatmul.mubr.msk.bf16.vlgmr.msra.gmra.mrb[36].mxu0 %vm1964_vm3, %v2751_v56  ;;  %v5896_v54 = vld [vmem:[%s8149_s15] sm:$0xff]  }
 0xb00   : > { %5488 = vmatprep.mubr.msk.bf16.mxu0 %vm6521_vm1, %v6520_v3  ;;  %5479 = vmatpush3.bf16.msra.mxu1 %v5891_v60 }
 0xb01   : > { %v4446_v58 = vpack.c.bf16 %v2944_v57, %v2944_v57  ;;  %5492 = vmatprep.subr.bf16.mxu1 %v5892_v48  ;;  %5485 = vmatpush3.bf16.msra.mxu0 %v5894_v45  ;;  %v2997_v4 = vld [vmem:[%s8151_s1 + $0x8] sm:$0xff]  ;;  %v2999_v15 = vld [vmem:[%s8151_s1 + $0x18] sm:$0xff] }
 0xb02   : > { %5486 = vmatprep.subr.bf16.mxu0 %v6520_v3 }
 0xb03   : > { %4449 = vst.msk [vmem:[%s7233_s22 + $0x4] sm:$0xf] %vm4447_vm5, %v4446_v58 }
 0xb05   : > { %5487 = vmatpush3.bf16.msra.mxu0 %v5895_v53 }
 0xb06   : > { %5500 = vmatprep.subr.bf16.mxu0 %v5896_v54 }
 0xbce   : > { %v2794_v35 = vpop.f32.mrb[32].mxu1 }
 0xbcf   : > { %v5468_v61 = vpop.f32.mrb[33].mxu1 }
 0xbd0   : > { %v2797_v62 = vpop.f32.mrb[34].mxu1 }
 0xbd1   : > { %v5469_v63 = vpop.f32.mrb[35].mxu1  ;;  %v5182_v62 = vld [vmem:[%s1713_s11] ss:$0 sm:$0xff]  ;;  %s8152_s11 = smov %s8149_s15 }
 0xbd2   : > { %v2842_v1 = vpop.f32.mrb[36].mxu0  ;;  %v5897_v10 = vld [vmem:[%s8152_s11 + $0x8] sm:$0xff]  }
 0xbd3   : > { %v5864_v2 = vpack.i.bf16 %v2842_v1, %v2794_v35  ;;  %v5474_v12 = vpop.f32.mrb[37].mxu0 }
 0xbd4   : > { %v2845_v0 = vpop.f32.mrb[38].mxu0  ;;  %v5183_v12 = vld [vmem:[%s1716_s30] ss:$0 sm:$0xff]  ;;  %s8153_s30 = scalar_lea.vmem [#allocation15], %s8138_s2 }
 0xbd5   : > { %5865 = vrot.lane.b32.xlu0 %v5864_v2, %s6527_s0  ;;  %v5475_v17 = vpop.f32.mrb[39].mxu0 }
 0xbd6   : > { %v2996_v17 = vld [vmem:[%s8151_s1] sm:$0xff] }
 0xbd7   : > { %v3158_v7 = vpack.c.bf16 %v2997_v4, %v2996_v17 }
 0xc47   : > { %v5866_v13 = vpop.permute.xlu0 %5865 }
 0xc48   : > { %v5868_v18 = vunpack.i.h.bf16 %v5866_v13  ;;  %v5867_v21 = vunpack.i.l.bf16 %v5866_v13  ;;  %v2998_v13 = vld [vmem:[%s8151_s1 + $0x10] sm:$0xff] }
 0xc49   : > { %v3159_v16 = vpack.c.bf16 %v2999_v15, %v2998_v13 }
 0xc4a   : > { %v2879_v26 = vsel %vm2877_vm7, %v2876_v24, %v5868_v18  ;;  %v2878_v28 = vsel %vm2877_vm7, %v2875_v23, %v5867_v21  ;;  %v5188_v18 = vld [vmem:[%s8153_s30] ss:$0 sm:$0xff] }
 0xc4b   : > { %v2880_v29 = vpack.c.bf16 %v2879_v26, %v2878_v28 }
 0xc4d   : > { %5481 = vmatmul.mubr.msk.bf16.vlgmr.msra.gmra.mrb[36].mxu1 %vm1787_vm2, %v2880_v29 }
 0xc4e   : > { %5493 = vmatpush3.bf16.msra.mxu1 %v5892_v48  ;;  %5496 = vmatprep.mubr.msk.bf16.mxu1 %vm1787_vm2, %v3083_v50 }
 0xc4f   : > { %5494 = vmatprep.subr.bf16.mxu1 %v5893_v49 }
 0xc52   : > { %5495 = vmatpush3.bf16.msra.mxu1 %v5893_v49 }
 0xc53   : > { %5508 = vmatprep.subr.bf16.mxu1 %v6520_v3 }
 0xc55   : > { %5497 = vmatmul.mubr.msk.bf16.vlgmr.msra.gmra.mrb[40].mxu1 %vm1787_vm2, %v3084_v52 }
 0xc56   : > { %5510 = vmatprep.mubr.msk.bf16.mxu1 %vm6521_vm1, %v6520_v3 }
 0xd20   : > { %v2936_v32 = vpop.f32.mrb[36].mxu1 }
 0xd21   : > { %v2937_v27 = vadd.f32 %v5178_v31, %v2936_v32  ;;  %v5482_v33 = vpop.f32.mrb[37].mxu1 }
 0xd22   : > { %v2939_v34 = vpop.f32.mrb[38].mxu1 }
 0xd23   : > { %v2940_v22 = vadd.f32 %v5178_v31, %v2939_v34  ;;  %v5483_v36 = vpop.f32.mrb[39].mxu1  ;;  %v2945_v38 = vadd.f32 %v2937_v27, %v7254_v9 }
 0xd24   : > { %v5184_v36 = vld [vmem:[%s8155_s17] ss:$0 sm:$0xff] }
 0xd25   : > { %v2949_v39 = vsel %vm1787_vm2, %v2945_v38, 0.0  ;;  %v2946_v40 = vadd.f32 %v2940_v22, %v7257_v11 }
 0xd26   : > { %2950 = vadd.xlane.f32.xlu1 %v2949_v39 }
 0xd27   : > { %v2952_v41 = vsel %vm1787_vm2, %v2946_v40, 0.0 }
 0xd28   : > { %2953 = vadd.xlane.f32.xlu0 %v2952_v41  ;;  %v5498_v21 = vpop.f32.mrb[40].mxu1 }
 0xd29   : > { %v3152_v23 = vadd.f32 %v5498_v21, %v5188_v18  ;;  %v3143_v24 = vpop.f32.mrb[41].mxu1 }
 0xd2a   : > { %v3144_v26 = vadd.f32 %v5188_v18, %v3143_v24  ;;  %v5499_v28 = vpop.f32.mrb[42].mxu1 }
 0xd2b   : > { %v3155_v29 = vadd.f32 %v5499_v28, %v5188_v18  ;;  %v3146_v31 = vpop.f32.mrb[43].mxu1 }
 0xd2c   : > { %v3147_v32 = vadd.f32 %v5188_v18, %v3146_v31 }
 0xd2d   : > { %v7542_v27 = vpack.c.bf16 %v3155_v29, %v3152_v23 }
 0xd2e   : > { %v7544_v33 = vpack.c.bf16 %v3147_v32, %v3144_v26 }
 0xd2f   : > { %v3289_v34 = vsel %vm1964_vm3, %v7542_v27, 0 }
 0xd30   : > { %v3243_v22 = vsel %vm1964_vm3, %v7544_v33, 0 }
 0xd31   : > { %5509 = vmatpush3.bf16.xpose.msra.mxu1 %v3243_v22 }
 0xd32   : > { %5520 = vmatprep.subr.bf16.mxu1 %v6520_v3 }
 0xdb3   : > { %v2951_v42 = vpop.xlane.xlu1 %2950 }
 0xdb4   : > { %v2956_v43 = vmul.f32 0.03125, %v2951_v42 }
 0xdb5   : > { %v2954_v46 = vpop.xlane.xlu0 %2953 }
 0xdb6   : > { %v2958_v44 = vsub.f32 %v2945_v38, %v2956_v43  ;;  %v2957_v14 = vmul.f32 0.03125, %v2954_v46 }
 0xdb8   : > { %v2959_v19 = vsub.f32 %v2946_v40, %v2957_v14  ;;  %v2960_v9 = vmul.f32 %v2958_v44, %v2958_v44  ;;  %v5193_v14 = vld [vmem:[%s8156_s8] ss:$0 sm:$0xff] }
 0xdba   : > { %v2962_v20 = vsel %vm1787_vm2, %v2960_v9, 0.0  ;;  %v2961_v11 = vmul.f32 %v2959_v19, %v2959_v19 }
 0xdbb   : > { %2963 = vadd.xlane.f32.xlu0 %v2962_v20 }
 0xdbc   : > { %v2965_v47 = vsel %vm1787_vm2, %v2961_v11, 0.0 }
 0xdbf   : > { %2966 = vadd.xlane.f32.xlu0 %v2965_v47 }
 0xe48   : > { %v2964_v55 = vpop.xlane.xlu0 %2963 }
 0xe49   : > { %v2968_v56 = vmul.f32 0.03125, %v2964_v55 }
 0xe4b   : > { %v2970_v57 = vadd.f32 1e-05, %v2968_v56 }
 0xe4c   : > { %v2967_v58 = vpop.xlane.xlu0 %2966 }
 0xe4d   : > { %5938 = vrsqrt.f32 %v2970_v57  ;;  %v2969_v59 = vmul.f32 0.03125, %v2967_v58 }
 0xe4f   : > { %v2971_v60 = vadd.f32 1e-05, %v2969_v59 }
 0xe51   : > { %5940 = vrsqrt.f32 %v2971_v60 }
 0xe57   : > { %v5939_v35 = vpop.eup %5938 }
 0xe58   : > { %v2974_v61 = vmul.f32 %v5939_v35, %v2958_v44 }
 0xe5a   : > { %v2982_v1 = vmul.f32 %v5182_v62, %v2974_v61 }
 0xe5b   : > { %v5941_v63 = vpop.eup %5940 }
 0xe5c   : > { %v2975_v2 = vmul.f32 %v5941_v63, %v2959_v19  ;;  %v7524_v5 = vadd.f32 %v5183_v12, %v2982_v1 }
 0xe5e   : > { %v2983_v0 = vmul.f32 %v5182_v62, %v2975_v2 }
 0xe60   : > { %v7526_v6 = vadd.f32 %v5183_v12, %v2983_v0 }
 0xe62   : > { %v3020_v8 = vpack.c.bf16 %v7526_v6, %v7524_v5 }
 0xe64   : > { %5489 = vmatmul.mubr.msk.bf16.vlgmr.msra.gmra.mrb[40].mxu0 %vm1787_vm2, %v3020_v8 }
 0xe65   : > { %5501 = vmatpush3.bf16.msra.mxu0 %v5896_v54  ;;  %5504 = vmatprep.mubr.msk.bf16.mxu0 %vm1787_vm2, %v3158_v7 }
 0xe66   : > { %5502 = vmatprep.subr.bf16.mxu0 %v5897_v10 }
 0xe69   : > { %5503 = vmatpush3.bf16.msra.mxu0 %v5897_v10 }
 0xe6a   : > { %5514 = vmatprep.subr.bf16.mxu0 %v6520_v3 }
 0xe6c   : > { %5505 = vmatmul.mubr.msk.bf16.vlgmr.msra.gmra.mrb[44].mxu0 %vm1787_vm2, %v3159_v16 }
 0xe6d   : > { %5516 = vmatprep.mubr.msk.bf16.mxu0 %vm6521_vm1, %v6520_v3 }
 0xe72   : > { %5515 = vmatpush3.bf16.xpose.msra.mxu0 %v3289_v34 }
 0xe73   : > { %5526 = vmatprep.subr.bf16.mxu0 %v6520_v3 }
 0xf37   : > { %v3076_v38 = vpop.f32.mrb[40].mxu0 }
 0xf38   : > { %v3077_v39 = vadd.f32 %v5184_v36, %v3076_v38  ;;  %v5490_v40 = vpop.f32.mrb[41].mxu0 }
 0xf39   : > { %v3079_v41 = vpop.f32.mrb[42].mxu0 }
 0xf3a   : > { %v7554_v42 = vpack.c.bf16 %v3077_v39, %v3077_v39  ;;  %v3080_v43 = vadd.f32 %v5184_v36, %v3079_v41  ;;  %v5491_v46 = vpop.f32.mrb[43].mxu0 }
 0xf3c   : > { %v7556_v44 = vpack.c.bf16 %v3080_v43, %v3080_v43  ;;  %5511 = vmatmul.mubr.msk.bf16.vlgmr.msra.gmra.mrb[44].mxu1 %vm1964_vm3, %v7554_v42 }
 0xf3d   : > { %5522 = vmatprep.mubr.msk.bf16.mxu1 %vm6521_vm1, %v6520_v3 }
 0xf3e   : > { %5517 = vmatmul.mubr.msk.bf16.vlgmr.msra.gmra.mrb[48].mxu0 %vm1964_vm3, %v7556_v44 }
 0xf3f   : > { %v5506_v19 = vpop.f32.mrb[44].mxu0  ;;  %5528 = vmatprep.mubr.msk.bf16.mxu0 %vm6521_vm1, %v6520_v3 }
 0xf40   : > { %v3227_v9 = vadd.f32 %v5506_v19, %v5193_v14  ;;  %v3218_v20 = vpop.f32.mrb[45].mxu0 }
 0xf41   : > { %v3219_v11 = vadd.f32 %v5193_v14, %v3218_v20  ;;  %v5507_v47 = vpop.f32.mrb[46].mxu0 }
 0xf42   : > { %v3230_v48 = vadd.f32 %v5507_v47, %v5193_v14  ;;  %v3221_v49 = vpop.f32.mrb[47].mxu0 }
 0xf43   : > { %v3222_v25 = vadd.f32 %v5193_v14, %v3221_v49 }
 0xf44   : > { %v7569_v30 = vpack.c.bf16 %v3230_v48, %v3227_v9 }
 0xf45   : > { %v7571_v50 = vpack.c.bf16 %v3222_v25, %v3219_v11 }
 0xf46   : > { %5527 = vmatpush3.bf16.msra.mxu0 %v7569_v30 }
 0xf47   : > { %5521 = vmatpush3.bf16.msra.mxu1 %v7571_v50  ;;  %5538 = vmatprep.subr.bf16.mxu0 %v6520_v3 }
 0xf48   : > { %5532 = vmatprep.subr.bf16.mxu1 %v6520_v3 }
0x100f   : > { %v3279_v37 = vpop.f32.mrb[44].mxu1 }
0x1010   : > { %v5512_v51 = vpop.f32.mrb[45].mxu1  ;;  %v3331_v52 = vsel %vm2874_vm6, %v3279_v37, -inf }
0x1011   : > { %3332 = vmax.xlane.f32.xlu1 %v3331_v52  ;;  %v3282_v45 = vpop.f32.mrb[46].mxu1  ;;  %v3325_v53 = vpop.f32.mrb[48].mxu0 }
0x1012   : > { %v5513_v54 = vpop.f32.mrb[47].mxu1  ;;  %v5518_v55 = vpop.f32.mrb[49].mxu0  ;;  %v3334_v56 = vsel %vm2874_vm6, %v3325_v53, -inf }
0x1013   : > { %3335 = vmax.xlane.f32.xlu0 %v3334_v56  ;;  %v3328_v57 = vpop.f32.mrb[50].mxu0 }
0x1014   : > { %v5519_v58 = vpop.f32.mrb[51].mxu0 }
0x1022   : > { %3447 = vrot.lane.b32.xlu1 %v7544_v33, %s6522_s18 }
0x109e   : > { %v3333_v59 = vpop.xlane.xlu1 %3332 }
0x109f   : > { %v3337_v60 = vsub.f32 %v3279_v37, %v3333_v59 }
0x10a0   : > { %v3336_v35 = vpop.xlane.xlu0 %3335 }
0x10a1   : > { %v3339_v61 = vmul.f32 1.442695, %v3337_v60  ;;  %v3338_v62 = vsub.f32 %v3325_v53, %v3336_v35 }
0x10a2   : > { %v3448_v17 = vpop.permute.xlu1 %3447 }
0x10a3   : > { %5942 = vpow2.f32 %v3339_v61  ;;  %v3341_v63 = vmul.f32 1.442695, %v3338_v62  ;;  %v3453_v21 = vsel %vm1964_vm3, %v3448_v17, 0 }
0x10a5   : > { %5944 = vpow2.f32 %v3341_v63 }
0x10ad   : > { %v5943_v1 = vpop.eup %5942 }
0x10ae   : > { %v3343_v2 = vsel %vm2874_vm6, %v5943_v1, 0.0 }
0x10af   : > { %v5945_v12 = vpop.eup %5944  ;;  %3344 = vadd.xlane.f32.xlu1 %v3343_v2 }
0x10b0   : > { %v3346_v0 = vsel %vm2874_vm6, %v5945_v12, 0.0 }
0x10b1   : > { %3347 = vadd.xlane.f32.xlu0 %v3346_v0 }
0x10c0   : > { %3444 = vrot.lane.b32.xlu1 %v7554_v42, %s6522_s18 }
0x10c4   : > { %3496 = vrot.lane.b32.xlu1 %v7556_v44, %s6522_s18 }
0x10c7   : > { %3499 = vrot.lane.b32.xlu0 %v7542_v27, %s6522_s18 }
0x113c   : > { %v3345_v4 = vpop.xlane.xlu1 %3344 }
0x113d   : > { %5946 = vrcp.f32 %v3345_v4 }
0x113e   : > { %v3348_v7 = vpop.xlane.xlu0 %3347 }
0x113f   : > { %5948 = vrcp.f32 %v3348_v7 }
0x1140   : > { %v3445_v26 = vpop.permute.xlu1 %3444 }
0x1142   : > { %v3500_v18 = vpop.permute.xlu0 %3499 }
0x1143   : > { %v3505_v24 = vsel %vm1964_vm3, %v3500_v18, 0 }
0x1144   : > { %v3497_v28 = vpop.permute.xlu1 %3496 }
0x1147   : > { %v5947_v8 = vpop.eup %5946 }
0x1148   : > { %v7589_v10 = vmul.f32 %v5947_v8, %v5943_v1 }
0x1149   : > { %v5949_v13 = vpop.eup %5948 }
0x114a   : > { %v7591_v15 = vmul.f32 %v5949_v13, %v5945_v12  ;;  %v3355_v16 = vpack.c.bf16 %v7589_v10, %v7589_v10 }
0x114c   : > { %5523 = vmatmul.mubr.msk.bf16.vlgmr.msra.gmra.mrb[48].mxu1 %vm2874_vm6, %v3355_v16  ;;  %v3356_v23 = vpack.c.bf16 %v7591_v15, %v7591_v15 }
0x114d   : > { %5533 = vmatpush3.bf16.xpose.msra.mxu1 %v3453_v21  ;;  %5534 = vmatprep.mubr.msk.bf16.mxu1 %vm6521_vm1, %v6520_v3 }
0x114e   : > { %5529 = vmatmul.mubr.msk.bf16.vlgmr.msra.gmra.mrb[52].mxu0 %vm2874_vm6, %v3356_v23  ;;  %5544 = vmatprep.subr.bf16.mxu1 %v6520_v3 }
0x114f   : > { %5539 = vmatpush3.bf16.xpose.msra.mxu0 %v3505_v24  ;;  %5540 = vmatprep.mubr.msk.bf16.mxu0 %vm6521_vm1, %v6520_v3 }
0x1150   : > { %5550 = vmatprep.subr.bf16.mxu0 %v6520_v3 }
0x1154   : > { %5535 = vmatmul.mubr.msk.bf16.vlgmr.msra.gmra.mrb[52].mxu1 %vm1964_vm3, %v3445_v26 }
0x1155   : > { %5546 = vmatprep.mubr.msk.bf16.mxu1 %vm6521_vm1, %v6520_v3 }
0x1156   : > { %5541 = vmatmul.mubr.msk.bf16.vlgmr.msra.gmra.mrb[56].mxu0 %vm1964_vm3, %v3497_v28 }
0x1157   : > { %5552 = vmatprep.mubr.msk.bf16.mxu0 %vm6521_vm1, %v6520_v3 }
0x121f   : > { %v7613_v29 = vpop.f32.mrb[48].mxu1 }
0x1220   : > { %v5524_v31 = vpop.f32.mrb[49].mxu1 }
0x1221   : > { %v3397_v32 = vpop.f32.mrb[50].mxu1  ;;  %v7615_v34 = vpop.f32.mrb[52].mxu0 }
0x1222   : > { %v5525_v22 = vpop.f32.mrb[51].mxu1  ;;  %v5530_v36 = vpop.f32.mrb[53].mxu0 }
0x1223   : > { %v3440_v38 = vpop.f32.mrb[54].mxu0 }
0x1224   : > { %v5531_v39 = vpop.f32.mrb[55].mxu0 }
0x1227   : > { %v3489_v40 = vpop.f32.mrb[52].mxu1 }
0x1228   : > { %v5536_v41 = vpop.f32.mrb[53].mxu1  ;;  %v3547_v43 = vsel %vm2874_vm6, %v3489_v40, -inf }
0x1229   : > { %v3541_v46 = vpop.f32.mrb[56].mxu0  ;;  %3548 = vmax.xlane.f32.xlu1 %v3547_v43  ;;  %v3492_v14 = vpop.f32.mrb[54].mxu1 }
0x122a   : > { %v5537_v19 = vpop.f32.mrb[55].mxu1  ;;  %v5542_v9 = vpop.f32.mrb[57].mxu0  ;;  %v3550_v20 = vsel %vm2874_vm6, %v3541_v46, -inf }
0x122b   : > { %3551 = vmax.xlane.f32.xlu0 %v3550_v20  ;;  %v3544_v11 = vpop.f32.mrb[58].mxu0 }
0x122c   : > { %v5543_v47 = vpop.f32.mrb[59].mxu0 }
0x123a   : > { %3574 = vrot.lane.b32.xlu1 %v7571_v50, %s6522_s18 }
0x123e   : > { %3669 = vrot.lane.b32.xlu1 %v7544_v33, %s6523_s7 }
0x1242   : > { %3719 = vrot.lane.b32.xlu1 %v7542_v27, %s6523_s7 }
0x1246   : > { %3667 = vrot.lane.b32.xlu1 %v7554_v42, %s6523_s7 }
0x12b6   : > { %v3549_v48 = vpop.xlane.xlu1 %3548 }
0x12b7   : > { %v3553_v49 = vsub.f32 %v3489_v40, %v3549_v48 }
0x12b8   : > { %v3552_v25 = vpop.xlane.xlu0 %3551 }
0x12b9   : > { %v3555_v37 = vmul.f32 1.442695, %v3553_v49  ;;  %v3554_v51 = vsub.f32 %v3541_v46, %v3552_v25 }
0x12ba   : > { %v3575_v52 = vpop.permute.xlu1 %3574 }
0x12bb   : > { %5950 = vpow2.f32 %v3555_v37  ;;  %v3557_v45 = vmul.f32 1.442695, %v3554_v51  ;;  %5545 = vmatpush3.bf16.msra.mxu1 %v3575_v52 }
0x12bc   : > { %5556 = vmatprep.subr.bf16.mxu1 %v6520_v3 }
0x12bd   : > { %5952 = vpow2.f32 %v3557_v45 }
0x12be   : > { %v3670_v35 = vpop.permute.xlu1 %3669 }
0x12bf   : > { %v3675_v1 = vsel %vm1964_vm3, %v3670_v35, 0 }
0x12c2   : > { %v3720_v12 = vpop.permute.xlu1 %3719 }
0x12c3   : > { %v3725_v17 = vsel %vm1964_vm3, %v3720_v12, 0 }
0x12c5   : > { %v5951_v53 = vpop.eup %5950 }
0x12c6   : > { %v3559_v54 = vsel %vm2874_vm6, %v5951_v53, 0.0  ;;  %v3668_v4 = vpop.permute.xlu1 %3667 }
0x12c7   : > { %v5953_v55 = vpop.eup %5952  ;;  %3560 = vadd.xlane.f32.xlu0 %v3559_v54 }
0x12c8   : > { %v3562_v56 = vsel %vm2874_vm6, %v5953_v55, 0.0 }
0x12cb   : > { %3563 = vadd.xlane.f32.xlu0 %v3562_v56 }
0x12e1   : > { %3621 = vrot.lane.b32.xlu0 %v7569_v30, %s6522_s18 }
0x12e5   : > { %3717 = vrot.lane.b32.xlu0 %v7556_v44, %s6523_s7 }
0x1354   : > { %v3561_v57 = vpop.xlane.xlu0 %3560 }
0x1355   : > { %5954 = vrcp.f32 %v3561_v57 }
0x1358   : > { %v3564_v58 = vpop.xlane.xlu0 %3563 }
0x1359   : > { %5956 = vrcp.f32 %v3564_v58 }
0x135c   : > { %v3622_v59 = vpop.permute.xlu0 %3621 }
0x135d   : > { %5551 = vmatpush3.bf16.msra.mxu0 %v3622_v59 }
0x135e   : > { %5562 = vmatprep.subr.bf16.mxu0 %v6520_v3 }
0x135f   : > { %v5955_v60 = vpop.eup %5954 }
0x1360   : > { %v7635_v61 = vmul.f32 %v5955_v60, %v5951_v53  ;;  %v3718_v7 = vpop.permute.xlu0 %3717 }
0x1362   : > { %v3571_v62 = vpack.c.bf16 %v7635_v61, %v7635_v61  ;;  %v3569_v53 = vadd.f32 %v7635_v61, %v7589_v10 }
0x1363   : > { %v5957_v63 = vpop.eup %5956 }
0x1364   : > { %v7640_v2 = vmul.f32 %v5957_v63, %v5953_v55  ;;  %5547 = vmatmul.mubr.msk.bf16.vlgmr.msra.gmra.mrb[56].mxu1 %vm2874_vm6, %v3571_v62 }
0x1365   : > { %5557 = vmatpush3.bf16.xpose.msra.mxu1 %v3675_v1  ;;  %5558 = vmatprep.mubr.msk.bf16.mxu1 %vm6521_vm1, %v6520_v3 }
0x1366   : > { %v3572_v0 = vpack.c.bf16 %v7640_v2, %v7640_v2  ;;  %5568 = vmatprep.subr.bf16.mxu1 %v6520_v3 }
0x1368   : > { %5553 = vmatmul.mubr.msk.bf16.vlgmr.msra.gmra.mrb[60].mxu0 %vm2874_vm6, %v3572_v0 }
0x1369   : > { %5563 = vmatpush3.bf16.xpose.msra.mxu0 %v3725_v17  ;;  %5564 = vmatprep.mubr.msk.bf16.mxu0 %vm6521_vm1, %v6520_v3 }
0x136a   : > { %5574 = vmatprep.subr.bf16.mxu0 %v6520_v3 }
0x136c   : > { %5559 = vmatmul.mubr.msk.bf16.vlgmr.msra.gmra.mrb[60].mxu1 %vm1964_vm3, %v3668_v4 }
0x136d   : > { %5570 = vmatprep.mubr.msk.bf16.mxu1 %vm6521_vm1, %v6520_v3 }
0x1370   : > { %5565 = vmatmul.mubr.msk.bf16.vlgmr.msra.gmra.mrb[64].mxu0 %vm1964_vm3, %v3718_v7 }
0x1371   : > { %5576 = vmatprep.mubr.msk.bf16.mxu0 %vm6521_vm1, %v6520_v3 }
0x1437   : > { %v7659_v8 = vpop.f32.mrb[56].mxu1 }
0x1438   : > { %v5548_v13 = vpop.f32.mrb[57].mxu1 }
0x1439   : > { %v3617_v16 = vpop.f32.mrb[58].mxu1 }
0x143a   : > { %v5549_v18 = vpop.f32.mrb[59].mxu1 }
0x143b   : > { %v7661_v21 = vpop.f32.mrb[60].mxu0 }
0x143c   : > { %v5869_v23 = vpack.i.bf16 %v7661_v21, %v7659_v8  ;;  %v5554_v24 = vpop.f32.mrb[61].mxu0 }
0x143d   : > { %v3664_v26 = vpop.f32.mrb[62].mxu0 }
0x143e   : > { %v5555_v28 = vpop.f32.mrb[63].mxu0 }
0x143f   : > { %v3711_v31 = vpop.f32.mrb[60].mxu1 }
0x1440   : > { %v5560_v32 = vpop.f32.mrb[61].mxu1  ;;  %v3767_v22 = vsel %vm2874_vm6, %v3711_v31, -inf }
0x1441   : > { %3768 = vmax.xlane.f32.xlu1 %v3767_v22  ;;  %v3714_v36 = vpop.f32.mrb[62].mxu1 }
0x1442   : > { %v5561_v38 = vpop.f32.mrb[63].mxu1 }
0x1443   : > { %v3761_v39 = vpop.f32.mrb[64].mxu0 }
0x1444   : > { %v5566_v40 = vpop.f32.mrb[65].mxu0  ;;  %v3770_v41 = vsel %vm2874_vm6, %v3761_v39, -inf }
0x1445   : > { %3771 = vmax.xlane.f32.xlu0 %v3770_v41  ;;  %v3764_v43 = vpop.f32.mrb[66].mxu0 }
0x1446   : > { %v5567_v46 = vpop.f32.mrb[67].mxu0 }
0x1452   : > { %3793 = vrot.lane.b32.xlu1 %v7571_v50, %s6523_s7 }
0x1456   : > { %3887 = vrot.lane.b32.xlu1 %v7544_v33, %s6524_s16 }
0x145a   : > { %3937 = vrot.lane.b32.xlu1 %v7542_v27, %s6524_s16 }
0x145e   : > { %3885 = vrot.lane.b32.xlu1 %v7554_v42, %s6524_s16 }
0x14ce   : > { %v3769_v14 = vpop.xlane.xlu1 %3768 }
0x14cf   : > { %v3773_v19 = vsub.f32 %v3711_v31, %v3769_v14 }
0x14d1   : > { %v3775_v9 = vmul.f32 1.442695, %v3773_v19 }
0x14d2   : > { %v3772_v20 = vpop.xlane.xlu0 %3771  ;;  %v3794_v11 = vpop.permute.xlu1 %3793 }
0x14d3   : > { %5958 = vpow2.f32 %v3775_v9  ;;  %v3774_v47 = vsub.f32 %v3761_v39, %v3772_v20  ;;  %5569 = vmatpush3.bf16.msra.mxu1 %v3794_v11 }
0x14d4   : > { %5580 = vmatprep.subr.bf16.mxu1 %v6520_v3 }
0x14d5   : > { %v3777_v48 = vmul.f32 1.442695, %v3774_v47 }
0x14d6   : > { %v3888_v45 = vpop.permute.xlu1 %3887 }
0x14d7   : > { %5960 = vpow2.f32 %v3777_v48  ;;  %v3893_v58 = vsel %vm1964_vm3, %v3888_v45, 0 }
0x14da   : > { %v3938_v60 = vpop.permute.xlu1 %3937 }
0x14db   : > { %v3943_v61 = vsel %vm1964_vm3, %v3938_v60, 0 }
0x14dd   : > { %v5959_v49 = vpop.eup %5958 }
0x14de   : > { %v3779_v33 = vsel %vm2874_vm6, %v5959_v49, 0.0 }
0x14df   : > { %3780 = vadd.xlane.f32.xlu0 %v3779_v33 }
0x14e1   : > { %v5961_v27 = vpop.eup %5960 }
0x14e2   : > { %v3782_v25 = vsel %vm2874_vm6, %v5961_v27, 0.0 }
0x14e3   : > { %3783 = vadd.xlane.f32.xlu0 %v3782_v25 }
0x14f9   : > { %3839 = vrot.lane.b32.xlu0 %v7569_v30, %s6523_s7 }
0x14fd   : > { %3935 = vrot.lane.b32.xlu0 %v7556_v44, %s6524_s16  ;;  %v3570_v44 = vadd.f32 %v7640_v2, %v7591_v15  ;;  %v3886_v15 = vpop.permute.xlu1 %3885 }
0x156c   : > { %v3781_v42 = vpop.xlane.xlu0 %3780 }
0x156d   : > { %5962 = vrcp.f32 %v3781_v42 }
0x1570   : > { %v3784_v37 = vpop.xlane.xlu0 %3783 }
0x1571   : > { %5964 = vrcp.f32 %v3784_v37 }
0x1574   : > { %v3840_v51 = vpop.permute.xlu0 %3839 }
0x1575   : > { %5575 = vmatpush3.bf16.msra.mxu0 %v3840_v51 }
0x1576   : > { %5586 = vmatprep.subr.bf16.mxu0 %v6520_v3 }
0x1577   : > { %v5963_v52 = vpop.eup %5962 }
0x1578   : > { %v3787_v54 = vmul.f32 %v5963_v52, %v5959_v49  ;;  %v3936_v62 = vpop.permute.xlu0 %3935 }
0x157a   : > { %v7685_v55 = vadd.f32 %v3787_v54, %v3569_v53  ;;  %v3791_v56 = vpack.c.bf16 %v3787_v54, %v3787_v54  ;;  %v5898_v53 = vld [vmem:[%s7204_s29] sm:$0xff]   ;;  %v5899_v54 = vld [vmem:[%s7204_s29 + $0x8] sm:$0xff]  }
0x157b   : > { %v5965_v57 = vpop.eup %5964 }
0x157c   : > { %v3788_v59 = vmul.f32 %v5965_v57, %v5961_v27  ;;  %5571 = vmatmul.mubr.msk.bf16.vlgmr.msra.gmra.mrb[64].mxu1 %vm2874_vm6, %v3791_v56 }
0x157d   : > { %5581 = vmatpush3.bf16.xpose.msra.mxu1 %v3893_v58  ;;  %5582 = vmatprep.mubr.msk.bf16.mxu1 %vm6521_vm1, %v6520_v3 }
0x157e   : > { %v7693_v35 = vadd.f32 %v3788_v59, %v3570_v44  ;;  %v3792_v10 = vpack.c.bf16 %v3788_v59, %v3788_v59  ;;  %5592 = vmatprep.subr.bf16.mxu1 %v6520_v3 }
0x1580   : > { %5577 = vmatmul.mubr.msk.bf16.vlgmr.msra.gmra.mrb[68].mxu0 %vm2874_vm6, %v3792_v10 }
0x1581   : > { %5587 = vmatpush3.bf16.xpose.msra.mxu0 %v3943_v61  ;;  %5588 = vmatprep.mubr.msk.bf16.mxu0 %vm6521_vm1, %v6520_v3 }
0x1582   : > { %5598 = vmatprep.subr.bf16.mxu0 %v6520_v3 }
0x1584   : > { %5583 = vmatmul.mubr.msk.bf16.vlgmr.msra.gmra.mrb[68].mxu1 %vm1964_vm3, %v3886_v15 }
0x1585   : > { %5594 = vmatprep.mubr.msk.bf16.mxu1 %vm6521_vm1, %v6520_v3 }
0x1588   : > { %5589 = vmatmul.mubr.msk.bf16.vlgmr.msra.gmra.mrb[72].mxu0 %vm1964_vm3, %v3936_v62 }
0x1589   : > { %5600 = vmatprep.mubr.msk.bf16.mxu0 %vm6521_vm1, %v6520_v3 }
0x164f   : > { %v3833_v63 = vpop.f32.mrb[64].mxu1 }
0x1650   : > { %v5572_v1 = vpop.f32.mrb[65].mxu1 }
0x1651   : > { %v3836_v2 = vpop.f32.mrb[66].mxu1 }
0x1652   : > { %v5573_v12 = vpop.f32.mrb[67].mxu1 }
0x1653   : > { %v3879_v0 = vpop.f32.mrb[68].mxu0 }
0x1654   : > { %v5874_v17 = vpack.i.bf16 %v3879_v0, %v3833_v63  ;;  %v5578_v4 = vpop.f32.mrb[69].mxu0 }
0x1655   : > { %v3882_v7 = vpop.f32.mrb[70].mxu0 }
0x1656   : > { %v5579_v13 = vpop.f32.mrb[71].mxu0 }
0x1657   : > { %v3929_v16 = vpop.f32.mrb[68].mxu1 }
0x1658   : > { %v5584_v18 = vpop.f32.mrb[69].mxu1  ;;  %v3985_v24 = vsel %vm2874_vm6, %v3929_v16, -inf }
0x1659   : > { %3986 = vmax.xlane.f32.xlu1 %v3985_v24  ;;  %v3932_v26 = vpop.f32.mrb[70].mxu1 }
0x165a   : > { %v5585_v28 = vpop.f32.mrb[71].mxu1 }
0x165b   : > { %v3979_v31 = vpop.f32.mrb[72].mxu0 }
0x165c   : > { %v5590_v32 = vpop.f32.mrb[73].mxu0  ;;  %v3988_v22 = vsel %vm2874_vm6, %v3979_v31, -inf }
0x165d   : > { %3989 = vmax.xlane.f32.xlu0 %v3988_v22  ;;  %v3982_v36 = vpop.f32.mrb[74].mxu0 }
0x165e   : > { %v5591_v38 = vpop.f32.mrb[75].mxu0 }
0x166a   : > { %4011 = vrot.lane.b32.xlu1 %v7571_v50, %s6524_s16 }
0x166e   : > { %5870 = vrot.lane.b32.xlu1 %v5869_v23, %s6525_s24 }
0x1672   : > { %5875 = vrot.lane.b32.xlu1 %v5874_v17, %s6526_s27 }
0x16e6   : > { %v3987_v39 = vpop.xlane.xlu1 %3986 }
0x16e7   : > { %v3991_v40 = vsub.f32 %v3929_v16, %v3987_v39 }
0x16e9   : > { %v3993_v41 = vmul.f32 1.442695, %v3991_v40 }
0x16ea   : > { %v3990_v43 = vpop.xlane.xlu0 %3989  ;;  %v4012_v46 = vpop.permute.xlu1 %4011 }
0x16eb   : > { %5966 = vpow2.f32 %v3993_v41  ;;  %v3992_v14 = vsub.f32 %v3979_v31, %v3990_v43  ;;  %5593 = vmatpush3.bf16.msra.mxu1 %v4012_v46 }
0x16ec   : > { %5604 = vmatprep.subr.bf16.mxu1 %v6520_v3 }
0x16ed   : > { %v3995_v19 = vmul.f32 1.442695, %v3992_v14 }
0x16ee   : > { %v5871_v61 = vpop.permute.xlu1 %5870 }
0x16ef   : > { %5968 = vpow2.f32 %v3995_v19  ;;  %v5873_v62 = vunpack.i.h.bf16 %v5871_v61  ;;  %v5872_v63 = vunpack.i.l.bf16 %v5871_v61 }
0x16f1   : > { %v4128_v0 = vsel %vm1964_vm3, %v7615_v34, %v5873_v62  ;;  %v4127_v17 = vsel %vm1964_vm3, %v7613_v29, %v5872_v63  ;;  %v5214_v34 = vld [vmem:[%s1699_s20] ss:$0 sm:$0xff] }
0x16f2   : > { %v5876_v15 = vpop.permute.xlu1 %5875 }
0x16f3   : > { %v5878_v1 = vunpack.i.h.bf16 %v5876_v15  ;;  %v5877_v2 = vunpack.i.l.bf16 %v5876_v15 }
0x16f5   : > { %v5967_v50 = vpop.eup %5966  ;;  %v4129_v13 = vsel %vm2874_vm6, %v4127_v17, %v5877_v2  ;;  %v4130_v16 = vsel %vm2874_vm6, %v4128_v0, %v5878_v1  ;;  %v5224_v0 = vld [vmem:[%s1710_s9] ss:$0 sm:$0xff] }
0x16f6   : > { %v3997_v9 = vsel %vm2874_vm6, %v5967_v50, 0.0 }
0x16f7   : > { %3998 = vadd.xlane.f32.xlu0 %v3997_v9 }
0x16f9   : > { %v5969_v8 = vpop.eup %5968 }
0x16fa   : > { %v4000_v21 = vsel %vm2874_vm6, %v5969_v8, 0.0 }
0x16fb   : > { %4001 = vadd.xlane.f32.xlu0 %v4000_v21 }
0x1711   : > { %4057 = vrot.lane.b32.xlu0 %v7569_v30, %s6524_s16 }
0x1784   : > { %v3999_v23 = vpop.xlane.xlu0 %3998 }
0x1785   : > { %5970 = vrcp.f32 %v3999_v23  ;;  %v5900_v23 = vld [vmem:[%s1417_s26] sm:$0xff]  }
0x1788   : > { %v4002_v20 = vpop.xlane.xlu0 %4001 }
0x1789   : > { %5972 = vrcp.f32 %v4002_v20  ;;  %v5901_v20 = vld [vmem:[%s1417_s26 + $0x8] sm:$0xff]  }
0x178c   : > { %v4058_v11 = vpop.permute.xlu0 %4057 }
0x178d   : > { %5599 = vmatpush3.bf16.msra.mxu0 %v4058_v11  ;;  %v5902_v11 = vld [vmem:[%s7214_s19] sm:$0xff]  }
0x178e   : > { %5612 = vmatprep.subr.bf16.mxu0 %v6520_v3 }
0x178f   : > { %v5971_v47 = vpop.eup %5970 }
0x1790   : > { %v4005_v48 = vmul.f32 %v5971_v47, %v5967_v50  ;;  %v5903_v47 = vld [vmem:[%s7214_s19 + $0x8] sm:$0xff]  }
0x1792   : > { %v4007_v49 = vadd.f32 %v4005_v48, %v7685_v55  ;;  %v4009_v33 = vpack.c.bf16 %v4005_v48, %v4005_v48 }
0x1793   : > { %v5973_v27 = vpop.eup %5972 }
0x1794   : > { %v4196_v25 = vmul.f32 0.25, %v4007_v49  ;;  %v4006_v42 = vmul.f32 %v5973_v27, %v5969_v8  ;;  %5595 = vmatmul.mubr.msk.bf16.vlgmr.msra.gmra.mrb[72].mxu1 %vm2874_vm6, %v4009_v33 }
0x1795   : > { %5608 = vmatprep.mubr.msk.bf16.mxu1 %vm6521_vm1, %v6520_v3  ;;  %5605 = vmatpush3.bf16.msra.mxu1 %v5898_v53 }
0x1796   : > { %v4450_v30 = vpack.c.bf16 %v4196_v25, %v4196_v25  ;;  %v4008_v37 = vadd.f32 %v4006_v42, %v7693_v35  ;;  %v4010_v51 = vpack.c.bf16 %v4006_v42, %v4006_v42  ;;  %5606 = vmatprep.subr.bf16.mxu1 %v6520_v3 }
0x1798   : > { %4453 = vst.msk [vmem:[%s7236_s12] sm:$0xf] %vm4452_vm8, %v4450_v30  ;;  %v4197_v52 = vmul.f32 0.25, %v4008_v37  ;;  %5601 = vmatmul.mubr.msk.bf16.vlgmr.msra.gmra.mrb[76].mxu0 %vm2874_vm6, %v4010_v51  ;;  %v5218_v51 = vld [vmem:[%s1719_s14] ss:$0 sm:$0xff] }
0x1799   : > { %5616 = vmatprep.mubr.msk.bf16.mxu0 %vm6521_vm1, %v6520_v3  ;;  %5607 = vmatpush3.bf16.msra.mxu1 %v5899_v54  ;;  %v5219_v54 = vld [vmem:[%s1722_s23] ss:$0 sm:$0xff] }
0x179a   : > { %v4451_v45 = vpack.c.bf16 %v4197_v52, %v4197_v52  ;;  %5620 = vmatprep.subr.bf16.mxu1 %v6520_v3  ;;  %5613 = vmatpush3.bf16.msra.mxu0 %v5900_v23  ;;  %v5231_v23 = vld [vmem:[%s1728_s4] ss:$0 sm:$0xff] }
0x179b   : > { %5614 = vmatprep.subr.bf16.mxu0 %v6520_v3 }
0x179c   : > { %4454 = vst.msk [vmem:[%s7236_s12 + $0x4] sm:$0xf] %vm4452_vm8, %v4451_v45 }
0x179e   : > { %5615 = vmatpush3.bf16.msra.mxu0 %v5901_v20 }
0x1867   : > { %v4051_v55 = vpop.f32.mrb[72].mxu1 }
0x1868   : > { %v5596_v56 = vpop.f32.mrb[73].mxu1 }
0x1869   : > { %v4054_v57 = vpop.f32.mrb[74].mxu1 }
0x186a   : > { %v5597_v44 = vpop.f32.mrb[75].mxu1 }
0x186b   : > { %v4097_v58 = vpop.f32.mrb[76].mxu0 }
0x186c   : > { %v5879_v59 = vpack.i.bf16 %v4097_v58, %v4051_v55  ;;  %v5602_v60 = vpop.f32.mrb[77].mxu0  ;;  %v5904_v58 = vld [vmem:[%s7214_s19 + $0x10] sm:$0xff]  }
0x186d   : > { %v4100_v35 = vpop.f32.mrb[78].mxu0  ;;  %v5220_v60 = vld [vmem:[%s1702_s5] ss:$0 sm:$0xff]  ;;  %s8164_s5 = sld [smem:[#allocation70_spill]] }
0x186e   : > { %v5603_v10 = vpop.f32.mrb[79].mxu0  ;;  %5880 = vrot.lane.b32.xlu1 %v5879_v59, %s6527_s0  ;;  %v5905_v59 = vld [vmem:[%s7214_s19 + $0x18] sm:$0xff]  }
0x1873   : > { %p5232_p5 = scmp.ge.s32.totalorder %s8164_s5, 1 }
0x18e0   : > { %v5881_v12 = vpop.permute.xlu1 %5880 }
0x18e1   : > { %v5883_v4 = vunpack.i.h.bf16 %v5881_v12  ;;  %v5882_v7 = vunpack.i.l.bf16 %v5881_v12 }
0x18e3   : > { %v4132_v18 = vsel %vm2877_vm7, %v4130_v16, %v5883_v4  ;;  %v4131_v24 = vsel %vm2877_vm7, %v4129_v13, %v5882_v7 }
0x18e4   : > { %v4133_v26 = vpack.c.bf16 %v4132_v18, %v4131_v24 }
0x18e6   : > { %5609 = vmatmul.mubr.msk.bf16.vlgmr.msra.gmra.mrb[76].mxu1 %vm1787_vm2, %v4133_v26 }
0x18e7   : > { %5628 = vmatprep.mubr.msk.bf16.mxu1 %vm6521_vm1, %v6520_v3  ;;  %5621 = vmatpush3.bf16.msra.mxu1 %v5902_v11 }
0x18e8   : > { %5622 = vmatprep.subr.bf16.mxu1 %v6520_v3 }
0x18eb   : > { %5623 = vmatpush3.bf16.msra.mxu1 %v5903_v47 }
0x18ec   : > { %5624 = vmatprep.subr.bf16.mxu1 %v6520_v3 }
0x18ef   : > { %5625 = vmatpush3.bf16.msra.mxu1 %v5904_v58 }
0x18f0   : > { %5626 = vmatprep.subr.bf16.mxu1 %v6520_v3 }
0x18f3   : > { %5627 = vmatpush3.bf16.msra.mxu1 %v5905_v59 }
0x19b9   : > { %v4189_v28 = vpop.f32.mrb[76].mxu1 }
0x19ba   : > { %v4190_v29 = vadd.f32 %v5214_v34, %v4189_v28  ;;  %v5610_v31 = vpop.f32.mrb[77].mxu1 }
0x19bb   : > { %v4192_v32 = vpop.f32.mrb[78].mxu1 }
0x19bc   : > { %v4193_v22 = vadd.f32 %v5214_v34, %v4192_v32  ;;  %v5611_v36 = vpop.f32.mrb[79].mxu1  ;;  %v4198_v38 = vadd.f32 %v4190_v29, %v7524_v5 }
0x19be   : > { %v4202_v39 = vsel %vm1787_vm2, %v4198_v38, 0.0  ;;  %v4199_v40 = vadd.f32 %v4193_v22, %v7526_v6 }
0x19bf   : > { %4203 = vadd.xlane.f32.xlu0 %v4202_v39 }
0x19c0   : > { %v4205_v41 = vsel %vm1787_vm2, %v4199_v40, 0.0 }
0x19c1   : > { %4206 = vadd.xlane.f32.xlu1 %v4205_v41 }
0x1a4c   : > { %v4204_v43 = vpop.xlane.xlu0 %4203 }
0x1a4d   : > { %v4208_v46 = vmul.f32 0.03125, %v4204_v43 }
0x1a4e   : > { %v4207_v14 = vpop.xlane.xlu1 %4206 }
0x1a4f   : > { %v4210_v19 = vsub.f32 %v4198_v38, %v4208_v46  ;;  %v4209_v50 = vmul.f32 0.03125, %v4207_v14 }
0x1a51   : > { %v4211_v9 = vsub.f32 %v4199_v40, %v4209_v50  ;;  %v4212_v8 = vmul.f32 %v4210_v19, %v4210_v19 }
0x1a53   : > { %v4214_v5 = vsel %vm1787_vm2, %v4212_v8, 0.0  ;;  %v4213_v21 = vmul.f32 %v4211_v9, %v4211_v9 }
0x1a54   : > { %4215 = vadd.xlane.f32.xlu0 %v4214_v5  ;;  %v5230_v5 = vld [vmem:[%s1725_s25] ss:$0 sm:$0xff] }
0x1a55   : > { %v4217_v6 = vsel %vm1787_vm2, %v4213_v21, 0.0 }
0x1a58   : > { %4218 = vadd.xlane.f32.xlu0 %v4217_v6 }
0x1ae1   : > { %v4216_v48 = vpop.xlane.xlu0 %4215 }
0x1ae2   : > { %v4220_v49 = vmul.f32 0.03125, %v4216_v48 }
0x1ae4   : > { %v4222_v33 = vadd.f32 1e-05, %v4220_v49 }
0x1ae5   : > { %v4219_v27 = vpop.xlane.xlu0 %4218 }
0x1ae6   : > { %5974 = vrsqrt.f32 %v4222_v33  ;;  %v4221_v25 = vmul.f32 0.03125, %v4219_v27 }
0x1ae8   : > { %v4223_v42 = vadd.f32 1e-05, %v4221_v25 }
0x1aea   : > { %5976 = vrsqrt.f32 %v4223_v42 }
0x1af0   : > { %v5975_v30 = vpop.eup %5974 }
0x1af1   : > { %v4226_v37 = vmul.f32 %v5975_v30, %v4210_v19 }
0x1af3   : > { %v4234_v45 = vmul.f32 %v5218_v51, %v4226_v37 }
0x1af4   : > { %v5977_v52 = vpop.eup %5976 }
0x1af5   : > { %v4227_v53 = vmul.f32 %v5977_v52, %v4211_v9  ;;  %v4242_v56 = vadd.f32 %v5219_v54, %v4234_v45 }
0x1af7   : > { %v4235_v55 = vmul.f32 %v5218_v51, %v4227_v53 }
0x1af9   : > { %v4243_v57 = vadd.f32 %v5219_v54, %v4235_v55 }
0x1afb   : > { %v4244_v44 = vpack.c.bf16 %v4243_v57, %v4242_v56 }
0x1afd   : > { %5617 = vmatmul.mubr.msk.bf16.vlgmr.msra.gmra.mrb[80].mxu0 %vm1787_vm2, %v4244_v44 }
0x1bd0   : > { %v4305_v35 = vpop.f32.mrb[80].mxu0 }
0x1bd1   : > { %v4306_v10 = vadd.f32 %v5220_v60, %v4305_v35  ;;  %v5618_v61 = vpop.f32.mrb[81].mxu0 }
0x1bd2   : > { %v4308_v15 = vpop.f32.mrb[82].mxu0 }
0x1bd3   : > { %v4309_v62 = vadd.f32 %v5220_v60, %v4308_v15  ;;  %v5619_v63 = vpop.f32.mrb[83].mxu0  ;;  %v4312_v1 = vmax.f32 %v4306_v10, 0.0 }
0x1bd5   : > { %v4313_v2 = vmax.f32 %v4309_v62, 0.0 }
0x1bd7   : > { %v4314_v12 = vpack.c.bf16 %v4313_v2, %v4312_v1 }
0x1bd9   : > { %5629 = vmatmul.mubr.msk.bf16.vlgmr.msra.gmra.mrb[80].mxu1 %vm4354_vm9, %v4314_v12 }
0x1cac   : > { %v4392_v17 = vpop.f32.mrb[80].mxu1 }
0x1cad   : > { %v4393_v4 = vadd.f32 %v5224_v0, %v4392_v17  ;;  %v5630_v3 = vpop.f32.mrb[81].mxu1 }
0x1cae   : > { %v4395_v7 = vpop.f32.mrb[82].mxu1 }
0x1caf   : > { %v4396_v13 = vadd.f32 %v5224_v0, %v4395_v7  ;;  %v5631_v16 = vpop.f32.mrb[83].mxu1  ;;  %v4399_v18 = vadd.f32 %v4393_v4, %v4242_v56 }
0x1cb1   : > { %v4403_v24 = vsel %vm1787_vm2, %v4399_v18, 0.0  ;;  %v4400_v26 = vadd.f32 %v4396_v13, %v4243_v57 }
0x1cb2   : > { %4404 = vadd.xlane.f32.xlu0 %v4403_v24 }
0x1cb3   : > { %v4406_v34 = vsel %vm1787_vm2, %v4400_v26, 0.0 }
0x1cb4   : > { %4407 = vadd.xlane.f32.xlu1 %v4406_v34 }
0x1d3f   : > { %v4405_v28 = vpop.xlane.xlu0 %4404 }
0x1d40   : > { %v4409_v29 = vmul.f32 0.03125, %v4405_v28 }
0x1d41   : > { %v4408_v31 = vpop.xlane.xlu1 %4407 }
0x1d42   : > { %v4411_v32 = vsub.f32 %v4399_v18, %v4409_v29  ;;  %v4410_v22 = vmul.f32 0.03125, %v4408_v31 }
0x1d44   : > { %v4412_v36 = vsub.f32 %v4400_v26, %v4410_v22  ;;  %v4413_v38 = vmul.f32 %v4411_v32, %v4411_v32 }
0x1d46   : > { %v4415_v39 = vsel %vm1787_vm2, %v4413_v38, 0.0  ;;  %v4414_v40 = vmul.f32 %v4412_v36, %v4412_v36 }
0x1d47   : > { %4416 = vadd.xlane.f32.xlu0 %v4415_v39 }
0x1d48   : > { %v4418_v41 = vsel %vm1787_vm2, %v4414_v40, 0.0 }
0x1d49   : > { %4419 = vadd.xlane.f32.xlu1 %v4418_v41 }
0x1dd4   : > { %v4417_v43 = vpop.xlane.xlu0 %4416 }
0x1dd5   : > { %v4421_v46 = vmul.f32 0.03125, %v4417_v43 }
0x1dd6   : > { %v4420_v14 = vpop.xlane.xlu1 %4419 }
0x1dd7   : > { %v4423_v19 = vadd.f32 1e-05, %v4421_v46  ;;  %v4422_v50 = vmul.f32 0.03125, %v4420_v14 }
0x1dd9   : > { %5978 = vrsqrt.f32 %v4423_v19  ;;  %v4424_v9 = vadd.f32 1e-05, %v4422_v50 }
0x1ddb   : > { %5980 = vrsqrt.f32 %v4424_v9 }
0x1de3   : > { %v5979_v8 = vpop.eup %5978 }
0x1de4   : > { %v4427_v21 = vmul.f32 %v5979_v8, %v4411_v32  ;;  %4458 = sbr.rel (%p5232_p5) target bundleno = 7661 (0x1ded), region = 188 }
0x1de5   : > { %v5981_v6 = vpop.eup %5980 }
0x1de6   : > { %v4435_v20 = vmul.f32 %v5230_v5, %v4427_v21  ;;  %v4428_v11 = vmul.f32 %v5981_v6, %v4412_v36 }
0x1de8   : > { %v4443_v47 = vadd.f32 %v5231_v23, %v4435_v20  ;;  %v4436_v48 = vmul.f32 %v5230_v5, %v4428_v11 }
0x1dea   : > { %v4444_v49 = vadd.f32 %v5231_v23, %v4436_v48  ;;  %4459 = vst.msk [vmem:[#allocation2] sm:$0xff] (!%p5232_p5), %vm1787_vm2, %v4443_v47 }
0x1dec   : > { %4460 = vst.msk [vmem:[#allocation2 + $0x8] sm:$0xff] %vm1787_vm2, %v4444_v49 }
0x1ded PF: > { %s8165_s9 = sld [smem:[#allocation70_spill]] }
0x1df3   : > { %p5233_p3 = scmp.ne.s32.totalorder %s8165_s9, 1 }
0x1df4   : > { %4465 = vst.msk [vmem:[%s7230_s21] sm:$0xff] (!%p5233_p3), %vm1787_vm2, %v4443_v47  ;;  %4466 = vst.msk [vmem:[%s7230_s21 + $0x8] sm:$0xff] (!%p5233_p3), %vm1787_vm2, %v4444_v49 }
0x1df5   : > { %4464 = sbr.rel (%p5233_p3) target bundleno = 7676 (0x1dfc), region = 192 }
0x1dfc PF: > { %s8166_s25 = sld [smem:[#allocation70_spill]]  ;;  %s8167_s28 = sld [smem:[#allocation86_spill]] }
0x1dfd   : > { %s8168_s23 = sld [smem:[#allocation61_spill]]  ;;  %s8170_s18 = sld [smem:[#allocation62_spill]] }
0x1dfe   : > { %s8172_s7 = sld [smem:[#allocation85_spill]]  ;;  %s8173_s16 = sld [smem:[#allocation82_spill]] }
0x1dff   : > { %s4509_s15 = sshll.u32 %s7233_s22, 4  ;;  %s6528_s17 = smov [#allocation19]   ;;  %s7803_s15 = int_to_ptr.vmem [resolvable:$true] %s4509_s15 }
0x1e00   : > { %s6252_s3 = scalar_lea.vmem %s7803_s15, 128  ;;  %s6256_s8 = sshll.u32 %s6528_s17, 4  ;;  %s6257_s8 = int_to_ptr.vmem [resolvable:$false] %s6256_s8 }
0x1e01   : > { %p6253_p10 = scmp.ne.s32.totalorder %s7803_s15, %s6252_s3  ;;  %s6258_s22 = scalar_lea.vmem %s6257_s8, 256 }
0x1e02   : > { %s5240_s0 = sshll.u32 %s8166_s25, 2  ;;  %p6259_p2 = scmp.lt.s32.totalorder %s7803_s15, %s6257_s8 }
0x1e03   : > { %s8169_s4 = smov %s8168_s23  ;;  %s8171_s27 = smov %s8170_s18 }
0x1e04   : > { %s4506_s10 = sadd.s32 %s5240_s0, %s8167_s28  ;;  %s4473_s30 = scalar_lea.sflag [#allocation20], %s8172_s7 }
0x1e05   : > { %s5241_s13 = sshll.u32 %s4506_s10, 6  ;;  %p8174_p1 = scmp.ne.s32.totalorder %s8173_s16, 0 }
0x1e06   : > { %s7806_s1 = scalar_lea.hbm %s8168_s23, %s5241_s13  ;;  %s7809_s11 = scalar_lea.hbm %s8170_s18, %s5241_s13 }
0x1e07   : > { %p6254_p4 = pnand %p6253_p10, %p8174_p1  ;;  %p6260_p0 = scmp.lt.s32.totalorder %s6258_s22, %s6252_s3 }
0x1e09   : > { %p6255_p12 = pneg %p6254_p4  ;;  %p6261_p13 = por %p6260_p0, %p6259_p2 }
0x1e0b   : > { %p6262_p9 = pnand %p6261_p13, %p6255_p12 }
0x1e0d   : > { %6265 = shalt.err (!%p6262_p9)
}
0x1e0e   : > { %s6266_s2 = scalar_lea.hbm %s7806_s1, 128  ;;  %s6270_s29 = scalar_lea.hbm %s8169_s4, 512 }
0x1e0f   : > { %p6267_p7 = scmp.ne.s32.totalorder %s7806_s1, %s6266_s2  ;;  %p6271_p6 = scmp.lt.u32.totalorder %s7806_s1, %s8169_s4 }
0x1e10   : > { %p6272_p5 = scmp.lt.u32.totalorder %s6270_s29, %s6266_s2  ;;  %p6274_p10 = scmp.lt.u32.totalorder %s6266_s2, %s7806_s1 }
0x1e11   : > { %p6268_p8 = pnand %p6267_p7, %p8174_p1 }
0x1e12   : > { %p6273_p3 = por %p6272_p5, %p6271_p6 }
0x1e13   : > { %p6269_p11 = pneg %p6268_p8 }
0x1e14   : > { %p6275_p4 = por %p6274_p10, %p6273_p3 }
0x1e16   : > { %p6276_p12 = pnand %p6275_p4, %p6269_p11 }
0x1e18   : > { %6279 = shalt.err (!%p6276_p12)
}
0x1e19   : > { %s6529_s20 = smov 64   ;;  %s8175_s26 = sld [smem:[#allocation71_spill]] }
0x1e1a   : > { %s8176_s6 = sld [smem:[#allocation60_spill]]  ;;  %s8177_s19 = sld [smem:[#allocation66_spill]] }
0x1e1b   : > { %s8178_s14 = sld [smem:[#allocation79_spill]]  ;;  %s6530_s5 = smov 4  }
0x1e1c   : > { %5651 = dma.vmem_to_hbm [thread:$0]  (%p8174_p1), %s7803_s15, 128, %s7806_s1, %s4473_s30, %s6529_s20, %s6529_s20, %s6530_s5  }
0x1e1d   : > { %s4491_s28 = sshll.u32 %s7230_s21, 4  ;;  %s6531_s10 = smov [#allocation18]   ;;  %s7839_s28 = int_to_ptr.vmem [resolvable:$true] %s4491_s28 }
0x1e1e   : > { %s6280_s0 = scalar_lea.vmem %s7839_s28, 256  ;;  %s6284_s13 = sshll.u32 %s6531_s10, 4  ;;  %s6285_s13 = int_to_ptr.vmem [resolvable:$false] %s6284_s13 }
0x1e1f   : > { %s5257_s9 = sshll.u32 %s8175_s26, 8  ;;  %p6281_p2 = scmp.ne.s32.totalorder %s7839_s28, %s6280_s0 }
0x1e20   : > { %s7836_s25 = scalar_lea.hbm %s8176_s6, %s5257_s9  ;;  %s8179_s23 = sand.u32 1, %s8177_s19  }
0x1e21   : > { %s7843_s18 = scalar_lea.sflag [#allocation5], %s8179_s23  ;;  %p8180_p0 = scmp.ne.s32.totalorder %s8178_s14, 0 }
0x1e22   : > { %s6286_s15 = scalar_lea.vmem %s6285_s13, 512  ;;  %p6287_p7 = scmp.lt.s32.totalorder %s7839_s28, %s6285_s13 }
0x1e23   : > { %p6282_p13 = pnand %p6281_p2, %p8180_p0  ;;  %p6288_p8 = scmp.lt.s32.totalorder %s6286_s15, %s6280_s0 }
0x1e25   : > { %p6283_p9 = pneg %p6282_p13  ;;  %p6289_p11 = por %p6288_p8, %p6287_p7 }
0x1e27   : > { %p6290_p6 = pnand %p6289_p11, %p6283_p9 }
0x1e29   : > { %6293 = shalt.err (!%p6290_p6)
}
0x1e2a   : > { %s6294_s21 = scalar_lea.hbm %s7836_s25, 256  ;;  %s6298_s1 = scalar_lea.hbm %s8176_s6, 512 }
0x1e2b   : > { %p6295_p5 = scmp.ne.s32.totalorder %s7836_s25, %s6294_s21  ;;  %p6299_p4 = scmp.lt.u32.totalorder %s7836_s25, %s8176_s6 }
0x1e2c   : > { %p6300_p12 = scmp.lt.u32.totalorder %s6298_s1, %s6294_s21  ;;  %p6302_p13 = scmp.lt.u32.totalorder %s6294_s21, %s7836_s25 }
0x1e2d   : > { %p6296_p3 = pnand %p6295_p5, %p8180_p0 }
0x1e2e   : > { %p6301_p2 = por %p6300_p12, %p6299_p4 }
0x1e2f   : > { %p6297_p10 = pneg %p6296_p3 }
0x1e30   : > { %p6303_p7 = por %p6302_p13, %p6301_p2 }
0x1e32   : > { %p6304_p9 = pnand %p6303_p7, %p6297_p10 }
0x1e34   : > { %6307 = shalt.err (!%p6304_p9)
}
0x1e35   : > { %s6532_s3 = smov 128   ;;  %s4527_s17 = sshll.u32 %s7236_s12, 4  ;;  %s7865_s17 = int_to_ptr.vmem [resolvable:$true] %s4527_s17 }
0x1e36   : > { %5650 = dma.vmem_to_hbm [thread:$0]  (%p8180_p0), %s7839_s28, 256, %s7836_s25, %s7843_s18, %s6532_s3, %s6532_s3, %s6525_s24  }
0x1e37   : > { %s6308_s8 = scalar_lea.vmem %s7865_s17, 128  ;;  %s6533_s22 = smov [#allocation21]  }
0x1e38   : > { %p6309_p8 = scmp.ne.s32.totalorder %s7865_s17, %s6308_s8  ;;  %s6312_s2 = sshll.u32 %s6533_s22, 4  ;;  %s6313_s2 = int_to_ptr.vmem [resolvable:$false] %s6312_s2 }
0x1e39   : > { %s6314_s29 = scalar_lea.vmem %s6313_s2, 256  ;;  %p6315_p5 = scmp.lt.s32.totalorder %s7865_s17, %s6313_s2 }
0x1e3a   : > { %p6310_p11 = pnand %p6309_p8, %p8174_p1  ;;  %p6316_p3 = scmp.lt.s32.totalorder %s6314_s29, %s6308_s8 }
0x1e3c   : > { %p6311_p6 = pneg %p6310_p11  ;;  %p6317_p10 = por %p6316_p3, %p6315_p5 }
0x1e3e   : > { %p6318_p4 = pnand %p6317_p10, %p6311_p6 }
0x1e40   : > { %6321 = shalt.err (!%p6318_p4)
}
0x1e41   : > { %s6322_s12 = scalar_lea.hbm %s7809_s11, 128  ;;  %s6326_s24 = scalar_lea.hbm %s8171_s27, 512 }
0x1e42   : > { %p6323_p0 = scmp.ne.s32.totalorder %s7809_s11, %s6322_s12  ;;  %p6327_p13 = scmp.lt.u32.totalorder %s7809_s11, %s8171_s27 }
0x1e43   : > { %p6328_p7 = scmp.lt.u32.totalorder %s6326_s24, %s6322_s12  ;;  %p6330_p8 = scmp.lt.u32.totalorder %s6322_s12, %s7809_s11 }
0x1e44   : > { %p6324_p12 = pnand %p6323_p0, %p8174_p1 }
0x1e45   : > { %p6329_p9 = por %p6328_p7, %p6327_p13 }
0x1e46   : > { %p6325_p2 = pneg %p6324_p12 }
0x1e47   : > { %p6331_p11 = por %p6330_p8, %p6329_p9 }
0x1e49   : > { %p6332_p6 = pnand %p6331_p11, %p6325_p2 }
0x1e4b   : > { %6335 = shalt.err (!%p6332_p6)
}
0x1e4c   : > { %5652 = dma.vmem_to_hbm [thread:$0]  (%p8174_p1), %s7865_s17, 128, %s7809_s11, %s4473_s30, %s6529_s20, %s6529_s20, %s6530_s5  }
0x1e4d PF: > { %s8181_s26 = sld [smem:[#allocation74_spill]]  ;;  %s8182_s19 = sld [smem:[#allocation65_spill]] }
0x1e4e   : > { %s8183_s14 = sld [smem:[#allocation80_spill]] }
0x1e53   : > { %p5695_p5 = scmp.ge.s32.totalorder %s8181_s26, 2  ;;  %s4542_s9 = sand.u32 1, %s8182_s19  }
0x1e54   : > { %p8184_p3 = scmp.ne.s32.totalorder %s8183_s14, 0  ;;  %s4543_s25 = scalar_lea.sflag [#allocation5], %s4542_s9 }
0x1e56   : > { %p5685_p10 = pnand %p5695_p5, %p8184_p3 }
0x1e58   : > { %6413 = dma.done.wait (!%p5685_p10), %s4543_s25, 256  }
0x1e59   : > { %6415 = vsyncadd (!%p5685_p10), %s4543_s25, 4294967040  ;;  %s8185_s16 = sadd.s32 4294967294, %s8181_s26   ;;  %s8186_s28 = sld [smem:[#allocation83_spill]] }
0x1e5a   : > { %s4551_s23 = sand.u32 1, %s8185_s16  }
0x1e5b   : > { %s4552_s7 = scalar_lea.sflag [#allocation20], %s4551_s23 }
0x1e5f   : > { %p8187_p4 = scmp.ne.s32.totalorder %s8186_s28, 0 }
0x1e61   : > { %p5688_p0 = pnand %p5695_p5, %p8187_p4 }
0x1e63   : > { %6417 = dma.done.wait (!%p5688_p0), %s4552_s7, 256  }
0x1e64   : > { %6419 = vsyncadd (!%p5688_p0), %s4552_s7, 4294967040  ;;  %s99_s24 = sadd.s32 1, %s8181_s26   ;;  %s8189_s7 = sld [smem:[#allocation63_spill]] }
0x1e65   : > { %p7898_p1 = scmp.ge.s32.totalorder %s99_s24, 6   ;;  %s8190_s10 = sld [smem:[#allocation64_spill]] }
0x1e66   : > { %s8191_s0 = sld [smem:[#allocation81_spill]]  ;;  %s8192_s30 = sld [smem:[#allocation66_spill]] }
0x1e67   : > { %s8193_s15 = sld [smem:[#allocation67_spill]]  ;;  %s8195_s18 = sld [smem:[#allocation68_spill]] }
0x1e68   : > { %s8194_s16 = sld [smem:[#allocation78_spill]]  ;;  %s8196_s22 = sld [smem:[#allocation69_spill]] }
0x1e69   : > { %s8197_s23 = sld [smem:[#allocation77_spill]]  ;;  %s8198_s26 = sld [smem:[#allocation72_spill]] }
0x1e6a   : > { %s8199_s28 = sld [smem:[#allocation73_spill]]  ;;  %s8200_s1 = sld [smem:[#allocation75_spill]] }
0x1e6b   : > { %s8201_s2 = sld [smem:[#allocation76_spill]]  ;;  %98 = sbr.rel (!%p7898_p1) target bundleno = 97 (0x61), region = 428 }
0x1e6c   : > { %s8203_s11 = smov %s8192_s30 }
0x1e72   :  { %4566 = vsyncpa [#allocation4], 1 }
0x1e73   :  { %4568 = vsyncpa [#allocation4 + $0x1], 1 }
0x1e74   :  { %4569 = vsyncpa [#allocation7], 1 }
0x1e75   :  { %4571 = vsyncpa [#allocation7 + $0x1], 1 }
0x1e76   :  { %4572 = vsyncpa [#allocation10], 1 }
0x1e77   :  { %4574 = vsyncpa [#allocation10 + $0x1], 1 }
0x1e78   :  { %4575 = vsyncpa [#allocation13], 1 }
0x1e79   :  { %4577 = vsyncpa [#allocation13 + $0x1], 1 }
0x1e7a   :  { %4578 = vsyncpa [#allocation16], 1 }
0x1e7b   :  { %4580 = vsyncpa [#allocation16 + $0x1], 1 }
0x1e7c   :  { %4581 = vsyncpa [#allocation5], 1 }
0x1e7d   :  { %4583 = vsyncpa [#allocation5 + $0x1], 1 }
0x1e7e   :  { %4584 = vsyncpa [#allocation20], 1 }
0x1e7f   :  { %4586 = vsyncpa [#allocation20 + $0x1], 1 }

</bundles_post_ra>
